<compile_context>
chip_gen: v6e
topology: v6e:2x2x1
jax: 0.10.0
libtpu: 0.0.40
codegen_flags: <defaults>
</compile_context>

<pallas_src>
import functools

import jax
import jax.numpy as jnp
import numpy as np
from jax.experimental import pallas as pl
from jax.experimental.pallas import tpu as pltpu


# ------------------------------- Pallas kernel ------------------------------ #

def _bottleneck_kernel(has_downsample, *refs):
    """Fused Bottleneck forward for one batch element.

    refs (inputs):
      x_ref  : (1, H, W, Cin)   input block (NHWC)
      w1_ref : (Cin, P)         conv1 1x1 weights
      s1_ref, b1_ref : (1, P)   folded BN1 scale / bias
      w2_ref : (9, P, P)        conv2 3x3 weights, tap-major [(ky*3+kx), cin, cout]
      s2_ref, b2_ref : (1, P)   folded BN2 scale / bias
      w3_ref : (P, Cout)        conv3 1x1 weights
      s3_ref, b3_ref : (1, Cout) folded BN3 scale / bias
      [wd_ref : (Cin, Cout), sd_ref, bd_ref : (1, Cout)]  projection shortcut
    refs (outputs / scratch):
      o_ref   : (1, H, W, Cout)
      pad_ref : (H+2, W+2, P)   VMEM halo scratch for the 3x3 conv
    """
    if has_downsample:
        (x_ref, w1_ref, s1_ref, b1_ref, w2_ref, s2_ref, b2_ref,
         w3_ref, s3_ref, b3_ref, wd_ref, sd_ref, bd_ref,
         o_ref, pad_ref) = refs
    else:
        (x_ref, w1_ref, s1_ref, b1_ref, w2_ref, s2_ref, b2_ref,
         w3_ref, s3_ref, b3_ref,
         o_ref, pad_ref) = refs
        wd_ref = sd_ref = bd_ref = None

    _, H, W, Cin = x_ref.shape
    P = w1_ref.shape[1]
    Cout = o_ref.shape[3]

    # ---- load the input once, flatten spatial dims onto the sublane axis ----
    x = x_ref[0].reshape(H * W, Cin)                                   # (HW, Cin)

    # ---- conv1 (1x1) + BN1 + ReLU  (MXU, default precision, f32 accum) ------
    h1 = jnp.dot(x, w1_ref[...], preferred_element_type=jnp.float32)
    h1 = jnp.maximum(h1 * s1_ref[...] + b1_ref[...], 0.0)              # (HW, P)

    # ---- conv2 (3x3, pad=1) + BN2 + ReLU ------------------------------------
    # Zero-fill the halo scratch and write the interior; per-iteration re-zero
    # keeps correctness when the parallel grid is sharded across TensorCores.
    pad_ref[...] = jnp.zeros_like(pad_ref)
    pad_ref[1:H + 1, 1:W + 1, :] = h1.reshape(H, W, P)

    w2_all = w2_ref[...]                                               # hoisted load
    acc = jnp.zeros((H * W, P), jnp.float32)
    for t in range(9):                                                 # unrolled taps
        ky, kx = t // 3, t % 3
        patch = pad_ref[ky:ky + H, kx:kx + W, :].reshape(H * W, P)
        acc = acc + jnp.dot(patch, w2_all[t],
                            preferred_element_type=jnp.float32)
    h2 = jnp.maximum(acc * s2_ref[...] + b2_ref[...], 0.0)             # (HW, P)

    # ---- conv3 (1x1) + BN3 --------------------------------------------------
    h3 = jnp.dot(h2, w3_ref[...], preferred_element_type=jnp.float32)
    h3 = h3 * s3_ref[...] + b3_ref[...]                                # (HW, Cout)

    # ---- residual (identity or fused 1x1 projection + BN) + ReLU ------------
    if has_downsample:
        resid = jnp.dot(x, wd_ref[...], preferred_element_type=jnp.float32)
        resid = resid * sd_ref[...] + bd_ref[...]
    else:
        resid = x                                                      # Cin == Cout
    out = jnp.maximum(h3 + resid, 0.0)

    o_ref[0] = out.reshape(H, W, Cout).astype(o_ref.dtype)


# -------------------------------- host wrapper ------------------------------ #

def bottleneck_forward(x_nchw, params):
    """Bottleneck.forward(x) with NCHW I/O (PyTorch convention)."""
    x = jnp.transpose(x_nchw, (0, 2, 3, 1)).astype(jnp.float32)        # -> NHWC
    N, H, W, Cin = x.shape
    P = params["w1"].shape[1]
    Cout = params["w3"].shape[1]
    has_ds = "wd" in params
    if not has_ds:
        assert Cin == Cout, "identity shortcut requires inplanes == planes*4"

    inputs = [x,
              params["w1"], params["s1"], params["b1"],
              params["w2"], params["s2"], params["b2"],
              params["w3"], params["s3"], params["b3"]]
    in_specs = [
        pl.BlockSpec((1, H, W, Cin), lambda n: (n, 0, 0, 0)),
        pl.BlockSpec((Cin, P), lambda n: (0, 0)),
        pl.BlockSpec((1, P), lambda n: (0, 0)),
        pl.BlockSpec((1, P), lambda n: (0, 0)),
        pl.BlockSpec((9, P, P), lambda n: (0, 0, 0)),
        pl.BlockSpec((1, P), lambda n: (0, 0)),
        pl.BlockSpec((1, P), lambda n: (0, 0)),
        pl.BlockSpec((P, Cout), lambda n: (0, 0)),
        pl.BlockSpec((1, Cout), lambda n: (0, 0)),
        pl.BlockSpec((1, Cout), lambda n: (0, 0)),
    ]
    if has_ds:
        inputs += [params["wd"], params["sd"], params["bd"]]
        in_specs += [
            pl.BlockSpec((Cin, Cout), lambda n: (0, 0)),
            pl.BlockSpec((1, Cout), lambda n: (0, 0)),
            pl.BlockSpec((1, Cout), lambda n: (0, 0)),
        ]

    out_nhwc = pl.pallas_call(
        functools.partial(_bottleneck_kernel, has_ds),
        out_shape=jax.ShapeDtypeStruct((N, H, W, Cout), jnp.float32),
        grid=(N,),
        in_specs=in_specs,
        out_specs=pl.BlockSpec((1, H, W, Cout), lambda n: (n, 0, 0, 0)),
        scratch_shapes=[pltpu.VMEM((H + 2, W + 2, P), jnp.float32)],
        compiler_params=pltpu.CompilerParams(
            dimension_semantics=("parallel",),          # megacore on v7x
            vmem_limit_bytes=32 * 1024 * 1024,
        ),
    )(*inputs)
    return jnp.transpose(out_nhwc, (0, 3, 1, 2))                       # -> NCHW


# ---------------------------- parameter construction ------------------------ #

def _fold_bn(kg, kb, km, kv, c, eps=1e-5):
    """Synthetic BatchNorm params folded to inference-mode scale/bias."""
    gamma = 1.0 + 0.1 * jax.random.normal(kg, (c,), jnp.float32)
    beta = 0.1 * jax.random.normal(kb, (c,), jnp.float32)
    mean = 0.1 * jax.random.normal(km, (c,), jnp.float32)
    var = 0.5 + jnp.abs(jax.random.normal(kv, (c,), jnp.float32))
    scale = gamma * jax.lax.rsqrt(var + eps)
    bias = beta - mean * scale
    return scale.reshape(1, c), bias.reshape(1, c)


def init_params(key, inplanes, planes, with_downsample):
    expansion = 4
    cout = planes * expansion
    ks = jax.random.split(key, 16)
    conv1 = 0.1 * jax.random.normal(ks[0], (planes, inplanes), jnp.float32)     # (out, in)
    conv2 = 0.1 * jax.random.normal(ks[1], (planes, planes, 3, 3), jnp.float32)  # (out,in,ky,kx)
    conv3 = 0.1 * jax.random.normal(ks[2], (cout, planes), jnp.float32)
    s1, b1 = _fold_bn(ks[3], ks[4], ks[5], ks[6], planes)
    s2, b2 = _fold_bn(ks[7], ks[8], ks[9], ks[10], planes)
    s3, b3 = _fold_bn(ks[11], ks[12], ks[13], ks[14], cout)
    # per-tap (cin, cout) matmul weights, tap index t = ky*3 + kx
    w2 = jnp.stack([conv2[:, :, t // 3, t % 3].T for t in range(9)], axis=0)
    params = dict(w1=conv1.T, s1=s1, b1=b1,
                  w2=w2, s2=s2, b2=b2,
                  w3=conv3.T, s3=s3, b3=b3)
    if with_downsample:
        kd = jax.random.split(ks[15], 5)
        convd = 0.1 * jax.random.normal(kd[0], (cout, inplanes), jnp.float32)
        sd, bd = _fold_bn(kd[1], kd[2], kd[3], kd[4], cout)
        params.update(wd=convd.T, sd=sd, bd=bd)
    return params


# ------------------------------ pure-JAX reference -------------------------- #

def reference_forward(x_nchw, params):
    x = jnp.transpose(x_nchw, (0, 2, 3, 1)).astype(jnp.float32)        # NHWC
    N, H, W, Cin = x.shape
    h1 = jnp.maximum(
        jnp.einsum("nhwc,cp->nhwp", x, params["w1"]) * params["s1"] + params["b1"], 0.0)
    hp = jnp.pad(h1, ((0, 0), (1, 1), (1, 1), (0, 0)))
    P = params["w1"].shape[1]
    acc = jnp.zeros((N, H, W, P), jnp.float32)
    for t in range(9):
        ky, kx = t // 3, t % 3
        acc = acc + jnp.einsum("nhwc,cp->nhwp",
                               hp[:, ky:ky + H, kx:kx + W, :], params["w2"][t])
    h2 = jnp.maximum(acc * params["s2"] + params["b2"], 0.0)
    h3 = jnp.einsum("nhwc,cp->nhwp", h2, params["w3"]) * params["s3"] + params["b3"]
    if "wd" in params:
        resid = jnp.einsum("nhwc,cp->nhwp", x, params["wd"]) * params["sd"] + params["bd"]
    else:
        resid = x
    out = jnp.maximum(h3 + resid, 0.0)
    return jnp.transpose(out, (0, 3, 1, 2))                            # NCHW


# ------------------------------------ main ----------------------------------- #

if __name__ == "__main__":
    key = jax.random.PRNGKey(0)
    kx1, kx2, kp1, kp2 = jax.random.split(key, 4)

    planes = 8
    fwd = jax.jit(bottleneck_forward)

    # Case 1: identity shortcut (inplanes == planes*4, stride=1, downsample=None)
    inplanes1 = planes * 4
    x1 = jax.random.normal(kx1, (2, inplanes1, 16, 16), jnp.float32)
    p1 = init_params(kp1, inplanes1, planes, with_downsample=False)
    out1 = jax.block_until_ready(fwd(x1, p1))
    ref1 = reference_forward(x1, p1)
    np.testing.assert_allclose(np.asarray(out1), np.asarray(ref1), rtol=2e-2, atol=2e-2)

    # Case 2: projection shortcut (1x1 conv + BN downsample, stride=1)
    inplanes2 = 16
    x2 = jax.random.normal(kx2, (2, inplanes2, 16, 16), jnp.float32)
    p2 = init_params(kp2, inplanes2, planes, with_downsample=True)
    out2 = jax.block_until_ready(fwd(x2, p2))
    ref2 = reference_forward(x2, p2)
    np.testing.assert_allclose(np.asarray(out2), np.asarray(ref2), rtol=2e-2, atol=2e-2)

    print("KERNEL_OK")
</pallas_src>

<mosaic_0001>
module attributes {stable_mosaic.version = 11 : i64} {
  func.func @_bottleneck_kernel(%arg0: i32, %arg1: memref<1x16x16x32xf32, #tpu.memory_space<vmem>>, %arg2: memref<32x8xf32, #tpu.memory_space<vmem>>, %arg3: memref<1x8xf32, #tpu.memory_space<vmem>>, %arg4: memref<1x8xf32, #tpu.memory_space<vmem>>, %arg5: memref<9x8x8xf32, #tpu.memory_space<vmem>>, %arg6: memref<1x8xf32, #tpu.memory_space<vmem>>, %arg7: memref<1x8xf32, #tpu.memory_space<vmem>>, %arg8: memref<8x32xf32, #tpu.memory_space<vmem>>, %arg9: memref<1x32xf32, #tpu.memory_space<vmem>>, %arg10: memref<1x32xf32, #tpu.memory_space<vmem>>, %arg11: memref<1x16x16x32xf32, #tpu.memory_space<vmem>>, %arg12: memref<18x18x8xf32, #tpu.memory_space<vmem>>) attributes {dimension_semantics = [#tpu.dimension_semantics<parallel>], iteration_bounds = array<i64: 2>, scalar_prefetch = 0 : i64, scratch_operands = 1 : i64, tpu.core_type = #tpu.core_type<tc>, window_params = [{transform_indices = @transform_0, window_bounds = array<i64: 1, 16, 16, 32>}, {pipeline_mode = #tpu.pipeline_mode<synchronous>, transform_indices = @transform_1, window_bounds = array<i64: 32, 8>}, {pipeline_mode = #tpu.pipeline_mode<synchronous>, transform_indices = @transform_2, window_bounds = array<i64: 1, 8>}, {pipeline_mode = #tpu.pipeline_mode<synchronous>, transform_indices = @transform_3, window_bounds = array<i64: 1, 8>}, {pipeline_mode = #tpu.pipeline_mode<synchronous>, transform_indices = @transform_4, window_bounds = array<i64: 9, 8, 8>}, {pipeline_mode = #tpu.pipeline_mode<synchronous>, transform_indices = @transform_5, window_bounds = array<i64: 1, 8>}, {pipeline_mode = #tpu.pipeline_mode<synchronous>, transform_indices = @transform_6, window_bounds = array<i64: 1, 8>}, {pipeline_mode = #tpu.pipeline_mode<synchronous>, transform_indices = @transform_7, window_bounds = array<i64: 8, 32>}, {pipeline_mode = #tpu.pipeline_mode<synchronous>, transform_indices = @transform_8, window_bounds = array<i64: 1, 32>}, {pipeline_mode = #tpu.pipeline_mode<synchronous>, transform_indices = @transform_9, window_bounds = array<i64: 1, 32>}, {transform_indices = @transform_10, window_bounds = array<i64: 1, 16, 16, 32>}]} {
    %c0 = arith.constant 0 : index
    %c0_0 = arith.constant 0 : index
    %c0_1 = arith.constant 0 : index
    %c0_2 = arith.constant 0 : index
    %0 = vector.load %arg1[%c0, %c0_0, %c0_1, %c0_2] : memref<1x16x16x32xf32, #tpu.memory_space<vmem>>, vector<1x16x16x32xf32>
    %1 = vector.shape_cast %0 : vector<1x16x16x32xf32> to vector<16x16x32xf32>
    %2 = vector.shape_cast %1 : vector<16x16x32xf32> to vector<256x32xf32>
    %c0_3 = arith.constant 0 : index
    %c0_4 = arith.constant 0 : index
    %3 = vector.load %arg2[%c0_3, %c0_4] : memref<32x8xf32, #tpu.memory_space<vmem>>, vector<32x8xf32>
    %cst = arith.constant dense<0.000000e+00> : vector<256x8xf32>
    %4 = tpu.matmul %2, %3, %cst {dimension_numbers = #tpu.dot_dimension_numbers<[1], [0], [0], [1], [0, 0, 1, 1], [], []>} : vector<256x32xf32>, vector<32x8xf32>, vector<256x8xf32> -> vector<256x8xf32>
    %c0_5 = arith.constant 0 : index
    %c0_6 = arith.constant 0 : index
    %5 = vector.load %arg3[%c0_5, %c0_6] : memref<1x8xf32, #tpu.memory_space<vmem>>, vector<1x8xf32>
    %6 = vector.broadcast %5 : vector<1x8xf32> to vector<256x8xf32>
    %7 = arith.mulf %4, %6 : vector<256x8xf32>
    %c0_7 = arith.constant 0 : index
    %c0_8 = arith.constant 0 : index
    %8 = vector.load %arg4[%c0_7, %c0_8] : memref<1x8xf32, #tpu.memory_space<vmem>>, vector<1x8xf32>
    %9 = vector.broadcast %8 : vector<1x8xf32> to vector<256x8xf32>
    %10 = arith.addf %7, %9 : vector<256x8xf32>
    %cst_9 = arith.constant 0.000000e+00 : f32
    %11 = vector.broadcast %cst_9 : f32 to vector<256x8xf32>
    %12 = arith.maximumf %10, %11 : vector<256x8xf32>
    %cst_10 = arith.constant 0.000000e+00 : f32
    %13 = vector.broadcast %cst_10 : f32 to vector<18x18x8xf32>
    %c0_11 = arith.constant 0 : index
    %c0_12 = arith.constant 0 : index
    %c0_13 = arith.constant 0 : index
    %14 = vector.load %arg12[%c0_11, %c0_12, %c0_13] : memref<18x18x8xf32, #tpu.memory_space<vmem>>, vector<18x18x8xf32>
    tpu.vector_store %arg12[%c0_11, %c0_12, %c0_13], %13 {strides = array<i32>} : memref<18x18x8xf32, #tpu.memory_space<vmem>>, vector<18x18x8xf32>,
    %15 = vector.shape_cast %12 : vector<256x8xf32> to vector<16x16x8xf32>
    %c1 = arith.constant 1 : index
    %c1_14 = arith.constant 1 : index
    %c0_15 = arith.constant 0 : index
    %16 = vector.load %arg12[%c1, %c1_14, %c0_15] : memref<18x18x8xf32, #tpu.memory_space<vmem>>, vector<16x16x8xf32>
    tpu.vector_store %arg12[%c1, %c1_14, %c0_15], %15 {strides = array<i32>} : memref<18x18x8xf32, #tpu.memory_space<vmem>>, vector<16x16x8xf32>,
    %c0_16 = arith.constant 0 : index
    %c0_17 = arith.constant 0 : index
    %c0_18 = arith.constant 0 : index
    %17 = vector.load %arg5[%c0_16, %c0_17, %c0_18] : memref<9x8x8xf32, #tpu.memory_space<vmem>>, vector<9x8x8xf32>
    %cst_19 = arith.constant 0.000000e+00 : f32
    %18 = vector.broadcast %cst_19 : f32 to vector<256x8xf32>
    %c0_20 = arith.constant 0 : index
    %c0_21 = arith.constant 0 : index
    %c0_22 = arith.constant 0 : index
    %19 = vector.load %arg12[%c0_20, %c0_21, %c0_22] : memref<18x18x8xf32, #tpu.memory_space<vmem>>, vector<16x16x8xf32>
    %20 = vector.shape_cast %19 : vector<16x16x8xf32> to vector<256x8xf32>
    %21 = vector.extract_strided_slice %17 {offsets = [0, 0, 0], sizes = [1, 8, 8], strides = [1, 1, 1]} : vector<9x8x8xf32> to vector<1x8x8xf32>
    %22 = vector.shape_cast %21 : vector<1x8x8xf32> to vector<8x8xf32>
    %cst_23 = arith.constant dense<0.000000e+00> : vector<256x8xf32>
    %23 = tpu.matmul %20, %22, %cst_23 {dimension_numbers = #tpu.dot_dimension_numbers<[1], [0], [0], [1], [0, 0, 1, 1], [], []>} : vector<256x8xf32>, vector<8x8xf32>, vector<256x8xf32> -> vector<256x8xf32>
    %24 = arith.addf %18, %23 : vector<256x8xf32>
    %c0_24 = arith.constant 0 : index
    %c1_25 = arith.constant 1 : index
    %c0_26 = arith.constant 0 : index
    %25 = vector.load %arg12[%c0_24, %c1_25, %c0_26] : memref<18x18x8xf32, #tpu.memory_space<vmem>>, vector<16x16x8xf32>
    %26 = vector.shape_cast %25 : vector<16x16x8xf32> to vector<256x8xf32>
    %27 = vector.extract_strided_slice %17 {offsets = [1, 0, 0], sizes = [1, 8, 8], strides = [1, 1, 1]} : vector<9x8x8xf32> to vector<1x8x8xf32>
    %28 = vector.shape_cast %27 : vector<1x8x8xf32> to vector<8x8xf32>
    %cst_27 = arith.constant dense<0.000000e+00> : vector<256x8xf32>
    %29 = tpu.matmul %26, %28, %cst_27 {dimension_numbers = #tpu.dot_dimension_numbers<[1], [0], [0], [1], [0, 0, 1, 1], [], []>} : vector<256x8xf32>, vector<8x8xf32>, vector<256x8xf32> -> vector<256x8xf32>
    %30 = arith.addf %24, %29 : vector<256x8xf32>
    %c0_28 = arith.constant 0 : index
    %c2 = arith.constant 2 : index
    %c0_29 = arith.constant 0 : index
    %31 = vector.load %arg12[%c0_28, %c2, %c0_29] : memref<18x18x8xf32, #tpu.memory_space<vmem>>, vector<16x16x8xf32>
    %32 = vector.shape_cast %31 : vector<16x16x8xf32> to vector<256x8xf32>
    %33 = vector.extract_strided_slice %17 {offsets = [2, 0, 0], sizes = [1, 8, 8], strides = [1, 1, 1]} : vector<9x8x8xf32> to vector<1x8x8xf32>
    %34 = vector.shape_cast %33 : vector<1x8x8xf32> to vector<8x8xf32>
    %cst_30 = arith.constant dense<0.000000e+00> : vector<256x8xf32>
    %35 = tpu.matmul %32, %34, %cst_30 {dimension_numbers = #tpu.dot_dimension_numbers<[1], [0], [0], [1], [0, 0, 1, 1], [], []>} : vector<256x8xf32>, vector<8x8xf32>, vector<256x8xf32> -> vector<256x8xf32>
    %36 = arith.addf %30, %35 : vector<256x8xf32>
    %c1_31 = arith.constant 1 : index
    %c0_32 = arith.constant 0 : index
    %c0_33 = arith.constant 0 : index
    %37 = vector.load %arg12[%c1_31, %c0_32, %c0_33] : memref<18x18x8xf32, #tpu.memory_space<vmem>>, vector<16x16x8xf32>
    %38 = vector.shape_cast %37 : vector<16x16x8xf32> to vector<256x8xf32>
    %39 = vector.extract_strided_slice %17 {offsets = [3, 0, 0], sizes = [1, 8, 8], strides = [1, 1, 1]} : vector<9x8x8xf32> to vector<1x8x8xf32>
    %40 = vector.shape_cast %39 : vector<1x8x8xf32> to vector<8x8xf32>
    %cst_34 = arith.constant dense<0.000000e+00> : vector<256x8xf32>
    %41 = tpu.matmul %38, %40, %cst_34 {dimension_numbers = #tpu.dot_dimension_numbers<[1], [0], [0], [1], [0, 0, 1, 1], [], []>} : vector<256x8xf32>, vector<8x8xf32>, vector<256x8xf32> -> vector<256x8xf32>
    %42 = arith.addf %36, %41 : vector<256x8xf32>
    %c1_35 = arith.constant 1 : index
    %c1_36 = arith.constant 1 : index
    %c0_37 = arith.constant 0 : index
    %43 = vector.load %arg12[%c1_35, %c1_36, %c0_37] : memref<18x18x8xf32, #tpu.memory_space<vmem>>, vector<16x16x8xf32>
    %44 = vector.shape_cast %43 : vector<16x16x8xf32> to vector<256x8xf32>
    %45 = vector.extract_strided_slice %17 {offsets = [4, 0, 0], sizes = [1, 8, 8], strides = [1, 1, 1]} : vector<9x8x8xf32> to vector<1x8x8xf32>
    %46 = vector.shape_cast %45 : vector<1x8x8xf32> to vector<8x8xf32>
    %cst_38 = arith.constant dense<0.000000e+00> : vector<256x8xf32>
    %47 = tpu.matmul %44, %46, %cst_38 {dimension_numbers = #tpu.dot_dimension_numbers<[1], [0], [0], [1], [0, 0, 1, 1], [], []>} : vector<256x8xf32>, vector<8x8xf32>, vector<256x8xf32> -> vector<256x8xf32>
    %48 = arith.addf %42, %47 : vector<256x8xf32>
    %c1_39 = arith.constant 1 : index
    %c2_40 = arith.constant 2 : index
    %c0_41 = arith.constant 0 : index
    %49 = vector.load %arg12[%c1_39, %c2_40, %c0_41] : memref<18x18x8xf32, #tpu.memory_space<vmem>>, vector<16x16x8xf32>
    %50 = vector.shape_cast %49 : vector<16x16x8xf32> to vector<256x8xf32>
    %51 = vector.extract_strided_slice %17 {offsets = [5, 0, 0], sizes = [1, 8, 8], strides = [1, 1, 1]} : vector<9x8x8xf32> to vector<1x8x8xf32>
    %52 = vector.shape_cast %51 : vector<1x8x8xf32> to vector<8x8xf32>
    %cst_42 = arith.constant dense<0.000000e+00> : vector<256x8xf32>
    %53 = tpu.matmul %50, %52, %cst_42 {dimension_numbers = #tpu.dot_dimension_numbers<[1], [0], [0], [1], [0, 0, 1, 1], [], []>} : vector<256x8xf32>, vector<8x8xf32>, vector<256x8xf32> -> vector<256x8xf32>
    %54 = arith.addf %48, %53 : vector<256x8xf32>
    %c2_43 = arith.constant 2 : index
    %c0_44 = arith.constant 0 : index
    %c0_45 = arith.constant 0 : index
    %55 = vector.load %arg12[%c2_43, %c0_44, %c0_45] : memref<18x18x8xf32, #tpu.memory_space<vmem>>, vector<16x16x8xf32>
    %56 = vector.shape_cast %55 : vector<16x16x8xf32> to vector<256x8xf32>
    %57 = vector.extract_strided_slice %17 {offsets = [6, 0, 0], sizes = [1, 8, 8], strides = [1, 1, 1]} : vector<9x8x8xf32> to vector<1x8x8xf32>
    %58 = vector.shape_cast %57 : vector<1x8x8xf32> to vector<8x8xf32>
    %cst_46 = arith.constant dense<0.000000e+00> : vector<256x8xf32>
    %59 = tpu.matmul %56, %58, %cst_46 {dimension_numbers = #tpu.dot_dimension_numbers<[1], [0], [0], [1], [0, 0, 1, 1], [], []>} : vector<256x8xf32>, vector<8x8xf32>, vector<256x8xf32> -> vector<256x8xf32>
    %60 = arith.addf %54, %59 : vector<256x8xf32>
    %c2_47 = arith.constant 2 : index
    %c1_48 = arith.constant 1 : index
    %c0_49 = arith.constant 0 : index
    %61 = vector.load %arg12[%c2_47, %c1_48, %c0_49] : memref<18x18x8xf32, #tpu.memory_space<vmem>>, vector<16x16x8xf32>
    %62 = vector.shape_cast %61 : vector<16x16x8xf32> to vector<256x8xf32>
    %63 = vector.extract_strided_slice %17 {offsets = [7, 0, 0], sizes = [1, 8, 8], strides = [1, 1, 1]} : vector<9x8x8xf32> to vector<1x8x8xf32>
    %64 = vector.shape_cast %63 : vector<1x8x8xf32> to vector<8x8xf32>
    %cst_50 = arith.constant dense<0.000000e+00> : vector<256x8xf32>
    %65 = tpu.matmul %62, %64, %cst_50 {dimension_numbers = #tpu.dot_dimension_numbers<[1], [0], [0], [1], [0, 0, 1, 1], [], []>} : vector<256x8xf32>, vector<8x8xf32>, vector<256x8xf32> -> vector<256x8xf32>
    %66 = arith.addf %60, %65 : vector<256x8xf32>
    %c2_51 = arith.constant 2 : index
    %c2_52 = arith.constant 2 : index
    %c0_53 = arith.constant 0 : index
    %67 = vector.load %arg12[%c2_51, %c2_52, %c0_53] : memref<18x18x8xf32, #tpu.memory_space<vmem>>, vector<16x16x8xf32>
    %68 = vector.shape_cast %67 : vector<16x16x8xf32> to vector<256x8xf32>
    %69 = vector.extract_strided_slice %17 {offsets = [8, 0, 0], sizes = [1, 8, 8], strides = [1, 1, 1]} : vector<9x8x8xf32> to vector<1x8x8xf32>
    %70 = vector.shape_cast %69 : vector<1x8x8xf32> to vector<8x8xf32>
    %cst_54 = arith.constant dense<0.000000e+00> : vector<256x8xf32>
    %71 = tpu.matmul %68, %70, %cst_54 {dimension_numbers = #tpu.dot_dimension_numbers<[1], [0], [0], [1], [0, 0, 1, 1], [], []>} : vector<256x8xf32>, vector<8x8xf32>, vector<256x8xf32> -> vector<256x8xf32>
    %72 = arith.addf %66, %71 : vector<256x8xf32>
    %c0_55 = arith.constant 0 : index
    %c0_56 = arith.constant 0 : index
    %73 = vector.load %arg6[%c0_55, %c0_56] : memref<1x8xf32, #tpu.memory_space<vmem>>, vector<1x8xf32>
    %74 = vector.broadcast %73 : vector<1x8xf32> to vector<256x8xf32>
    %75 = arith.mulf %72, %74 : vector<256x8xf32>
    %c0_57 = arith.constant 0 : index
    %c0_58 = arith.constant 0 : index
    %76 = vector.load %arg7[%c0_57, %c0_58] : memref<1x8xf32, #tpu.memory_space<vmem>>, vector<1x8xf32>
    %77 = vector.broadcast %76 : vector<1x8xf32> to vector<256x8xf32>
    %78 = arith.addf %75, %77 : vector<256x8xf32>
    %cst_59 = arith.constant 0.000000e+00 : f32
    %79 = vector.broadcast %cst_59 : f32 to vector<256x8xf32>
    %80 = arith.maximumf %78, %79 : vector<256x8xf32>
    %c0_60 = arith.constant 0 : index
    %c0_61 = arith.constant 0 : index
    %81 = vector.load %arg8[%c0_60, %c0_61] : memref<8x32xf32, #tpu.memory_space<vmem>>, vector<8x32xf32>
    %cst_62 = arith.constant dense<0.000000e+00> : vector<256x32xf32>
    %82 = tpu.matmul %80, %81, %cst_62 {dimension_numbers = #tpu.dot_dimension_numbers<[1], [0], [0], [1], [0, 0, 1, 1], [], []>} : vector<256x8xf32>, vector<8x32xf32>, vector<256x32xf32> -> vector<256x32xf32>
    %c0_63 = arith.constant 0 : index
    %c0_64 = arith.constant 0 : index
    %83 = vector.load %arg9[%c0_63, %c0_64] : memref<1x32xf32, #tpu.memory_space<vmem>>, vector<1x32xf32>
    %84 = vector.broadcast %83 : vector<1x32xf32> to vector<256x32xf32>
    %85 = arith.mulf %82, %84 : vector<256x32xf32>
    %c0_65 = arith.constant 0 : index
    %c0_66 = arith.constant 0 : index
    %86 = vector.load %arg10[%c0_65, %c0_66] : memref<1x32xf32, #tpu.memory_space<vmem>>, vector<1x32xf32>
    %87 = vector.broadcast %86 : vector<1x32xf32> to vector<256x32xf32>
    %88 = arith.addf %85, %87 : vector<256x32xf32>
    %89 = arith.addf %88, %2 : vector<256x32xf32>
    %cst_67 = arith.constant 0.000000e+00 : f32
    %90 = vector.broadcast %cst_67 : f32 to vector<256x32xf32>
    %91 = arith.maximumf %89, %90 : vector<256x32xf32>
    %92 = vector.shape_cast %91 : vector<256x32xf32> to vector<16x16x32xf32>
    %c0_68 = arith.constant 0 : index
    %c0_69 = arith.constant 0 : index
    %c0_70 = arith.constant 0 : index
    %c0_71 = arith.constant 0 : index
    %93 = vector.load %arg11[%c0_68, %c0_69, %c0_70, %c0_71] : memref<1x16x16x32xf32, #tpu.memory_space<vmem>>, vector<1x16x16x32xf32>
    %94 = vector.shape_cast %93 : vector<1x16x16x32xf32> to vector<16x16x32xf32>
    %95 = vector.shape_cast %92 : vector<16x16x32xf32> to vector<1x16x16x32xf32>
    tpu.vector_store %arg11[%c0_68, %c0_69, %c0_70, %c0_71], %95 {strides = array<i32>} : memref<1x16x16x32xf32, #tpu.memory_space<vmem>>, vector<1x16x16x32xf32>,
    return
  }
  func.func @transform_0(%arg0: i32) -> (i32, i32, i32, i32) {
    %c0_i32 = arith.constant 0 : i32
    %c0_i32_0 = arith.constant 0 : i32
    %c0_i32_1 = arith.constant 0 : i32
    %c0_i32_2 = arith.constant 0 : i32
    return %arg0, %c0_i32, %c0_i32_0, %c0_i32_1 : i32, i32, i32, i32
  }
  func.func @transform_1(%arg0: i32) -> (i32, i32) {
    %c0_i32 = arith.constant 0 : i32
    %c0_i32_0 = arith.constant 0 : i32
    %c0_i32_1 = arith.constant 0 : i32
    return %c0_i32, %c0_i32_0 : i32, i32
  }
  func.func @transform_2(%arg0: i32) -> (i32, i32) {
    %c0_i32 = arith.constant 0 : i32
    %c0_i32_0 = arith.constant 0 : i32
    %c0_i32_1 = arith.constant 0 : i32
    return %c0_i32, %c0_i32_0 : i32, i32
  }
  func.func @transform_3(%arg0: i32) -> (i32, i32) {
    %c0_i32 = arith.constant 0 : i32
    %c0_i32_0 = arith.constant 0 : i32
    %c0_i32_1 = arith.constant 0 : i32
    return %c0_i32, %c0_i32_0 : i32, i32
  }
  func.func @transform_4(%arg0: i32) -> (i32, i32, i32) {
    %c0_i32 = arith.constant 0 : i32
    %c0_i32_0 = arith.constant 0 : i32
    %c0_i32_1 = arith.constant 0 : i32
    %c0_i32_2 = arith.constant 0 : i32
    return %c0_i32, %c0_i32_0, %c0_i32_1 : i32, i32, i32
  }
  func.func @transform_5(%arg0: i32) -> (i32, i32) {
    %c0_i32 = arith.constant 0 : i32
    %c0_i32_0 = arith.constant 0 : i32
    %c0_i32_1 = arith.constant 0 : i32
    return %c0_i32, %c0_i32_0 : i32, i32
  }
  func.func @transform_6(%arg0: i32) -> (i32, i32) {
    %c0_i32 = arith.constant 0 : i32
    %c0_i32_0 = arith.constant 0 : i32
    %c0_i32_1 = arith.constant 0 : i32
    return %c0_i32, %c0_i32_0 : i32, i32
  }
  func.func @transform_7(%arg0: i32) -> (i32, i32) {
    %c0_i32 = arith.constant 0 : i32
    %c0_i32_0 = arith.constant 0 : i32
    %c0_i32_1 = arith.constant 0 : i32
    return %c0_i32, %c0_i32_0 : i32, i32
  }
  func.func @transform_8(%arg0: i32) -> (i32, i32) {
    %c0_i32 = arith.constant 0 : i32
    %c0_i32_0 = arith.constant 0 : i32
    %c0_i32_1 = arith.constant 0 : i32
    return %c0_i32, %c0_i32_0 : i32, i32
  }
  func.func @transform_9(%arg0: i32) -> (i32, i32) {
    %c0_i32 = arith.constant 0 : i32
    %c0_i32_0 = arith.constant 0 : i32
    %c0_i32_1 = arith.constant 0 : i32
    return %c0_i32, %c0_i32_0 : i32, i32
  }
  func.func @transform_10(%arg0: i32) -> (i32, i32, i32, i32) {
    %c0_i32 = arith.constant 0 : i32
    %c0_i32_0 = arith.constant 0 : i32
    %c0_i32_1 = arith.constant 0 : i32
    %c0_i32_2 = arith.constant 0 : i32
    return %arg0, %c0_i32, %c0_i32_0, %c0_i32_1 : i32, i32, i32, i32
  }
}

</mosaic_0001>

<bundles_post_ra>
// kernel: bottleneck_forward.1
= control target key start
LH: loop header
LB: loop body
LE: loop exit
PB: predicated region body
PF: predicated region fallthrough
CT: control target
= control target key end

     0   :  { %15 = vsyncpa [#allocation4], 0  ;;  %s8734_s0 = inlined_call_operand.hbm [shape: f32[2,16,16,32], index: 0, kind: input, shape index: {}]   ;;  %s8735_s1 = inlined_call_operand.vmem [shape: f32[32,8], index: 1, kind: input, shape index: {}]   ;;  %s8736_s2 = inlined_call_operand.vmem [shape: f32[1,8], index: 2, kind: input, shape index: {}]   ;;  %s8737_s3 = inlined_call_operand.vmem [shape: f32[1,8], index: 3, kind: input, shape index: {}]   ;;  %s8738_s4 = inlined_call_operand.vmem [shape: f32[9,8,8], index: 4, kind: input, shape index: {}]   ;;  %s8739_s5 = inlined_call_operand.vmem [shape: f32[1,8], index: 5, kind: input, shape index: {}]   ;;  %s8740_s6 = inlined_call_operand.vmem [shape: f32[1,8], index: 6, kind: input, shape index: {}]   ;;  %s8741_s7 = inlined_call_operand.vmem [shape: f32[8,32], index: 7, kind: input, shape index: {}]   ;;  %s8742_s8 = inlined_call_operand.vmem [shape: f32[1,32], index: 8, kind: input, shape index: {}]   ;;  %s8743_s9 = inlined_call_operand.vmem [shape: f32[1,32], index: 9, kind: input, shape index: {}]   ;;  %s8744_s10 = inlined_call_operand.hbm [shape: f32[2,16,16,32], index: 10, kind: output, shape index: {}]  }
   0x1   :  { %17 = vsyncpa [#allocation4 + $0x1], 0 }
   0x2   :  { %18 = vsyncpa [#allocation5], 0 }
   0x3   :  { %20 = vsyncpa [#allocation5 + $0x1], 0  ;;  %s6576_s13 = smov 0   ;;  %s6578_s14 = smov 0  }
   0x4   :  { %s6580_s15 = smov 0   ;;  %s6582_s16 = smov 0  }
   0x5 LB: > { %8780 = sst [smem:[#allocation9_spill]] %s6508_s15  ;;  %s6597_s17 = sadd.s32 4294967295, %s6512_s16   ;;  %s6512_s16 = sphi %s6582_s16, %s8906_s16   ;;  %s6508_s15 = sphi %s6580_s15, %s8908_s15   ;;  %s6504_s14 = sphi %s6578_s14, %s8910_s14   ;;  %s6500_s13 = sphi %s6576_s13, %s8909_s13  }
   0x6   : > { %s5039_s18 = sadd.s32 4294967294, %s6512_s16   ;;  %s6601_s19 = sadd.s32 1, %s6512_s16  }
   0x7   : > { %8781 = sst [smem:[#allocation10_spill]] %s6601_s19  ;;  %s33_s20 = sadd.s32 1, %s6508_s15 }
   0x8   : > { %s30_s21 = ssub.s32 %s6512_s16, %s6601_s19  ;;  %p40_p0 = scmp.ne.s32.totalorder %s6508_s15, %s6504_s14 }
   0x9   : > { %p31_p1 = scmp.eq.s32.totalorder %s30_s21, 0  ;;  %p41_p2 = scmp.eq.s32.totalorder %s6512_s16, 0 }
   0xa   : > { %p46_p3 = scmp.ne.s32.totalorder %s6504_s14, %s6500_s13  ;;  %p47_p4 = scmp.eq.s32.totalorder %s6597_s17, 0 }
   0xb   : > { %s6613_s22 = scalar_select %p31_p1, %s6508_s15, %s33_s20  }
   0xc   : > { %p6615_p5 = por %p41_p2, %p40_p0  ;;  %p6619_p6 = por %p47_p4, %p46_p3 }
   0xd   : > { %8782 = sst [smem:[#allocation11_spill]] %s6613_s22  ;;  %p259_p7 = scmp.eq.s32.totalorder %s6597_s17, 1 }
   0xe   : > { %s8784_s24 = scalar_select %p6619_p6, 1, 0 }
   0xf   : > { %p265_p8 = scmp.eq.s32.totalorder %s5039_s18, 1  ;;  %p6349_p10 = scmp.lt.s32.totalorder %s6512_s16, 2 }
  0x10   : > { %p6626_p11 = por %p259_p7, %p40_p0  ;;  %s312_s27 = sand.u32 1, %s6508_s15  }
  0x11   : > { %p6630_p12 = por %p265_p8, %p46_p3  ;;  %s5411_s28 = sshll.u32 %s6512_s16, 12 }
  0x12   : > { %s8785_s25 = scalar_select %p6626_p11, 1, 0 }
  0x13   : > { %s8786_s26 = scalar_select %p6630_p12, 1, 0 }
  0x14   : > { %s5042_s29 = sshll.u32 %s312_s27, 8  ;;  %s6639_s12 = scalar_lea.hbm %s8734_s0, %s5411_s28 }
  0x15   : > { %s316_s18 = scalar_lea.vmem [#allocation3], %s5042_s29  ;;  %p6643_p13 = pnand %p6349_p10, %p6615_p5 }
  0x16   : > { %s323_s20 = sshll.u32 %s316_s18, 4  ;;  %s6649_s22 = scalar_lea.sflag [#allocation4], %s312_s27  ;;  %s6647_s20 = int_to_ptr.vmem [resolvable:$true] %s323_s20 }
  0x17   : > { %s6420_s15 = scalar_lea.hbm %s6639_s12, 4096  ;;  %p6422_p1 = pneg %p6643_p13 }
  0x18   : > { %p6421_p0 = scmp.ne.s32.totalorder %s6639_s12, %s6420_s15  ;;  %s6425_s29 = scalar_lea.hbm %s8734_s0, 8192 }
  0x19   : > { %p6426_p4 = scmp.lt.s32.totalorder %s6639_s12, %s8734_s0  ;;  %p6427_p5 = scmp.lt.s32.totalorder %s6425_s29, %s6420_s15 }
  0x1a   : > { %p6423_p2 = pnand %p6422_p1, %p6421_p0 }
  0x1b   : > { %p6428_p7 = por %p6427_p5, %p6426_p4 }
  0x1c   : > { %p6424_p3 = pneg %p6423_p2 }
  0x1e   : > { %p6429_p8 = pnand %p6428_p7, %p6424_p3 }
  0x20   : > { %6432 = shalt.err (!%p6429_p8)
}
  0x21   : > { %s6433_s27 = scalar_lea.vmem %s6647_s20, 4096  ;;  %s6514_s18 = smov [#allocation3]  }
  0x22   : > { %p6434_p10 = scmp.ne.s32.totalorder %s6647_s20, %s6433_s27  ;;  %s6438_s19 = sshll.u32 %s6514_s18, 4  ;;  %s6439_s19 = int_to_ptr.vmem [resolvable:$false] %s6438_s19 }
  0x23   : > { %s6440_s28 = scalar_lea.vmem %s6439_s19, 8192  ;;  %p6441_p2 = scmp.lt.s32.totalorder %s6647_s20, %s6439_s19 }
  0x24   : > { %p6436_p9 = pnand %p6434_p10, %p6422_p1  ;;  %p6442_p12 = scmp.lt.s32.totalorder %s6440_s28, %s6433_s27 }
  0x26   : > { %p6437_p0 = pneg %p6436_p9  ;;  %p6443_p11 = por %p6442_p12, %p6441_p2 }
  0x28   : > { %p6444_p6 = pnand %p6443_p11, %p6437_p0 }
  0x2a   : > { %6447 = shalt.err (!%p6444_p6)
}
  0x2b   : > { %s6515_s15 = smov 128   ;;  %s6516_s30 = smov 8  }
  0x2c   : > { %6344 = dma.hbm_to_vmem [thread:$0]  (!%p6643_p13), %s6639_s12, 4096, %s6647_s20, %s6649_s22, %s6515_s15, %s6515_s15, %s6516_s30  }
  0x2d   : > { %p5045_p9 = scmp.ge.s32.totalorder %s6512_s16, 1  ;;  %p331_p1 = scmp.lt.s32.totalorder %s6512_s16, 3 }
  0x2f   : > { %p332_p3 = pnand %p5045_p9, %p331_p1 }
  0x31   : > { %335 = sbr.rel (%p332_p3) target bundleno = 1013 (0x3f5), region = 60 }
  0x36   : > { %s6673_s19 = sand.u32 1, %s6504_s14   ;;  %p8788_p6 = scmp.ne.s32.totalorder %s8784_s24, 0 }
  0x37   : > { %s5046_s29 = sshll.u32 %s6673_s19, 8  ;;  %s338_s23 = scalar_lea.sflag [#allocation4], %s6673_s19 }
  0x38   : > { %s6679_s11 = scalar_lea.vmem [#allocation3], %s5046_s29 }
  0x39   : > { %6491 = dma.done.wait (%p8788_p6), %s338_s23, 4096  }
  0x3a   : > { %6493 = vsyncadd (%p8788_p6), %s338_s23, 4294963200  ;;  %vm414_vm0 = vcmask 261120   ;;  %v413_v0 = vld [vmem:[%s8735_s1 + $0x18] sm:$0xff]  ;;  %v412_v1 = vld [vmem:[%s8735_s1 + $0x10] sm:$0xff]  ;;  %vm846_vm1 = vcmask 64512   ;;  %vm849_vm2 = vcmask 58368  }
  0x3b   : > { %5779 = vmatprep.subr.mxu0 %v413_v0  ;;  %v378_v2 = vld [vmem:[%s6679_s11] sm:$0xff]  ;;  %v411_v3 = vld [vmem:[%s8735_s1 + $0x8] sm:$0xff]  ;;  %v410_v4 = vld [vmem:[%s8735_s1] sm:$0xff]  ;;  %v6517_v37 = vmov 0.0   ;;  %s8531_s28 = scalar_lea.vmem [#allocation6], %s5046_s29  ;;  %s5412_s29 = sshll.u32 %s6597_s17, 12 }
  0x3c   : > { %5780 = vmatpush3.msra.mxu0 %v413_v0  ;;  %5787 = vmatprep.mubr.msk.f32.mxu0 %vm414_vm0, %v378_v2  ;;  %v379_v5 = vld [vmem:[%s6679_s11 + $0x8] sm:$0xff]  ;;  %v380_v6 = vld [vmem:[%s6679_s11 + $0x10] sm:$0xff]  ;;  %v381_v7 = vld [vmem:[%s6679_s11 + $0x18] sm:$0xff]  ;;  %852 = vst.msk [vmem:[#allocation2 + $0x20] sm:$0xff] %vm846_vm1, %v6517_v37  ;;  %s4966_s15 = sshll.u32 %s8531_s28, 4  ;;  %s8685_s22 = scalar_lea.hbm %s8744_s10, %s5412_s29  ;;  %s8687_s15 = int_to_ptr.vmem [resolvable:$true] %s4966_s15 }
  0x3d   : > { %5781 = vmatprep.subr.mxu0 %v412_v1  ;;  %v382_v8 = vld [vmem:[%s6679_s11 + $0x20] sm:$0xff]  ;;  %v936_v9 = vld [vmem:[%s8738_s4 + $0x8] sm:$0xff]  ;;  %v383_v10 = vld [vmem:[%s6679_s11 + $0x28] sm:$0xff]  ;;  %847 = vst.msk [vmem:[#allocation2] sm:$0xff] %vm846_vm1, %v6517_v37  ;;  %s4953_s17 = scalar_lea.sflag [#allocation5], %s6673_s19  ;;  %s6448_s12 = scalar_lea.vmem %s8687_s15, 4096 }
  0x3e   : > { %5782 = vmatpush3.msra.mxu0 %v412_v1  ;;  %v384_v11 = vld [vmem:[%s6679_s11 + $0x30] sm:$0xff]  ;;  %6335 = vmatprep.subr.mxu1 %v936_v9  ;;  %v385_v12 = vld [vmem:[%s6679_s11 + $0x38] sm:$0xff]  ;;  %v386_v13 = vld [vmem:[%s6679_s11 + $0x40] sm:$0xff]  ;;  %848 = vst.msk [vmem:[#allocation2 + $0x8] sm:$0xff] %vm846_vm1, %v6517_v37  ;;  %p6449_p11 = scmp.ne.s32.totalorder %s8687_s15, %s6448_s12  ;;  %p8903_p12 = scmp.ne.s32.totalorder %s8785_s25, 0 }
  0x3f   : > { %5783 = vmatprep.subr.mxu0 %v411_v3  ;;  %6336 = vmatpush3.msra.mxu1 %v936_v9  ;;  %v387_v14 = vld [vmem:[%s6679_s11 + $0x48] sm:$0xff]  ;;  %v388_v15 = vld [vmem:[%s6679_s11 + $0x50] sm:$0xff]  ;;  %v389_v16 = vld [vmem:[%s6679_s11 + $0x58] sm:$0xff]  ;;  %851 = vst.msk [vmem:[#allocation2 + $0x18] sm:$0xff] %vm846_vm1, %v6517_v37 }
  0x40   : > { %5784 = vmatpush3.msra.mxu0 %v411_v3  ;;  %v390_v17 = vld [vmem:[%s6679_s11 + $0x60] sm:$0xff]  ;;  %v391_v18 = vld [vmem:[%s6679_s11 + $0x68] sm:$0xff]  ;;  %v392_v19 = vld [vmem:[%s6679_s11 + $0x70] sm:$0xff]  ;;  %854 = vst.msk [vmem:[#allocation2 + $0x30] sm:$0xff] %vm846_vm1, %v6517_v37  ;;  %p6450_p13 = pnand %p6449_p11, %p8903_p12 }
  0x41   : > { %5785 = vmatprep.subr.mxu0 %v410_v4  ;;  %v393_v20 = vld [vmem:[%s6679_s11 + $0x78] sm:$0xff]  ;;  %v394_v21 = vld [vmem:[%s6679_s11 + $0x80] sm:$0xff]  ;;  %v395_v22 = vld [vmem:[%s6679_s11 + $0x88] sm:$0xff]  ;;  %855 = vst.msk [vmem:[#allocation2 + $0x38] sm:$0xff] %vm846_vm1, %v6517_v37 }
  0x42   : > { %5786 = vmatpush3.msra.mxu0 %v410_v4  ;;  %v396_v23 = vld [vmem:[%s6679_s11 + $0x90] sm:$0xff]  ;;  %v397_v24 = vld [vmem:[%s6679_s11 + $0x98] sm:$0xff]  ;;  %v398_v25 = vld [vmem:[%s6679_s11 + $0xa0] sm:$0xff]  ;;  %857 = vst.msk [vmem:[#allocation2 + $0x48] sm:$0xff] %vm846_vm1, %v6517_v37  ;;  %p6451_p4 = pneg %p6450_p13 }
  0x43   : > { %5788 = vmatmul.mubr.msk.f32.vlgmr.msra.gmra.mxu0 %vm414_vm0, %v379_v5  ;;  %5835 = vmatprep.subr.mxu0 %v936_v9  ;;  %v399_v26 = vld [vmem:[%s6679_s11 + $0xa8] sm:$0xff]  ;;  %v400_v27 = vld [vmem:[%s6679_s11 + $0xb0] sm:$0xff]  ;;  %v401_v28 = vld [vmem:[%s6679_s11 + $0xb8] sm:$0xff]  ;;  %858 = vst.msk [vmem:[#allocation2 + $0x50] sm:$0xff] %vm846_vm1, %v6517_v37 }
  0x44   : > { %5790 = vmatprep.mubr.msk.f32.mxu0 %vm414_vm0, %v380_v6  ;;  %5836 = vmatpush3.msra.mxu0 %v936_v9  ;;  %v402_v29 = vld [vmem:[%s6679_s11 + $0xc0] sm:$0xff]  ;;  %v403_v30 = vld [vmem:[%s6679_s11 + $0xc8] sm:$0xff]  ;;  %v404_v31 = vld [vmem:[%s6679_s11 + $0xd0] sm:$0xff]  ;;  %860 = vst.msk [vmem:[#allocation2 + $0x60] sm:$0xff] %vm846_vm1, %v6517_v37 }
  0x45   : > { %v405_v32 = vld [vmem:[%s6679_s11 + $0xd8] sm:$0xff]  ;;  %v406_v33 = vld [vmem:[%s6679_s11 + $0xe0] sm:$0xff]  ;;  %v407_v34 = vld [vmem:[%s6679_s11 + $0xe8] sm:$0xff]  ;;  %861 = vst.msk [vmem:[#allocation2 + $0x68] sm:$0xff] %vm846_vm1, %v6517_v37 }
  0x46   : > { %v408_v35 = vld [vmem:[%s6679_s11 + $0xf0] sm:$0xff]  ;;  %v409_v36 = vld [vmem:[%s6679_s11 + $0xf8] sm:$0xff]  ;;  %863 = vst.msk [vmem:[#allocation2 + $0x78] sm:$0xff] %vm846_vm1, %v6517_v37  ;;  %864 = vst.msk [vmem:[#allocation2 + $0x80] sm:$0xff] %vm846_vm1, %v6517_v37 }
  0x47   : > { %5791 = vmatmul.mubr.msk.f32.gmra.mxu0 %vm414_vm0, %v381_v7  ;;  %866 = vst.msk [vmem:[#allocation2 + $0x90] sm:$0xff] %vm846_vm1, %v6517_v37  ;;  %867 = vst.msk [vmem:[#allocation2 + $0x98] sm:$0xff] %vm846_vm1, %v6517_v37  ;;  %v976_v38 = vld [vmem:[#allocation2 + $0x1] sm:$0xff]  ;;  %v937_v40 = vld [vmem:[%s8738_s4 + $0x10] sm:$0xff] }
  0x48   : > { %5793 = vmatprep.mubr.msk.f32.mxu0 %vm414_vm0, %v382_v8  ;;  %869 = vst.msk [vmem:[#allocation2 + $0xa8] sm:$0xff] %vm846_vm1, %v6517_v37  ;;  %870 = vst.msk [vmem:[#allocation2 + $0xb0] sm:$0xff] %vm846_vm1, %v6517_v37  ;;  %5935 = vmatprep.subr.mxu0 %v937_v40  ;;  %v6826_v41 = vld [vmem:[%s8738_s4] sm:$0xff] }
  0x49   : > { %872 = vst.msk [vmem:[#allocation2 + $0xc0] sm:$0xff] %vm846_vm1, %v6517_v37  ;;  %873 = vst.msk [vmem:[#allocation2 + $0xc8] sm:$0xff] %vm846_vm1, %v6517_v37  ;;  %5885 = vmatprep.subr.mxu1 %v6826_v41  ;;  %v6832_v42 = vld [vmem:[%s8738_s4 + $0x20] sm:$0xff] }
  0x4a   : > { %875 = vst.msk [vmem:[#allocation2 + $0xd8] sm:$0xff] %vm846_vm1, %v6517_v37  ;;  %876 = vst.msk [vmem:[#allocation2 + $0xe0] sm:$0xff] %vm846_vm1, %v6517_v37  ;;  %v6838_v43 = vld [vmem:[%s8736_s2] ss:$0 sm:$0xff] }
  0x4b   : > { %5794 = vmatmul.mubr.msk.f32.gmra.mxu0 %vm414_vm0, %v383_v10  ;;  %878 = vst.msk [vmem:[#allocation2 + $0xf0] sm:$0xff] %vm846_vm1, %v6517_v37  ;;  %879 = vst.msk [vmem:[#allocation2 + $0xf8] sm:$0xff] %vm846_vm1, %v6517_v37  ;;  %v6843_v45 = vld [vmem:[%s8737_s3] ss:$0 sm:$0xff] }
  0x4c   : > { %5796 = vmatprep.mubr.msk.f32.mxu0 %vm414_vm0, %v384_v11  ;;  %881 = vst.msk [vmem:[#allocation2 + $0x108] sm:$0xff] %vm846_vm1, %v6517_v37  ;;  %882 = vst.msk [vmem:[#allocation2 + $0x110] sm:$0xff] %vm846_vm1, %v6517_v37 }
  0x4d   : > { %884 = vst.msk [vmem:[#allocation2 + $0x120] sm:$0xff] %vm846_vm1, %v6517_v37  ;;  %885 = vst.msk [vmem:[#allocation2 + $0x128] sm:$0xff] %vm846_vm1, %v6517_v37 }
  0x4e   : > { %887 = vst.msk [vmem:[#allocation2 + $0x138] sm:$0xff] %vm846_vm1, %v6517_v37  ;;  %888 = vst.msk [vmem:[#allocation2 + $0x140] sm:$0xff] %vm846_vm1, %v6517_v37 }
  0x4f   : > { %5797 = vmatmul.mubr.msk.f32.gmra.mxu0 %vm414_vm0, %v385_v12  ;;  %890 = vst.msk [vmem:[#allocation2 + $0x150] sm:$0xff] %vm846_vm1, %v6517_v37  ;;  %891 = vst.msk [vmem:[#allocation2 + $0x158] sm:$0xff] %vm846_vm1, %v6517_v37 }
  0x50   : > { %5799 = vmatprep.mubr.msk.f32.mxu0 %vm414_vm0, %v386_v13  ;;  %893 = vst.msk [vmem:[#allocation2 + $0x168] sm:$0xff] %vm846_vm1, %v6517_v37  ;;  %894 = vst.msk [vmem:[#allocation2 + $0x170] sm:$0xff] %vm846_vm1, %v6517_v37 }
  0x51   : > { %896 = vst.msk [vmem:[#allocation2 + $0x180] sm:$0xff] %vm846_vm1, %v6517_v37  ;;  %897 = vst.msk [vmem:[#allocation2 + $0x188] sm:$0xff] %vm846_vm1, %v6517_v37 }
  0x52   : > { %899 = vst.msk [vmem:[#allocation2 + $0x198] sm:$0xff] %vm846_vm1, %v6517_v37  ;;  %900 = vst.msk [vmem:[#allocation2 + $0x1a0] sm:$0xff] %vm846_vm1, %v6517_v37 }
  0x53   : > { %5800 = vmatmul.mubr.msk.f32.gmra.mxu0 %vm414_vm0, %v387_v14  ;;  %853 = vst.msk [vmem:[#allocation2 + $0x28] sm:$0x3] %vm849_vm2, %v6517_v37  ;;  %850 = vst.msk [vmem:[#allocation2 + $0x10] sm:$0x3] %vm849_vm2, %v6517_v37 }
  0x54   : > { %5802 = vmatprep.mubr.msk.f32.mxu0 %vm414_vm0, %v388_v15  ;;  %856 = vst.msk [vmem:[#allocation2 + $0x40] sm:$0x3] %vm849_vm2, %v6517_v37  ;;  %859 = vst.msk [vmem:[#allocation2 + $0x58] sm:$0x3] %vm849_vm2, %v6517_v37 }
  0x55   : > { %862 = vst.msk [vmem:[#allocation2 + $0x70] sm:$0x3] %vm849_vm2, %v6517_v37  ;;  %865 = vst.msk [vmem:[#allocation2 + $0x88] sm:$0x3] %vm849_vm2, %v6517_v37 }
  0x56   : > { %868 = vst.msk [vmem:[#allocation2 + $0xa0] sm:$0x3] %vm849_vm2, %v6517_v37  ;;  %871 = vst.msk [vmem:[#allocation2 + $0xb8] sm:$0x3] %vm849_vm2, %v6517_v37 }
  0x57   : > { %5803 = vmatmul.mubr.msk.f32.gmra.mxu0 %vm414_vm0, %v389_v16  ;;  %874 = vst.msk [vmem:[#allocation2 + $0xd0] sm:$0x3] %vm849_vm2, %v6517_v37  ;;  %877 = vst.msk [vmem:[#allocation2 + $0xe8] sm:$0x3] %vm849_vm2, %v6517_v37 }
  0x58   : > { %5805 = vmatprep.mubr.msk.f32.mxu0 %vm414_vm0, %v390_v17  ;;  %880 = vst.msk [vmem:[#allocation2 + $0x100] sm:$0x3] %vm849_vm2, %v6517_v37  ;;  %883 = vst.msk [vmem:[#allocation2 + $0x118] sm:$0x3] %vm849_vm2, %v6517_v37 }
  0x59   : > { %886 = vst.msk [vmem:[#allocation2 + $0x130] sm:$0x3] %vm849_vm2, %v6517_v37  ;;  %889 = vst.msk [vmem:[#allocation2 + $0x148] sm:$0x3] %vm849_vm2, %v6517_v37 }
  0x5a   : > { %892 = vst.msk [vmem:[#allocation2 + $0x160] sm:$0x3] %vm849_vm2, %v6517_v37  ;;  %895 = vst.msk [vmem:[#allocation2 + $0x178] sm:$0x3] %vm849_vm2, %v6517_v37  ;;  %v977_v39 = vld [vmem:[#allocation2 + $0x9] sm:$0xff] }
  0x5b   : > { %5806 = vmatmul.mubr.msk.f32.gmra.mxu0 %vm414_vm0, %v391_v18  ;;  %898 = vst.msk [vmem:[#allocation2 + $0x190] sm:$0x3] %vm849_vm2, %v6517_v37  ;;  %901 = vst.msk [vmem:[#allocation2 + $0x1a8] sm:$0x3] %vm849_vm2, %v6517_v37 }
  0x5c   : > { %5808 = vmatprep.mubr.msk.f32.mxu0 %vm414_vm0, %v392_v19 }
  0x5f   : > { %5809 = vmatmul.mubr.msk.f32.gmra.mxu0 %vm414_vm0, %v393_v20 }
  0x60   : > { %5811 = vmatprep.mubr.msk.f32.mxu0 %vm414_vm0, %v394_v21 }
  0x63   : > { %5812 = vmatmul.mubr.msk.f32.gmra.mxu0 %vm414_vm0, %v395_v22 }
  0x64   : > { %5814 = vmatprep.mubr.msk.f32.mxu0 %vm414_vm0, %v396_v23 }
  0x67   : > { %5815 = vmatmul.mubr.msk.f32.gmra.mxu0 %vm414_vm0, %v397_v24 }
  0x68   : > { %5817 = vmatprep.mubr.msk.f32.mxu0 %vm414_vm0, %v398_v25 }
  0x6b   : > { %5818 = vmatmul.mubr.msk.f32.gmra.mxu0 %vm414_vm0, %v399_v26 }
  0x6c   : > { %5820 = vmatprep.mubr.msk.f32.mxu0 %vm414_vm0, %v400_v27 }
  0x6f   : > { %5821 = vmatmul.mubr.msk.f32.gmra.mxu0 %vm414_vm0, %v401_v28 }
  0x70   : > { %5823 = vmatprep.mubr.msk.f32.mxu0 %vm414_vm0, %v402_v29 }
  0x73   : > { %5824 = vmatmul.mubr.msk.f32.gmra.mxu0 %vm414_vm0, %v403_v30 }
  0x74   : > { %5826 = vmatprep.mubr.msk.f32.mxu0 %vm414_vm0, %v404_v31 }
  0x77   : > { %5827 = vmatmul.mubr.msk.f32.gmra.mxu0 %vm414_vm0, %v405_v32 }
  0x78   : > { %5829 = vmatprep.mubr.msk.f32.mxu0 %vm414_vm0, %v406_v33 }
  0x7b   : > { %5830 = vmatmul.mubr.msk.f32.gmra.mxu0 %vm414_vm0, %v407_v34 }
  0x7c   : > { %5832 = vmatprep.mubr.msk.f32.mxu0 %vm414_vm0, %v408_v35 }
  0x7f   : > { %5833 = vmatmul.mubr.msk.f32.gmra.mxu0 %vm414_vm0, %v409_v36 }
  0x80   : > { %5837 = vmatprep.mubr.msk.f32.mxu0 %vm846_vm1, %v976_v38 }
  0x83   : > { %5838 = vmatmul.mubr.msk.f32.vlgmr.msra.gmra.mxu0 %vm846_vm1, %v977_v39 }
  0x84   : > { %5936 = vmatpush3.msra.mxu0 %v937_v40 }
  0x85   : > { %6035 = vmatprep.subr.mxu0 %v6832_v42 }
 0x103   : > { %v5789_v44 = vpop.f32.mrf.mxu0 }
 0x104   : > { %v744_v46 = vmul.f32 %v5789_v44, %v6838_v43 }
 0x105   : > { %v577_v47 = vpop.f32.mrf.mxu0 }
 0x106   : > { %v783_v48 = vadd.f32 %v6843_v45, %v744_v46  ;;  %v743_v49 = vmul.f32 %v6838_v43, %v577_v47 }
 0x107   : > { %v5792_v50 = vpop.f32.mrf.mxu0 }
 0x108   : > { %v815_v51 = vmax.f32 %v783_v48, 0.0  ;;  %v782_v52 = vadd.f32 %v6843_v45, %v743_v49  ;;  %v746_v53 = vmul.f32 %v5792_v50, %v6838_v43 }
 0x109   : > { %v587_v54 = vpop.f32.mrf.mxu0 }
 0x10a   : > { %904 = vst.msk [vmem:[#allocation2 + $0x21] sm:$0xff] %vm846_vm1, %v815_v51  ;;  %v814_v55 = vmax.f32 %v782_v52, 0.0  ;;  %v785_v56 = vadd.f32 %v6843_v45, %v746_v53  ;;  %v745_v57 = vmul.f32 %v6838_v43, %v587_v54 }
 0x10b   : > { %v5795_v58 = vpop.f32.mrf.mxu0 }
 0x10c   : > { %903 = vst.msk [vmem:[#allocation2 + $0x19] sm:$0xff] %vm846_vm1, %v814_v55  ;;  %v817_v59 = vmax.f32 %v785_v56, 0.0  ;;  %v784_v60 = vadd.f32 %v6843_v45, %v745_v57  ;;  %v748_v61 = vmul.f32 %v5795_v58, %v6838_v43 }
 0x10d   : > { %v597_v62 = vpop.f32.mrf.mxu0 }
 0x10e   : > { %906 = vst.msk [vmem:[#allocation2 + $0x39] sm:$0xff] %vm846_vm1, %v817_v59  ;;  %v816_v63 = vmax.f32 %v784_v60, 0.0  ;;  %v787_v0 = vadd.f32 %v6843_v45, %v748_v61  ;;  %v747_v1 = vmul.f32 %v6838_v43, %v597_v62 }
 0x10f   : > { %v5798_v2 = vpop.f32.mrf.mxu0 }
 0x110   : > { %905 = vst.msk [vmem:[#allocation2 + $0x31] sm:$0xff] %vm846_vm1, %v816_v63  ;;  %v819_v3 = vmax.f32 %v787_v0, 0.0  ;;  %v786_v4 = vadd.f32 %v6843_v45, %v747_v1  ;;  %v750_v5 = vmul.f32 %v5798_v2, %v6838_v43  ;;  %v1650_v2 = vld [vmem:[#allocation2 + $0x2] sm:$0xff] }
 0x111   : > { %v607_v6 = vpop.f32.mrf.mxu0  ;;  %v6872_v15 = vld [vmem:[#allocation2 + $0x21] sm:$0xff] }
 0x112   : > { %908 = vst.msk [vmem:[#allocation2 + $0x51] sm:$0xff] %vm846_vm1, %v819_v3  ;;  %v818_v7 = vmax.f32 %v786_v4, 0.0  ;;  %v789_v8 = vadd.f32 %v6843_v45, %v750_v5  ;;  %v749_v9 = vmul.f32 %v6838_v43, %v607_v6 }
 0x113   : > { %v5801_v10 = vpop.f32.mrf.mxu0  ;;  %v6865_v11 = vld [vmem:[#allocation2 + $0x19] sm:$0xff] }
 0x114   : > { %907 = vst.msk [vmem:[#allocation2 + $0x49] sm:$0xff] %vm846_vm1, %v818_v7  ;;  %v821_v12 = vmax.f32 %v789_v8, 0.0  ;;  %v788_v13 = vadd.f32 %v6843_v45, %v749_v9  ;;  %v752_v14 = vmul.f32 %v5801_v10, %v6838_v43  ;;  %5840 = vmatprep.mubr.msk.f32.mxu0 %vm846_vm1, %v6865_v11 }
 0x115   : > { %v617_v16 = vpop.f32.mrf.mxu0  ;;  %5841 = vmatmul.mubr.msk.f32.gmra.mxu0 %vm846_vm1, %v6872_v15  ;;  %v6886_v25 = vld [vmem:[#allocation2 + $0x39] sm:$0xff] }
 0x116   : > { %910 = vst.msk [vmem:[#allocation2 + $0x69] sm:$0xff] %vm846_vm1, %v821_v12  ;;  %v820_v17 = vmax.f32 %v788_v13, 0.0  ;;  %v791_v18 = vadd.f32 %v6843_v45, %v752_v14  ;;  %v751_v19 = vmul.f32 %v6838_v43, %v617_v16  ;;  %v1651_v12 = vld [vmem:[#allocation2 + $0xa] sm:$0xff] }
 0x117   : > { %v5804_v20 = vpop.f32.mrf.mxu0  ;;  %v6879_v21 = vld [vmem:[#allocation2 + $0x31] sm:$0xff] }
 0x118   : > { %909 = vst.msk [vmem:[#allocation2 + $0x61] sm:$0xff] %vm846_vm1, %v820_v17  ;;  %v823_v22 = vmax.f32 %v791_v18, 0.0  ;;  %v790_v23 = vadd.f32 %v6843_v45, %v751_v19  ;;  %v754_v24 = vmul.f32 %v5804_v20, %v6838_v43  ;;  %5843 = vmatprep.mubr.msk.f32.mxu0 %vm846_vm1, %v6879_v21  ;;  %v6962_v20 = vld [vmem:[%s8738_s4 + $0x18] sm:$0xff] }
 0x119   : > { %v627_v26 = vpop.f32.mrf.mxu0  ;;  %5844 = vmatmul.mubr.msk.f32.gmra.mxu0 %vm846_vm1, %v6886_v25  ;;  %v6900_v35 = vld [vmem:[#allocation2 + $0x51] sm:$0xff] }
 0x11a   : > { %912 = vst.msk [vmem:[#allocation2 + $0x81] sm:$0xff] %vm846_vm1, %v823_v22  ;;  %v822_v27 = vmax.f32 %v790_v23, 0.0  ;;  %v793_v28 = vadd.f32 %v6843_v45, %v754_v24  ;;  %v753_v29 = vmul.f32 %v6838_v43, %v627_v26  ;;  %v6967_v23 = vld [vmem:[#allocation2 + $0x1a] sm:$0xff]  ;;  %v6972_v24 = vld [vmem:[%s8738_s4 + $0x30] sm:$0xff] }
 0x11b   : > { %v5807_v30 = vpop.f32.mrf.mxu0  ;;  %v6893_v31 = vld [vmem:[#allocation2 + $0x49] sm:$0xff] }
 0x11c   : > { %911 = vst.msk [vmem:[#allocation2 + $0x79] sm:$0xff] %vm846_vm1, %v822_v27  ;;  %v825_v32 = vmax.f32 %v793_v28, 0.0  ;;  %v792_v33 = vadd.f32 %v6843_v45, %v753_v29  ;;  %v756_v34 = vmul.f32 %v5807_v30, %v6838_v43  ;;  %5846 = vmatprep.mubr.msk.f32.mxu0 %vm846_vm1, %v6893_v31 }
 0x11d   : > { %v637_v36 = vpop.f32.mrf.mxu0  ;;  %5847 = vmatmul.mubr.msk.f32.gmra.mxu0 %vm846_vm1, %v6900_v35  ;;  %v6914_v49 = vld [vmem:[#allocation2 + $0x69] sm:$0xff] }
 0x11e   : > { %914 = vst.msk [vmem:[#allocation2 + $0x99] sm:$0xff] %vm846_vm1, %v825_v32  ;;  %v824_v37 = vmax.f32 %v792_v33, 0.0  ;;  %v795_v38 = vadd.f32 %v6843_v45, %v756_v34  ;;  %v755_v39 = vmul.f32 %v6838_v43, %v637_v36  ;;  %v6991_v36 = vld [vmem:[#allocation2 + $0x22] sm:$0xff] }
 0x11f   : > { %v5810_v40 = vpop.f32.mrf.mxu0  ;;  %v6907_v44 = vld [vmem:[#allocation2 + $0x61] sm:$0xff] }
 0x120   : > { %913 = vst.msk [vmem:[#allocation2 + $0x91] sm:$0xff] %vm846_vm1, %v824_v37  ;;  %v827_v46 = vmax.f32 %v795_v38, 0.0  ;;  %v794_v47 = vadd.f32 %v6843_v45, %v755_v39  ;;  %v758_v48 = vmul.f32 %v5810_v40, %v6838_v43  ;;  %5849 = vmatprep.mubr.msk.f32.mxu0 %vm846_vm1, %v6907_v44 }
 0x121   : > { %v647_v50 = vpop.f32.mrf.mxu0  ;;  %5850 = vmatmul.mubr.msk.f32.gmra.mxu0 %vm846_vm1, %v6914_v49  ;;  %v6928_v59 = vld [vmem:[#allocation2 + $0x81] sm:$0xff] }
 0x122   : > { %916 = vst.msk [vmem:[#allocation2 + $0xb1] sm:$0xff] %vm846_vm1, %v827_v46  ;;  %v826_v51 = vmax.f32 %v794_v47, 0.0  ;;  %v797_v52 = vadd.f32 %v6843_v45, %v758_v48  ;;  %v757_v53 = vmul.f32 %v6838_v43, %v647_v50 }
 0x123   : > { %v5813_v54 = vpop.f32.mrf.mxu0  ;;  %v6921_v55 = vld [vmem:[#allocation2 + $0x79] sm:$0xff] }
 0x124   : > { %915 = vst.msk [vmem:[#allocation2 + $0xa9] sm:$0xff] %vm846_vm1, %v826_v51  ;;  %v829_v56 = vmax.f32 %v797_v52, 0.0  ;;  %v796_v57 = vadd.f32 %v6843_v45, %v757_v53  ;;  %v760_v58 = vmul.f32 %v5813_v54, %v6838_v43  ;;  %5852 = vmatprep.mubr.msk.f32.mxu0 %vm846_vm1, %v6921_v55  ;;  %v7014_v53 = vld [vmem:[#allocation2 + $0x3a] sm:$0xff] }
 0x125   : > { %v657_v60 = vpop.f32.mrf.mxu0  ;;  %5853 = vmatmul.mubr.msk.f32.gmra.mxu0 %vm846_vm1, %v6928_v59  ;;  %v6942_v6 = vld [vmem:[#allocation2 + $0x99] sm:$0xff] }
 0x126   : > { %918 = vst.msk [vmem:[#allocation2 + $0xc9] sm:$0xff] %vm846_vm1, %v829_v56  ;;  %v828_v61 = vmax.f32 %v796_v57, 0.0  ;;  %v799_v62 = vadd.f32 %v6843_v45, %v760_v58  ;;  %v759_v63 = vmul.f32 %v6838_v43, %v657_v60  ;;  %v7020_v56 = vld [vmem:[#allocation2 + $0x4a] sm:$0xff] }
 0x127   : > { %v5816_v0 = vpop.f32.mrf.mxu0  ;;  %v6935_v1 = vld [vmem:[#allocation2 + $0x91] sm:$0xff] }
 0x128   : > { %917 = vst.msk [vmem:[#allocation2 + $0xc1] sm:$0xff] %vm846_vm1, %v828_v61  ;;  %v831_v3 = vmax.f32 %v799_v62, 0.0  ;;  %v798_v4 = vadd.f32 %v6843_v45, %v759_v63  ;;  %v762_v5 = vmul.f32 %v5816_v0, %v6838_v43  ;;  %5855 = vmatprep.mubr.msk.f32.mxu0 %vm846_vm1, %v6935_v1 }
 0x129   : > { %v667_v7 = vpop.f32.mrf.mxu0  ;;  %5856 = vmatmul.mubr.msk.f32.gmra.mxu0 %vm846_vm1, %v6942_v6  ;;  %v6957_v19 = vld [vmem:[#allocation2 + $0xb1] sm:$0xff] }
 0x12a   : > { %920 = vst.msk [vmem:[#allocation2 + $0xe1] sm:$0xff] %vm846_vm1, %v831_v3  ;;  %v830_v8 = vmax.f32 %v798_v4, 0.0  ;;  %v801_v9 = vadd.f32 %v6843_v45, %v762_v5  ;;  %v761_v10 = vmul.f32 %v6838_v43, %v667_v7  ;;  %5937 = vmatprep.mubr.msk.f32.mxu0 %vm846_vm1, %v1650_v2  ;;  %v7036_v4 = vld [vmem:[#allocation2 + $0x52] sm:$0xff]  ;;  %v7042_v7 = vld [vmem:[#allocation2 + $0x62] sm:$0xff] }
 0x12b   : > { %v5819_v13 = vpop.f32.mrf.mxu0  ;;  %v6950_v14 = vld [vmem:[#allocation2 + $0xa9] sm:$0xff] }
 0x12c   : > { %919 = vst.msk [vmem:[#allocation2 + $0xd9] sm:$0xff] %vm846_vm1, %v830_v8  ;;  %v833_v16 = vmax.f32 %v801_v9, 0.0  ;;  %v800_v17 = vadd.f32 %v6843_v45, %v761_v10  ;;  %v764_v18 = vmul.f32 %v5819_v13, %v6838_v43  ;;  %5858 = vmatprep.mubr.msk.f32.mxu1 %vm846_vm1, %v6950_v14 }
 0x12d   : > { %v677_v22 = vpop.f32.mrf.mxu0  ;;  %5859 = vmatmul.mubr.msk.f32.vlgmr.msra.gmra.mxu1 %vm846_vm1, %v6957_v19  ;;  %5938 = vmatmul.mubr.msk.f32.vlgmr.msra.gmra.mxu0 %vm846_vm1, %v1651_v12 }
 0x12e   : > { %922 = vst.msk [vmem:[#allocation2 + $0xf9] sm:$0xff] %vm846_vm1, %v833_v16  ;;  %v832_v26 = vmax.f32 %v800_v17, 0.0  ;;  %v803_v27 = vadd.f32 %v6843_v45, %v764_v18  ;;  %v763_v28 = vmul.f32 %v6838_v43, %v677_v22  ;;  %5886 = vmatpush3.msra.mxu1 %v6826_v41  ;;  %5940 = vmatprep.mubr.msk.f32.mxu0 %vm846_vm1, %v6967_v23  ;;  %v6989_v41 = vld [vmem:[#allocation2 + $0xc9] sm:$0xff] }
 0x12f   : > { %v5822_v29 = vpop.f32.mrf.mxu0  ;;  %v6980_v30 = vld [vmem:[#allocation2 + $0xc1] sm:$0xff]  ;;  %5985 = vmatprep.subr.mxu1 %v6962_v20  ;;  %6036 = vmatpush3.msra.mxu0 %v6832_v42  ;;  %v6998_v42 = vld [vmem:[#allocation2 + $0x32] sm:$0xff] }
 0x130   : > { %921 = vst.msk [vmem:[#allocation2 + $0xf1] sm:$0xff] %vm846_vm1, %v832_v26  ;;  %v835_v32 = vmax.f32 %v803_v27, 0.0  ;;  %v802_v33 = vadd.f32 %v6843_v45, %v763_v28  ;;  %v766_v34 = vmul.f32 %v5822_v29, %v6838_v43  ;;  %5861 = vmatprep.mubr.msk.f32.mxu1 %vm846_vm1, %v6980_v30  ;;  %6135 = vmatprep.subr.mxu0 %v6972_v24  ;;  %v7058_v26 = vld [vmem:[#allocation2 + $0x6a] sm:$0xff]  ;;  %v7064_v28 = vld [vmem:[#allocation2 + $0x7a] sm:$0xff] }
 0x131   : > { %v687_v37 = vpop.f32.mrf.mxu0  ;;  %5862 = vmatmul.mubr.msk.f32.gmra.mxu1 %vm846_vm1, %v6989_v41  ;;  %5941 = vmatmul.mubr.msk.f32.gmra.mxu0 %vm846_vm1, %v6991_v36  ;;  %v7012_v52 = vld [vmem:[#allocation2 + $0xe1] sm:$0xff] }
 0x132   : > { %924 = vst.msk [vmem:[#allocation2 + $0x111] sm:$0xff] %vm846_vm1, %v835_v32  ;;  %v834_v38 = vmax.f32 %v802_v33, 0.0  ;;  %v805_v39 = vadd.f32 %v6843_v45, %v766_v34  ;;  %v765_v40 = vmul.f32 %v6838_v43, %v687_v37  ;;  %5943 = vmatprep.mubr.msk.f32.mxu0 %vm846_vm1, %v6998_v42 }
 0x133   : > { %v5825_v46 = vpop.f32.mrf.mxu0  ;;  %v7005_v47 = vld [vmem:[#allocation2 + $0xd9] sm:$0xff] }
 0x134   : > { %923 = vst.msk [vmem:[#allocation2 + $0x109] sm:$0xff] %vm846_vm1, %v834_v38  ;;  %v837_v48 = vmax.f32 %v805_v39, 0.0  ;;  %v804_v50 = vadd.f32 %v6843_v45, %v765_v40  ;;  %v768_v51 = vmul.f32 %v5825_v46, %v6838_v43  ;;  %5864 = vmatprep.mubr.msk.f32.mxu1 %vm846_vm1, %v7005_v47  ;;  %v7079_v46 = vld [vmem:[#allocation2 + $0x82] sm:$0xff] }
 0x135   : > { %v697_v54 = vpop.f32.mrf.mxu0  ;;  %5865 = vmatmul.mubr.msk.f32.gmra.mxu1 %vm846_vm1, %v7012_v52  ;;  %5944 = vmatmul.mubr.msk.f32.gmra.mxu0 %vm846_vm1, %v7014_v53  ;;  %v7034_v3 = vld [vmem:[#allocation2 + $0xf9] sm:$0xff] }
 0x136   : > { %926 = vst.msk [vmem:[#allocation2 + $0x129] sm:$0xff] %vm846_vm1, %v837_v48  ;;  %v836_v57 = vmax.f32 %v804_v50, 0.0  ;;  %v807_v58 = vadd.f32 %v6843_v45, %v768_v51  ;;  %v767_v60 = vmul.f32 %v6838_v43, %v697_v54  ;;  %5946 = vmatprep.mubr.msk.f32.mxu0 %vm846_vm1, %v7020_v56  ;;  %v7086_v50 = vld [vmem:[#allocation2 + $0x92] sm:$0xff] }
 0x137   : > { %v5828_v61 = vpop.f32.mrf.mxu0  ;;  %v7027_v62 = vld [vmem:[#allocation2 + $0xf1] sm:$0xff] }
 0x138   : > { %925 = vst.msk [vmem:[#allocation2 + $0x121] sm:$0xff] %vm846_vm1, %v836_v57  ;;  %v839_v63 = vmax.f32 %v807_v58, 0.0  ;;  %v806_v0 = vadd.f32 %v6843_v45, %v767_v60  ;;  %v770_v2 = vmul.f32 %v5828_v61, %v6838_v43  ;;  %5867 = vmatprep.mubr.msk.f32.mxu1 %vm846_vm1, %v7027_v62 }
 0x139   : > { %v707_v5 = vpop.f32.mrf.mxu0  ;;  %5868 = vmatmul.mubr.msk.f32.gmra.mxu1 %vm846_vm1, %v7034_v3  ;;  %5947 = vmatmul.mubr.msk.f32.gmra.mxu0 %vm846_vm1, %v7036_v4  ;;  %v7056_v22 = vld [vmem:[#allocation2 + $0x111] sm:$0xff] }
 0x13a   : > { %928 = vst.msk [vmem:[#allocation2 + $0x141] sm:$0xff] %vm846_vm1, %v839_v63  ;;  %v838_v8 = vmax.f32 %v806_v0, 0.0  ;;  %v809_v9 = vadd.f32 %v6843_v45, %v770_v2  ;;  %v769_v10 = vmul.f32 %v6838_v43, %v707_v5  ;;  %5949 = vmatprep.mubr.msk.f32.mxu0 %vm846_vm1, %v7042_v7  ;;  %v7100_v63 = vld [vmem:[#allocation2 + $0x9a] sm:$0xff] }
 0x13b   : > { %v5831_v12 = vpop.f32.mrf.mxu0  ;;  %v7049_v13 = vld [vmem:[#allocation2 + $0x109] sm:$0xff] }
 0x13c   : > { %927 = vst.msk [vmem:[#allocation2 + $0x139] sm:$0xff] %vm846_vm1, %v838_v8  ;;  %v841_v16 = vmax.f32 %v809_v9, 0.0  ;;  %v808_v17 = vadd.f32 %v6843_v45, %v769_v10  ;;  %v772_v18 = vmul.f32 %v5831_v12, %v6838_v43  ;;  %5870 = vmatprep.mubr.msk.f32.mxu1 %vm846_vm1, %v7049_v13  ;;  %v7118_v9 = vld [vmem:[#allocation2 + $0xb2] sm:$0xff]  ;;  %v7125_v10 = vld [vmem:[#allocation2 + $0xc2] sm:$0xff] }
 0x13d   : > { %v717_v27 = vpop.f32.mrf.mxu0  ;;  %5871 = vmatmul.mubr.msk.f32.gmra.mxu1 %vm846_vm1, %v7056_v22  ;;  %5950 = vmatmul.mubr.msk.f32.gmra.mxu0 %vm846_vm1, %v7058_v26  ;;  %v7077_v40 = vld [vmem:[#allocation2 + $0x129] sm:$0xff] }
 0x13e   : > { %930 = vst.msk [vmem:[#allocation2 + $0x159] sm:$0xff] %vm846_vm1, %v841_v16  ;;  %v840_v29 = vmax.f32 %v808_v17, 0.0  ;;  %v811_v32 = vadd.f32 %v6843_v45, %v772_v18  ;;  %v771_v33 = vmul.f32 %v6838_v43, %v717_v27  ;;  %5952 = vmatprep.mubr.msk.f32.mxu0 %vm846_vm1, %v7064_v28  ;;  %v944_v16 = vld [vmem:[#allocation2] sm:$0xff]  ;;  %v7135_v18 = vld [vmem:[#allocation2 + $0xca] sm:$0xff] }
 0x13f   : > { %v7071_v34 = vld [vmem:[#allocation2 + $0x121] sm:$0xff]  ;;  %v5834_v37 = vpop.f32.mrf.mxu0 }
 0x140   : > { %929 = vst.msk [vmem:[#allocation2 + $0x151] sm:$0xff] %vm846_vm1, %v840_v29  ;;  %v843_v38 = vmax.f32 %v811_v32, 0.0  ;;  %v810_v39 = vadd.f32 %v6843_v45, %v771_v33  ;;  %5873 = vmatprep.mubr.msk.f32.mxu1 %vm846_vm1, %v7071_v34  ;;  %v774_v48 = vmul.f32 %v5834_v37, %v6838_v43  ;;  %v7141_v27 = vld [vmem:[#allocation2 + $0xda] sm:$0xff]  ;;  %v945_v29 = vld [vmem:[#allocation2 + $0x8] sm:$0xff] }
 0x141   : > { %5874 = vmatmul.mubr.msk.f32.gmra.mxu1 %vm846_vm1, %v7077_v40  ;;  %5953 = vmatmul.mubr.msk.f32.gmra.mxu0 %vm846_vm1, %v7079_v46  ;;  %v727_v51 = vpop.f32.mrf.mxu0  ;;  %v7098_v61 = vld [vmem:[#allocation2 + $0x141] sm:$0xff]  ;;  %8789 = vst [vmem:[#allocation12_spill] sm:$0xff] %v7141_v27  ;;  %v7156_v37 = vld [vmem:[#allocation2 + $0x18] sm:$0xff] }
 0x142   : > { %932 = vst.msk [vmem:[#allocation2 + $0x171] sm:$0xff] %vm846_vm1, %v843_v38  ;;  %v842_v54 = vmax.f32 %v810_v39, 0.0  ;;  %5955 = vmatprep.mubr.msk.f32.mxu0 %vm846_vm1, %v7086_v50  ;;  %v813_v57 = vadd.f32 %v6843_v45, %v774_v48  ;;  %v773_v58 = vmul.f32 %v6838_v43, %v727_v51  ;;  %v7107_v43 = vld [vmem:[#allocation2 + $0xaa] sm:$0xff]  ;;  %v7146_v32 = vld [vmem:[#allocation2 + $0xe2] sm:$0xff]  ;;  %v7161_v38 = vld [vmem:[#allocation2 + $0xf2] sm:$0xff] }
 0x143   : > { %v7093_v60 = vld [vmem:[#allocation2 + $0x139] sm:$0xff]  ;;  %8790 = vst [vmem:[#allocation13_spill] sm:$0xff] %v7146_v32  ;;  %v7151_v33 = vld [vmem:[%s8738_s4 + $0x28] sm:$0xff]  ;;  %8791 = vst [vmem:[#allocation14_spill] sm:$0xff] %v7161_v38 }
 0x144   : > { %931 = vst.msk [vmem:[#allocation2 + $0x169] sm:$0xff] %vm846_vm1, %v842_v54  ;;  %5876 = vmatprep.mubr.msk.f32.mxu1 %vm846_vm1, %v7093_v60  ;;  %v845_v0 = vmax.f32 %v813_v57, 0.0  ;;  %v812_v2 = vadd.f32 %v6843_v45, %v773_v58  ;;  %v7166_v39 = vld [vmem:[#allocation2 + $0x20] sm:$0xff]  ;;  %v7176_v51 = vld [vmem:[#allocation2 + $0x10a] sm:$0xff]  ;;  %v7182_v54 = vld [vmem:[#allocation2 + $0x38] sm:$0xff] }
 0x145   : > { %5877 = vmatmul.mubr.msk.f32.gmra.mxu1 %vm846_vm1, %v7098_v61  ;;  %5956 = vmatmul.mubr.msk.f32.gmra.mxu0 %vm846_vm1, %v7100_v63  ;;  %v7116_v45 = vld [vmem:[#allocation2 + $0x159] sm:$0xff]  ;;  %8793 = vst [vmem:[#allocation16_spill] sm:$0xff] %v7176_v51  ;;  %v7190_v58 = vld [vmem:[#allocation2 + $0x48] sm:$0xff] }
 0x146   : > { %5958 = vmatprep.mubr.msk.f32.mxu0 %vm846_vm1, %v7107_v43  ;;  %934 = vst.msk [vmem:[#allocation2 + $0x189] sm:$0xff] %vm846_vm1, %v845_v0  ;;  %v844_v5 = vmax.f32 %v812_v2, 0.0  ;;  %v7168_v48 = vld [vmem:[#allocation2 + $0xfa] sm:$0xff]  ;;  %v7184_v57 = vld [vmem:[#allocation2 + $0x112] sm:$0xff]  ;;  %v7192_v0 = vld [vmem:[#allocation2 + $0x122] sm:$0xff] }
 0x147   : > { %v7112_v8 = vld [vmem:[#allocation2 + $0x151] sm:$0xff]  ;;  %8792 = vst [vmem:[#allocation15_spill] sm:$0xff] %v7168_v48  ;;  %8794 = vst [vmem:[#allocation17_spill] sm:$0xff] %v7184_v57 }
 0x148   : > { %5879 = vmatprep.mubr.msk.f32.mxu1 %vm846_vm1, %v7112_v8  ;;  %933 = vst.msk [vmem:[#allocation2 + $0x181] sm:$0xff] %vm846_vm1, %v844_v5  ;;  %8795 = vst [vmem:[#allocation18_spill] sm:$0xff] %v7192_v0  ;;  %v7198_v2 = vld [vmem:[#allocation2 + $0x50] sm:$0xff] }
 0x149   : > { %5880 = vmatmul.mubr.msk.f32.gmra.mxu1 %vm846_vm1, %v7116_v45  ;;  %5959 = vmatmul.mubr.msk.f32.gmra.mxu0 %vm846_vm1, %v7118_v9  ;;  %v7133_v17 = vld [vmem:[#allocation2 + $0x171] sm:$0xff] }
 0x14a   : > { %5961 = vmatprep.mubr.msk.f32.mxu0 %vm846_vm1, %v7125_v10  ;;  %v7200_v5 = vld [vmem:[#allocation2 + $0x12a] sm:$0xff] }
 0x14b   : > { %v7129_v12 = vld [vmem:[#allocation2 + $0x169] sm:$0xff]  ;;  %8796 = vst [vmem:[#allocation19_spill] sm:$0xff] %v7200_v5 }
 0x14c   : > { %5882 = vmatprep.mubr.msk.f32.mxu1 %vm846_vm1, %v7129_v12 }
 0x14d   : > { %5883 = vmatmul.mubr.msk.f32.gmra.mxu1 %vm846_vm1, %v7133_v17  ;;  %5962 = vmatmul.mubr.msk.f32.gmra.mxu0 %vm846_vm1, %v7135_v18 }
 0x14e   : > { %5964 = vmatprep.mubr.msk.f32.mxu0 %vm846_vm1, %v7141_v27  ;;  %5887 = vmatprep.mubr.msk.f32.mxu1 %vm846_vm1, %v944_v16  ;;  %v7206_v16 = vld [vmem:[#allocation2 + $0x60] sm:$0xff]  ;;  %v7260_v27 = vld [vmem:[#allocation2 + $0xb0] sm:$0xff] }
 0x151   : > { %5888 = vmatmul.mubr.msk.f32.vlgmr.msra.gmra.mxu1 %vm846_vm1, %v945_v29  ;;  %5965 = vmatmul.mubr.msk.f32.gmra.mxu0 %vm846_vm1, %v7146_v32  ;;  %v7208_v29 = vld [vmem:[#allocation2 + $0x13a] sm:$0xff]  ;;  %v7248_v32 = vld [vmem:[#allocation2 + $0x172] sm:$0xff] }
 0x152   : > { %5986 = vmatpush3.msra.mxu1 %v6962_v20  ;;  %5890 = vmatprep.mubr.msk.f32.mxu1 %vm846_vm1, %v7156_v37  ;;  %v7174_v20 = vld [vmem:[#allocation2 + $0x30] sm:$0xff]  ;;  %8797 = vst [vmem:[#allocation20_spill] sm:$0xff] %v7208_v29  ;;  %8802 = vst [vmem:[#allocation25_spill] sm:$0xff] %v7248_v32 }
 0x153   : > { %5967 = vmatprep.mubr.msk.f32.mxu0 %vm846_vm1, %v7161_v38  ;;  %6085 = vmatprep.subr.mxu1 %v7151_v33  ;;  %v7240_v38 = vld [vmem:[#allocation2 + $0x16a] sm:$0xff] }
 0x154   : > { %8801 = vst [vmem:[#allocation24_spill] sm:$0xff] %v7240_v38 }
 0x155   : > { %5891 = vmatmul.mubr.msk.f32.gmra.mxu1 %vm846_vm1, %v7166_v39  ;;  %5968 = vmatmul.mubr.msk.f32.gmra.mxu0 %vm846_vm1, %v7168_v48  ;;  %v7232_v48 = vld [vmem:[#allocation2 + $0x15a] sm:$0xff] }
 0x156   : > { %5893 = vmatprep.mubr.msk.f32.mxu1 %vm846_vm1, %v7174_v20  ;;  %5970 = vmatprep.mubr.msk.f32.mxu0 %vm846_vm1, %v7176_v51  ;;  %v7224_v51 = vld [vmem:[#allocation2 + $0x152] sm:$0xff]  ;;  %8800 = vst [vmem:[#allocation23_spill] sm:$0xff] %v7232_v48 }
 0x157   : > { %8799 = vst [vmem:[#allocation22_spill] sm:$0xff] %v7224_v51 }
 0x159   : > { %5894 = vmatmul.mubr.msk.f32.gmra.mxu1 %vm846_vm1, %v7182_v54  ;;  %5971 = vmatmul.mubr.msk.f32.gmra.mxu0 %vm846_vm1, %v7184_v57  ;;  %v7216_v57 = vld [vmem:[#allocation2 + $0x142] sm:$0xff] }
 0x15a   : > { %5896 = vmatprep.mubr.msk.f32.mxu1 %vm846_vm1, %v7190_v58  ;;  %5973 = vmatprep.mubr.msk.f32.mxu0 %vm846_vm1, %v7192_v0  ;;  %v7214_v0 = vld [vmem:[#allocation2 + $0x68] sm:$0xff]  ;;  %8798 = vst [vmem:[#allocation21_spill] sm:$0xff] %v7216_v57 }
 0x15d   : > { %5897 = vmatmul.mubr.msk.f32.gmra.mxu1 %vm846_vm1, %v7198_v2  ;;  %5974 = vmatmul.mubr.msk.f32.gmra.mxu0 %vm846_vm1, %v7200_v5  ;;  %v7222_v5 = vld [vmem:[#allocation2 + $0x78] sm:$0xff] }
 0x15e   : > { %5899 = vmatprep.mubr.msk.f32.mxu1 %vm846_vm1, %v7206_v16  ;;  %5976 = vmatprep.mubr.msk.f32.mxu0 %vm846_vm1, %v7208_v29  ;;  %v7230_v29 = vld [vmem:[#allocation2 + $0x80] sm:$0xff] }
 0x161   : > { %5900 = vmatmul.mubr.msk.f32.gmra.mxu1 %vm846_vm1, %v7214_v0  ;;  %5977 = vmatmul.mubr.msk.f32.gmra.mxu0 %vm846_vm1, %v7216_v57  ;;  %v7238_v57 = vld [vmem:[#allocation2 + $0x90] sm:$0xff] }
 0x162   : > { %5902 = vmatprep.mubr.msk.f32.mxu1 %vm846_vm1, %v7222_v5  ;;  %5979 = vmatprep.mubr.msk.f32.mxu0 %vm846_vm1, %v7224_v51  ;;  %v7246_v51 = vld [vmem:[#allocation2 + $0x98] sm:$0xff] }
 0x165   : > { %5903 = vmatmul.mubr.msk.f32.gmra.mxu1 %vm846_vm1, %v7230_v29  ;;  %5980 = vmatmul.mubr.msk.f32.gmra.mxu0 %vm846_vm1, %v7232_v48  ;;  %v7254_v48 = vld [vmem:[#allocation2 + $0xa8] sm:$0xff] }
 0x166   : > { %5905 = vmatprep.mubr.msk.f32.mxu1 %vm846_vm1, %v7238_v57  ;;  %5982 = vmatprep.mubr.msk.f32.mxu0 %vm846_vm1, %v7240_v38  ;;  %v7266_v38 = vld [vmem:[#allocation2 + $0xc0] sm:$0xff] }
 0x169   : > { %5906 = vmatmul.mubr.msk.f32.gmra.mxu1 %vm846_vm1, %v7246_v51  ;;  %5983 = vmatmul.mubr.msk.f32.gmra.mxu0 %vm846_vm1, %v7248_v32  ;;  %v7271_v32 = vld [vmem:[%s8738_s4 + $0x40] sm:$0xff] }
 0x16a   : > { %5908 = vmatprep.mubr.msk.f32.mxu1 %vm846_vm1, %v7254_v48  ;;  %6037 = vmatprep.mubr.msk.f32.mxu0 %vm846_vm1, %v6865_v11  ;;  %v7278_v11 = vld [vmem:[#allocation2 + $0xc8] sm:$0xff] }
 0x16d   : > { %5909 = vmatmul.mubr.msk.f32.gmra.mxu1 %vm846_vm1, %v7260_v27  ;;  %6038 = vmatmul.mubr.msk.f32.vlgmr.msra.gmra.mxu0 %vm846_vm1, %v6872_v15  ;;  %v7285_v15 = vld [vmem:[#allocation2 + $0xd8] sm:$0xff] }
 0x16e   : > { %5911 = vmatprep.mubr.msk.f32.mxu1 %vm846_vm1, %v7266_v38  ;;  %6040 = vmatprep.mubr.msk.f32.mxu0 %vm846_vm1, %v6879_v21  ;;  %v7291_v21 = vld [vmem:[#allocation2 + $0xe0] sm:$0xff] }
 0x16f   : > { %6136 = vmatpush3.msra.mxu0 %v6972_v24  ;;  %v7297_v24 = vld [vmem:[#allocation2 + $0xf0] sm:$0xff] }
 0x170   : > { %6235 = vmatprep.subr.mxu0 %v7271_v32 }
 0x171   : > { %5912 = vmatmul.mubr.msk.f32.gmra.mxu1 %vm846_vm1, %v7278_v11  ;;  %6041 = vmatmul.mubr.msk.f32.gmra.mxu0 %vm846_vm1, %v6886_v25  ;;  %v7303_v25 = vld [vmem:[#allocation2 + $0xf8] sm:$0xff] }
 0x172   : > { %5914 = vmatprep.mubr.msk.f32.mxu1 %vm846_vm1, %v7285_v15  ;;  %6043 = vmatprep.mubr.msk.f32.mxu0 %vm846_vm1, %v6893_v31  ;;  %v7309_v31 = vld [vmem:[#allocation2 + $0x108] sm:$0xff] }
 0x175   : > { %5915 = vmatmul.mubr.msk.f32.gmra.mxu1 %vm846_vm1, %v7291_v21  ;;  %6044 = vmatmul.mubr.msk.f32.gmra.mxu0 %vm846_vm1, %v6900_v35  ;;  %v7315_v35 = vld [vmem:[#allocation2 + $0x110] sm:$0xff] }
 0x176   : > { %5917 = vmatprep.mubr.msk.f32.mxu1 %vm846_vm1, %v7297_v24  ;;  %6046 = vmatprep.mubr.msk.f32.mxu0 %vm846_vm1, %v6907_v44  ;;  %v7321_v44 = vld [vmem:[#allocation2 + $0x120] sm:$0xff] }
 0x179   : > { %5918 = vmatmul.mubr.msk.f32.gmra.mxu1 %vm846_vm1, %v7303_v25  ;;  %6047 = vmatmul.mubr.msk.f32.gmra.mxu0 %vm846_vm1, %v6914_v49  ;;  %v7327_v49 = vld [vmem:[#allocation2 + $0x128] sm:$0xff] }
 0x17a   : > { %5920 = vmatprep.mubr.msk.f32.mxu1 %vm846_vm1, %v7309_v31  ;;  %6049 = vmatprep.mubr.msk.f32.mxu0 %vm846_vm1, %v6921_v55  ;;  %v7333_v55 = vld [vmem:[#allocation2 + $0x138] sm:$0xff] }
 0x17d   : > { %5921 = vmatmul.mubr.msk.f32.gmra.mxu1 %vm846_vm1, %v7315_v35  ;;  %6050 = vmatmul.mubr.msk.f32.gmra.mxu0 %vm846_vm1, %v6928_v59  ;;  %v7339_v59 = vld [vmem:[#allocation2 + $0x140] sm:$0xff] }
 0x17e   : > { %5923 = vmatprep.mubr.msk.f32.mxu1 %vm846_vm1, %v7321_v44  ;;  %6052 = vmatprep.mubr.msk.f32.mxu0 %vm846_vm1, %v6935_v1  ;;  %v7345_v1 = vld [vmem:[#allocation2 + $0x150] sm:$0xff] }
 0x181   : > { %5924 = vmatmul.mubr.msk.f32.gmra.mxu1 %vm846_vm1, %v7327_v49  ;;  %6053 = vmatmul.mubr.msk.f32.gmra.mxu0 %vm846_vm1, %v6942_v6  ;;  %v7351_v6 = vld [vmem:[#allocation2 + $0x158] sm:$0xff] }
 0x182   : > { %5926 = vmatprep.mubr.msk.f32.mxu1 %vm846_vm1, %v7333_v55  ;;  %6055 = vmatprep.mubr.msk.f32.mxu0 %vm846_vm1, %v6950_v14  ;;  %v7357_v14 = vld [vmem:[#allocation2 + $0x168] sm:$0xff] }
 0x185   : > { %5927 = vmatmul.mubr.msk.f32.gmra.mxu1 %vm846_vm1, %v7339_v59  ;;  %6056 = vmatmul.mubr.msk.f32.gmra.mxu0 %vm846_vm1, %v6957_v19  ;;  %v7363_v19 = vld [vmem:[#allocation2 + $0x170] sm:$0xff] }
 0x186   : > { %5929 = vmatprep.mubr.msk.f32.mxu1 %vm846_vm1, %v7345_v1  ;;  %6058 = vmatprep.mubr.msk.f32.mxu0 %vm846_vm1, %v6980_v30  ;;  %v7376_v30 = vld [vmem:[%s8738_s4 + $0x38] sm:$0xff] }
 0x189   : > { %5930 = vmatmul.mubr.msk.f32.gmra.mxu1 %vm846_vm1, %v7351_v6  ;;  %6059 = vmatmul.mubr.msk.f32.gmra.mxu0 %vm846_vm1, %v6989_v41  ;;  %v7420_v41 = vld [vmem:[#allocation2 + $0x181] sm:$0xff] }
 0x18a   : > { %5932 = vmatprep.mubr.msk.f32.mxu1 %vm846_vm1, %v7357_v14  ;;  %6061 = vmatprep.mubr.msk.f32.mxu0 %vm846_vm1, %v7005_v47  ;;  %8803 = vst [vmem:[#allocation26_spill] sm:$0xff] %v7420_v41  ;;  %v7430_v47 = vld [vmem:[#allocation2 + $0x189] sm:$0xff] }
 0x18b   : > { %8804 = vst [vmem:[#allocation27_spill] sm:$0xff] %v7430_v47 }
 0x18d   : > { %5933 = vmatmul.mubr.msk.f32.gmra.mxu1 %vm846_vm1, %v7363_v19  ;;  %6062 = vmatmul.mubr.msk.f32.gmra.mxu0 %vm846_vm1, %v7012_v52  ;;  %v2065_v52 = vld [vmem:[#allocation2 + $0x180] sm:$0xff] }
 0x18e   : > { %5987 = vmatprep.mubr.msk.f32.mxu1 %vm846_vm1, %v7156_v37  ;;  %6064 = vmatprep.mubr.msk.f32.mxu0 %vm846_vm1, %v7027_v62  ;;  %v2066_v62 = vld [vmem:[#allocation2 + $0x188] sm:$0xff] }
 0x191   : > { %5988 = vmatmul.mubr.msk.f32.vlgmr.msra.gmra.mxu1 %vm846_vm1, %v7166_v39  ;;  %6065 = vmatmul.mubr.msk.f32.gmra.mxu0 %vm846_vm1, %v7034_v3  ;;  %v7507_v3 = vpop.f32.mrf.mxu0  ;;  %v8805_v39 = vld [vmem:[#allocation12_spill] sm:$0xff] }
 0x192   : > { %6086 = vmatpush3.msra.mxu1 %v7151_v33  ;;  %5990 = vmatprep.mubr.msk.f32.mxu1 %vm846_vm1, %v7174_v20 }
 0x193   : > { %6067 = vmatprep.mubr.msk.f32.mxu0 %vm846_vm1, %v7049_v13  ;;  %6185 = vmatprep.subr.mxu1 %v7376_v30  ;;  %v7517_v13 = vpop.f32.mrf.mxu0 }
 0x195   : > { %5991 = vmatmul.mubr.msk.f32.gmra.mxu1 %vm846_vm1, %v7182_v54  ;;  %6068 = vmatmul.mubr.msk.f32.gmra.mxu0 %vm846_vm1, %v7056_v22 }
 0x196   : > { %5993 = vmatprep.mubr.msk.f32.mxu1 %vm846_vm1, %v7190_v58  ;;  %6070 = vmatprep.mubr.msk.f32.mxu0 %vm846_vm1, %v7071_v34 }
 0x199   : > { %5994 = vmatmul.mubr.msk.f32.gmra.mxu1 %vm846_vm1, %v7198_v2  ;;  %6071 = vmatmul.mubr.msk.f32.gmra.mxu0 %vm846_vm1, %v7077_v40 }
 0x19a   : > { %5996 = vmatprep.mubr.msk.f32.mxu1 %vm846_vm1, %v7206_v16  ;;  %6073 = vmatprep.mubr.msk.f32.mxu0 %vm846_vm1, %v7093_v60 }
 0x19d   : > { %5997 = vmatmul.mubr.msk.f32.gmra.mxu1 %vm846_vm1, %v7214_v0  ;;  %6074 = vmatmul.mubr.msk.f32.gmra.mxu0 %vm846_vm1, %v7098_v61 }
 0x19e   : > { %5999 = vmatprep.mubr.msk.f32.mxu1 %vm846_vm1, %v7222_v5  ;;  %6076 = vmatprep.mubr.msk.f32.mxu0 %vm846_vm1, %v7112_v8 }
 0x1a1   : > { %6000 = vmatmul.mubr.msk.f32.gmra.mxu1 %vm846_vm1, %v7230_v29  ;;  %6077 = vmatmul.mubr.msk.f32.gmra.mxu0 %vm846_vm1, %v7116_v45  ;;  %v3221_v45 = vld [vmem:[#allocation2 + $0x198] sm:$0xff] }
 0x1a2   : > { %6002 = vmatprep.mubr.msk.f32.mxu1 %vm846_vm1, %v7238_v57  ;;  %6079 = vmatprep.mubr.msk.f32.mxu0 %vm846_vm1, %v7129_v12 }
 0x1a5   : > { %6003 = vmatmul.mubr.msk.f32.gmra.mxu1 %vm846_vm1, %v7246_v51  ;;  %6080 = vmatmul.mubr.msk.f32.gmra.mxu0 %vm846_vm1, %v7133_v17  ;;  %v3222_v17 = vld [vmem:[#allocation2 + $0x1a0] sm:$0xff] }
 0x1a6   : > { %6005 = vmatprep.mubr.msk.f32.mxu1 %vm846_vm1, %v7254_v48  ;;  %6082 = vmatprep.mubr.msk.f32.mxu0 %vm846_vm1, %v7420_v41 }
 0x1a9   : > { %6006 = vmatmul.mubr.msk.f32.gmra.mxu1 %vm846_vm1, %v7260_v27  ;;  %6083 = vmatmul.mubr.msk.f32.gmra.mxu0 %vm846_vm1, %v7430_v47  ;;  %v3577_v47 = vld [vmem:[#allocation2 + $0x39] sm:$0xff] }
 0x1aa   : > { %6008 = vmatprep.mubr.msk.f32.mxu1 %vm846_vm1, %v7266_v38  ;;  %6137 = vmatprep.mubr.msk.f32.mxu0 %vm846_vm1, %v7174_v20 }
 0x1ad   : > { %6009 = vmatmul.mubr.msk.f32.gmra.mxu1 %vm846_vm1, %v7278_v11  ;;  %6138 = vmatmul.mubr.msk.f32.vlgmr.msra.gmra.mxu0 %vm846_vm1, %v7182_v54  ;;  %v8806_v54 = vld [vmem:[#allocation13_spill] sm:$0xff] }
 0x1ae   : > { %6011 = vmatprep.mubr.msk.f32.mxu1 %vm846_vm1, %v7285_v15  ;;  %6140 = vmatprep.mubr.msk.f32.mxu0 %vm846_vm1, %v7190_v58 }
 0x1af   : > { %6236 = vmatpush3.msra.mxu0 %v7271_v32 }
 0x1b1   : > { %6012 = vmatmul.mubr.msk.f32.gmra.mxu1 %vm846_vm1, %v7291_v21  ;;  %6141 = vmatmul.mubr.msk.f32.gmra.mxu0 %vm846_vm1, %v7198_v2  ;;  %v8808_v2 = vld [vmem:[#allocation15_spill] sm:$0xff] }
 0x1b2   : > { %6014 = vmatprep.mubr.msk.f32.mxu1 %vm846_vm1, %v7297_v24  ;;  %6143 = vmatprep.mubr.msk.f32.mxu0 %vm846_vm1, %v7206_v16 }
 0x1b5   : > { %6015 = vmatmul.mubr.msk.f32.gmra.mxu1 %vm846_vm1, %v7303_v25  ;;  %6144 = vmatmul.mubr.msk.f32.gmra.mxu0 %vm846_vm1, %v7214_v0 }
 0x1b6   : > { %6017 = vmatprep.mubr.msk.f32.mxu1 %vm846_vm1, %v7309_v31  ;;  %6146 = vmatprep.mubr.msk.f32.mxu0 %vm846_vm1, %v7222_v5 }
 0x1b9   : > { %6018 = vmatmul.mubr.msk.f32.gmra.mxu1 %vm846_vm1, %v7315_v35  ;;  %6147 = vmatmul.mubr.msk.f32.gmra.mxu0 %vm846_vm1, %v7230_v29 }
 0x1ba   : > { %6020 = vmatprep.mubr.msk.f32.mxu1 %vm846_vm1, %v7321_v44  ;;  %6149 = vmatprep.mubr.msk.f32.mxu0 %vm846_vm1, %v7238_v57 }
 0x1bd   : > { %6021 = vmatmul.mubr.msk.f32.gmra.mxu1 %vm846_vm1, %v7327_v49  ;;  %6150 = vmatmul.mubr.msk.f32.gmra.mxu0 %vm846_vm1, %v7246_v51 }
 0x1be   : > { %6023 = vmatprep.mubr.msk.f32.mxu1 %vm846_vm1, %v7333_v55  ;;  %6152 = vmatprep.mubr.msk.f32.mxu0 %vm846_vm1, %v7254_v48 }
 0x1c1   : > { %6024 = vmatmul.mubr.msk.f32.gmra.mxu1 %vm846_vm1, %v7339_v59  ;;  %6153 = vmatmul.mubr.msk.f32.gmra.mxu0 %vm846_vm1, %v7260_v27 }
 0x1c2   : > { %6026 = vmatprep.mubr.msk.f32.mxu1 %vm846_vm1, %v7345_v1  ;;  %6155 = vmatprep.mubr.msk.f32.mxu0 %vm846_vm1, %v7266_v38 }
 0x1c5   : > { %6027 = vmatmul.mubr.msk.f32.gmra.mxu1 %vm846_vm1, %v7351_v6  ;;  %6156 = vmatmul.mubr.msk.f32.gmra.mxu0 %vm846_vm1, %v7278_v11  ;;  %v8810_v11 = vld [vmem:[#allocation17_spill] sm:$0xff] }
 0x1c6   : > { %6029 = vmatprep.mubr.msk.f32.mxu1 %vm846_vm1, %v7357_v14  ;;  %6158 = vmatprep.mubr.msk.f32.mxu0 %vm846_vm1, %v7285_v15 }
 0x1c9   : > { %6030 = vmatmul.mubr.msk.f32.gmra.mxu1 %vm846_vm1, %v7363_v19  ;;  %6159 = vmatmul.mubr.msk.f32.gmra.mxu0 %vm846_vm1, %v7291_v21 }
 0x1ca   : > { %6032 = vmatprep.mubr.msk.f32.mxu1 %vm846_vm1, %v2065_v52  ;;  %6161 = vmatprep.mubr.msk.f32.mxu0 %vm846_vm1, %v7297_v24 }
 0x1cd   : > { %6033 = vmatmul.mubr.msk.f32.gmra.mxu1 %vm846_vm1, %v2066_v62  ;;  %6162 = vmatmul.mubr.msk.f32.gmra.mxu0 %vm846_vm1, %v7303_v25  ;;  %v8812_v25 = vld [vmem:[#allocation19_spill] sm:$0xff] }
 0x1ce   : > { %6087 = vmatprep.mubr.msk.f32.mxu1 %vm846_vm1, %v6967_v23  ;;  %6164 = vmatprep.mubr.msk.f32.mxu0 %vm846_vm1, %v7309_v31 }
 0x1d1   : > { %6088 = vmatmul.mubr.msk.f32.vlgmr.msra.gmra.mxu1 %vm846_vm1, %v6991_v36  ;;  %6165 = vmatmul.mubr.msk.f32.gmra.mxu0 %vm846_vm1, %v7315_v35 }
 0x1d2   : > { %6186 = vmatpush3.msra.mxu1 %v7376_v30  ;;  %6090 = vmatprep.mubr.msk.f32.mxu1 %vm846_vm1, %v6998_v42 }
 0x1d3   : > { %6167 = vmatprep.mubr.msk.f32.mxu0 %vm846_vm1, %v7321_v44 }
 0x1d5   : > { %v7524_v23 = vpop.f32.mrf.mxu0  ;;  %6091 = vmatmul.mubr.msk.f32.gmra.mxu1 %vm846_vm1, %v7014_v53  ;;  %6168 = vmatmul.mubr.msk.f32.gmra.mxu0 %vm846_vm1, %v7327_v49  ;;  %v8815_v49 = vld [vmem:[#allocation21_spill] sm:$0xff] }
 0x1d6   : > { %6093 = vmatprep.mubr.msk.f32.mxu1 %vm846_vm1, %v7020_v56  ;;  %6170 = vmatprep.mubr.msk.f32.mxu0 %vm846_vm1, %v7333_v55 }
 0x1d7   : > { %v7534_v36 = vpop.f32.mrf.mxu0 }
 0x1d9   : > { %v7536_v22 = vpop.f32.mrf.mxu0  ;;  %6094 = vmatmul.mubr.msk.f32.gmra.mxu1 %vm846_vm1, %v7036_v4  ;;  %6171 = vmatmul.mubr.msk.f32.gmra.mxu0 %vm846_vm1, %v7339_v59 }
 0x1da   : > { %6096 = vmatprep.mubr.msk.f32.mxu1 %vm846_vm1, %v7042_v7  ;;  %6173 = vmatprep.mubr.msk.f32.mxu0 %vm846_vm1, %v7345_v1 }
 0x1db   : > { %v7546_v34 = vpop.f32.mrf.mxu0 }
 0x1dd   : > { %v7548_v40 = vpop.f32.mrf.mxu0  ;;  %6097 = vmatmul.mubr.msk.f32.gmra.mxu1 %vm846_vm1, %v7058_v26  ;;  %6174 = vmatmul.mubr.msk.f32.gmra.mxu0 %vm846_vm1, %v7351_v6  ;;  %v8819_v6 = vld [vmem:[#allocation23_spill] sm:$0xff] }
 0x1de   : > { %6099 = vmatprep.mubr.msk.f32.mxu1 %vm846_vm1, %v7064_v28  ;;  %6176 = vmatprep.mubr.msk.f32.mxu0 %vm846_vm1, %v7357_v14 }
 0x1df   : > { %v7558_v60 = vpop.f32.mrf.mxu0 }
 0x1e1   : > { %v7560_v61 = vpop.f32.mrf.mxu0  ;;  %6100 = vmatmul.mubr.msk.f32.gmra.mxu1 %vm846_vm1, %v7079_v46  ;;  %6177 = vmatmul.mubr.msk.f32.gmra.mxu0 %vm846_vm1, %v7363_v19 }
 0x1e2   : > { %6102 = vmatprep.mubr.msk.f32.mxu1 %vm846_vm1, %v7086_v50  ;;  %6179 = vmatprep.mubr.msk.f32.mxu0 %vm846_vm1, %v2065_v52  ;;  %v8823_v52 = vld [vmem:[#allocation25_spill] sm:$0xff] }
 0x1e3   : > { %v7569_v8 = vpop.f32.mrf.mxu0 }
 0x1e5   : > { %v7571_v12 = vpop.f32.mrf.mxu0  ;;  %6103 = vmatmul.mubr.msk.f32.gmra.mxu1 %vm846_vm1, %v7100_v63  ;;  %6180 = vmatmul.mubr.msk.f32.gmra.mxu0 %vm846_vm1, %v2066_v62 }
 0x1e6   : > { %6105 = vmatprep.mubr.msk.f32.mxu1 %vm846_vm1, %v7107_v43  ;;  %6182 = vmatprep.mubr.msk.f32.mxu0 %vm846_vm1, %v3221_v45 }
 0x1e7   : > { %v7579_v27 = vpop.f32.mrf.mxu0 }
 0x1e9   : > { %v7581_v32 = vpop.f32.mrf.mxu0  ;;  %6106 = vmatmul.mubr.msk.f32.gmra.mxu1 %vm846_vm1, %v7118_v9  ;;  %6183 = vmatmul.mubr.msk.f32.gmra.mxu0 %vm846_vm1, %v3222_v17  ;;  %v7722_v17 = vld [vmem:[#allocation2 + $0x18a] sm:$0xff] }
 0x1ea   : > { %6108 = vmatprep.mubr.msk.f32.mxu1 %vm846_vm1, %v7125_v10  ;;  %6237 = vmatprep.mubr.msk.f32.mxu0 %vm846_vm1, %v6998_v42 }
 0x1eb   : > { %v7590_v33 = vpop.f32.mrf.mxu0 }
 0x1ed   : > { %v7592_v37 = vpop.f32.mrf.mxu1  ;;  %v7594_v38 = vpop.f32.mrf.mxu0  ;;  %6109 = vmatmul.mubr.msk.f32.gmra.mxu1 %vm846_vm1, %v7135_v18  ;;  %6238 = vmatmul.mubr.msk.f32.vlgmr.msra.gmra.mxu0 %vm846_vm1, %v7014_v53  ;;  %v8807_v53 = vld [vmem:[#allocation14_spill] sm:$0xff] }
 0x1ee   : > { %6111 = vmatprep.mubr.msk.f32.mxu1 %vm846_vm1, %v8805_v39  ;;  %6240 = vmatprep.mubr.msk.f32.mxu0 %vm846_vm1, %v7020_v56 }
 0x1ef   : > { %v7604_v48 = vpop.f32.mrf.mxu1  ;;  %v7606_v42 = vpop.f32.mrf.mxu0 }
 0x1f1   : > { %v7608_v20 = vpop.f32.mrf.mxu1  ;;  %v7610_v51 = vpop.f32.mrf.mxu0  ;;  %6112 = vmatmul.mubr.msk.f32.gmra.mxu1 %vm846_vm1, %v8806_v54  ;;  %6241 = vmatmul.mubr.msk.f32.gmra.mxu0 %vm846_vm1, %v7036_v4  ;;  %v8809_v4 = vld [vmem:[#allocation16_spill] sm:$0xff] }
 0x1f2   : > { %6114 = vmatprep.mubr.msk.f32.mxu1 %vm846_vm1, %v8807_v53  ;;  %6243 = vmatprep.mubr.msk.f32.mxu0 %vm846_vm1, %v7042_v7 }
 0x1f3   : > { %v7620_v56 = vpop.f32.mrf.mxu1  ;;  %v7622_v57 = vpop.f32.mrf.mxu0 }
 0x1f5   : > { %v7624_v58 = vpop.f32.mrf.mxu1  ;;  %v7626_v0 = vpop.f32.mrf.mxu0  ;;  %6115 = vmatmul.mubr.msk.f32.gmra.mxu1 %vm846_vm1, %v8808_v2  ;;  %6244 = vmatmul.mubr.msk.f32.gmra.mxu0 %vm846_vm1, %v7058_v26  ;;  %v8811_v26 = vld [vmem:[#allocation18_spill] sm:$0xff] }
 0x1f6   : > { %6117 = vmatprep.mubr.msk.f32.mxu1 %vm846_vm1, %v8809_v4  ;;  %6246 = vmatprep.mubr.msk.f32.mxu0 %vm846_vm1, %v7064_v28 }
 0x1f7   : > { %v7636_v7 = vpop.f32.mrf.mxu1  ;;  %v7638_v5 = vpop.f32.mrf.mxu0 }
 0x1f9   : > { %v7640_v16 = vpop.f32.mrf.mxu1  ;;  %v7642_v29 = vpop.f32.mrf.mxu0  ;;  %6118 = vmatmul.mubr.msk.f32.gmra.mxu1 %vm846_vm1, %v8810_v11  ;;  %6247 = vmatmul.mubr.msk.f32.gmra.mxu0 %vm846_vm1, %v7079_v46  ;;  %v8813_v46 = vld [vmem:[#allocation20_spill] sm:$0xff] }
 0x1fa   : > { %6120 = vmatprep.mubr.msk.f32.mxu1 %vm846_vm1, %v8811_v26  ;;  %6249 = vmatprep.mubr.msk.f32.mxu0 %vm846_vm1, %v7086_v50 }
 0x1fb   : > { %v7652_v28 = vpop.f32.mrf.mxu1  ;;  %v7654_v15 = vpop.f32.mrf.mxu0 }
 0x1fd   : > { %v7656_v21 = vpop.f32.mrf.mxu1  ;;  %v7658_v24 = vpop.f32.mrf.mxu0  ;;  %6121 = vmatmul.mubr.msk.f32.gmra.mxu1 %vm846_vm1, %v8812_v25  ;;  %6250 = vmatmul.mubr.msk.f32.gmra.mxu0 %vm846_vm1, %v7100_v63  ;;  %v8816_v63 = vld [vmem:[#allocation22_spill] sm:$0xff] }
 0x1fe   : > { %6123 = vmatprep.mubr.msk.f32.mxu1 %vm846_vm1, %v8813_v46  ;;  %6252 = vmatprep.mubr.msk.f32.mxu0 %vm846_vm1, %v7107_v43 }
 0x1ff   : > { %v7668_v50 = vpop.f32.mrf.mxu1  ;;  %v7670_v31 = vpop.f32.mrf.mxu0 }
 0x201   : > { %v7672_v35 = vpop.f32.mrf.mxu1  ;;  %v7674_v44 = vpop.f32.mrf.mxu0  ;;  %6124 = vmatmul.mubr.msk.f32.gmra.mxu1 %vm846_vm1, %v8815_v49  ;;  %6253 = vmatmul.mubr.msk.f32.gmra.mxu0 %vm846_vm1, %v7118_v9  ;;  %v8820_v9 = vld [vmem:[#allocation24_spill] sm:$0xff] }
 0x202   : > { %8814 = vst [vmem:[#allocation12_spill] sm:$0xff] %v7672_v35  ;;  %6126 = vmatprep.mubr.msk.f32.mxu1 %vm846_vm1, %v8816_v63  ;;  %6255 = vmatprep.mubr.msk.f32.mxu0 %vm846_vm1, %v7125_v10 }
 0x203   : > { %v7684_v43 = vpop.f32.mrf.mxu1  ;;  %v7686_v55 = vpop.f32.mrf.mxu0 }
 0x204   : > { %8817 = vst [vmem:[#allocation13_spill] sm:$0xff] %v7684_v43 }
 0x205   : > { %v7688_v59 = vpop.f32.mrf.mxu1  ;;  %v7690_v1 = vpop.f32.mrf.mxu0  ;;  %6127 = vmatmul.mubr.msk.f32.gmra.mxu1 %vm846_vm1, %v8819_v6  ;;  %6256 = vmatmul.mubr.msk.f32.gmra.mxu0 %vm846_vm1, %v7135_v18  ;;  %v7712_v18 = vld [vmem:[#allocation2 + $0x182] sm:$0xff] }
 0x206   : > { %8818 = vst [vmem:[#allocation14_spill] sm:$0xff] %v7688_v59  ;;  %6129 = vmatprep.mubr.msk.f32.mxu1 %vm846_vm1, %v8820_v9  ;;  %6258 = vmatprep.mubr.msk.f32.mxu0 %vm846_vm1, %v8805_v39  ;;  %v3579_v59 = vld [vmem:[#allocation2 + $0x51] sm:$0xff] }
 0x207   : > { %v7700_v10 = vpop.f32.mrf.mxu1  ;;  %v7702_v14 = vpop.f32.mrf.mxu0 }
 0x208   : > { %8821 = vst [vmem:[#allocation15_spill] sm:$0xff] %v7700_v10 }
 0x209   : > { %v7704_v19 = vpop.f32.mrf.mxu1  ;;  %v7706_v30 = vpop.f32.mrf.mxu0  ;;  %6130 = vmatmul.mubr.msk.f32.gmra.mxu1 %vm846_vm1, %v8823_v52  ;;  %6259 = vmatmul.mubr.msk.f32.gmra.mxu0 %vm846_vm1, %v8806_v54  ;;  %v3576_v54 = vld [vmem:[#allocation2 + $0x31] sm:$0xff] }
 0x20a   : > { %8822 = vst [vmem:[#allocation16_spill] sm:$0xff] %v7704_v19  ;;  %6132 = vmatprep.mubr.msk.f32.mxu1 %vm846_vm1, %v7712_v18  ;;  %6261 = vmatprep.mubr.msk.f32.mxu0 %vm846_vm1, %v8807_v53 }
 0x20b   : > { %v7718_v62 = vpop.f32.mrf.mxu1  ;;  %v7720_v45 = vpop.f32.mrf.mxu0 }
 0x20c   : > { %8824 = vst [vmem:[#allocation17_spill] sm:$0xff] %v7718_v62 }
 0x20d   : > { %v7724_v39 = vpop.f32.mrf.mxu1  ;;  %v7726_v19 = vpop.f32.mrf.mxu0  ;;  %6133 = vmatmul.mubr.msk.f32.gmra.mxu1 %vm846_vm1, %v7722_v17  ;;  %6262 = vmatmul.mubr.msk.f32.gmra.mxu0 %vm846_vm1, %v8808_v2  ;;  %v3578_v2 = vld [vmem:[#allocation2 + $0x49] sm:$0xff] }
 0x20e   : > { %8825 = vst [vmem:[#allocation18_spill] sm:$0xff] %v7724_v39  ;;  %6187 = vmatprep.mubr.msk.f32.mxu1 %vm846_vm1, %v3576_v54  ;;  %6264 = vmatprep.mubr.msk.f32.mxu0 %vm846_vm1, %v8809_v4 }
 0x20f   : > { %v7735_v53 = vpop.f32.mrf.mxu1  ;;  %v7737_v62 = vpop.f32.mrf.mxu0 }
 0x210   : > { %8826 = vst [vmem:[#allocation19_spill] sm:$0xff] %v7735_v53 }
 0x211   : > { %v5889_v39 = vpop.f32.mrf.mxu1  ;;  %v7739_v10 = vpop.f32.mrf.mxu0  ;;  %6188 = vmatmul.mubr.msk.f32.vlgmr.msra.gmra.mxu1 %vm846_vm1, %v3577_v47  ;;  %6265 = vmatmul.mubr.msk.f32.gmra.mxu0 %vm846_vm1, %v8810_v11 }
 0x212   : > { %v1497_v41 = vadd.f32 %v5889_v39, %v7507_v3  ;;  %6190 = vmatprep.mubr.msk.f32.mxu1 %vm846_vm1, %v3578_v2  ;;  %6267 = vmatprep.mubr.msk.f32.mxu0 %vm846_vm1, %v8811_v26  ;;  %v3580_v3 = vld [vmem:[#allocation2 + $0x61] sm:$0xff] }
 0x213   : > { %v1491_v4 = vpop.f32.mrf.mxu1  ;;  %v7748_v54 = vpop.f32.mrf.mxu0 }
 0x214   : > { %v1492_v53 = vadd.f32 %v1491_v4, %v7517_v13  ;;  %v7752_v43 = vadd.f32 %v7594_v38, %v1497_v41  ;;  %v3583_v4 = vld [vmem:[#allocation2 + $0x81] sm:$0xff] }
 0x215   : > { %v5892_v47 = vpop.f32.mrf.mxu1  ;;  %v7754_v35 = vpop.f32.mrf.mxu0  ;;  %6191 = vmatmul.mubr.msk.f32.gmra.mxu1 %vm846_vm1, %v3579_v59  ;;  %6268 = vmatmul.mubr.msk.f32.gmra.mxu0 %vm846_vm1, %v8812_v25  ;;  %v3581_v59 = vld [vmem:[#allocation2 + $0x69] sm:$0xff] }
 0x216   : > { %v1507_v11 = vadd.f32 %v5892_v47, %v7524_v23  ;;  %6193 = vmatprep.mubr.msk.f32.mxu1 %vm846_vm1, %v3580_v3  ;;  %6270 = vmatprep.mubr.msk.f32.mxu0 %vm846_vm1, %v8813_v46  ;;  %v7764_v13 = vadd.f32 %v7606_v42, %v1492_v53  ;;  %v3582_v23 = vld [vmem:[#allocation2 + $0x79] sm:$0xff] }
 0x217   : > { %v1501_v41 = vpop.f32.mrf.mxu1  ;;  %v7766_v38 = vpop.f32.mrf.mxu0 }
 0x218   : > { %v1502_v26 = vadd.f32 %v1501_v41, %v7534_v36  ;;  %v7770_v39 = vadd.f32 %v7610_v51, %v1507_v11  ;;  %v3585_v41 = vld [vmem:[#allocation2 + $0x99] sm:$0xff] }
 0x219   : > { %v5895_v25 = vpop.f32.mrf.mxu1  ;;  %v7772_v2 = vpop.f32.mrf.mxu0  ;;  %6194 = vmatmul.mubr.msk.f32.gmra.mxu1 %vm846_vm1, %v3581_v59  ;;  %6271 = vmatmul.mubr.msk.f32.gmra.mxu0 %vm846_vm1, %v8815_v49 }
 0x21a   : > { %v1517_v42 = vadd.f32 %v5895_v25, %v7536_v22  ;;  %6196 = vmatprep.mubr.msk.f32.mxu1 %vm846_vm1, %v3582_v23  ;;  %6273 = vmatprep.mubr.msk.f32.mxu0 %vm846_vm1, %v8816_v63  ;;  %v7782_v36 = vadd.f32 %v7622_v57, %v1502_v26  ;;  %v3584_v22 = vld [vmem:[#allocation2 + $0x91] sm:$0xff]  ;;  %v3991_v23 = vld [vmem:[#allocation2 + $0x19a] sm:$0xff] }
 0x21b   : > { %v1511_v51 = vpop.f32.mrf.mxu1  ;;  %v7784_v46 = vpop.f32.mrf.mxu0 }
 0x21c   : > { %v1512_v53 = vadd.f32 %v1511_v51, %v7546_v34  ;;  %v7788_v47 = vadd.f32 %v7626_v0, %v1517_v42  ;;  %v4456_v0 = vld [vmem:[%s8741_s7] sm:$0xff]  ;;  %v3587_v51 = vld [vmem:[#allocation2 + $0xb1] sm:$0xff] }
 0x21d   : > { %v5898_v49 = vpop.f32.mrf.mxu1  ;;  %v7790_v3 = vpop.f32.mrf.mxu0  ;;  %6197 = vmatmul.mubr.msk.f32.gmra.mxu1 %vm846_vm1, %v3583_v4  ;;  %6274 = vmatmul.mubr.msk.f32.gmra.mxu0 %vm846_vm1, %v8819_v6 }
 0x21e   : > { %v1527_v57 = vadd.f32 %v5898_v49, %v7548_v40  ;;  %6199 = vmatprep.mubr.msk.f32.mxu1 %vm846_vm1, %v3584_v22  ;;  %6276 = vmatprep.mubr.msk.f32.mxu0 %vm846_vm1, %v8820_v9  ;;  %v7800_v34 = vadd.f32 %v7638_v5, %v1512_v53  ;;  %v3586_v5 = vld [vmem:[#allocation2 + $0xa9] sm:$0xff] }
 0x21f   : > { %v1521_v63 = vpop.f32.mrf.mxu1  ;;  %v7805_v11 = vpop.f32.mrf.mxu0  ;;  %6285 = vmatprep.subr.mxu1 %v4456_v0 }
 0x220   : > { %v1522_v6 = vadd.f32 %v1521_v63, %v7558_v60  ;;  %v7809_v40 = vadd.f32 %v7642_v29, %v1527_v57  ;;  %6286 = vmatpush3.msra.mxu1 %v4456_v0  ;;  %v3589_v57 = vld [vmem:[#allocation2 + $0xc9] sm:$0xff] }
 0x221   : > { %v5901_v26 = vpop.f32.mrf.mxu1  ;;  %v7811_v9 = vpop.f32.mrf.mxu0  ;;  %6200 = vmatmul.mubr.msk.f32.gmra.mxu1 %vm846_vm1, %v3585_v41  ;;  %6277 = vmatmul.mubr.msk.f32.gmra.mxu0 %vm846_vm1, %v8823_v52 }
 0x222   : > { %v1537_v59 = vadd.f32 %v5901_v26, %v7560_v61  ;;  %6202 = vmatprep.mubr.msk.f32.mxu1 %vm846_vm1, %v3586_v5  ;;  %6279 = vmatprep.mubr.msk.f32.mxu0 %vm846_vm1, %v7712_v18  ;;  %v7821_v60 = vadd.f32 %v7654_v15, %v1522_v6  ;;  %v3588_v15 = vld [vmem:[#allocation2 + $0xc1] sm:$0xff] }
 0x223   : > { %v1531_v29 = vpop.f32.mrf.mxu1  ;;  %v7823_v25 = vpop.f32.mrf.mxu0  ;;  %v3591_v26 = vld [vmem:[#allocation2 + $0xe1] sm:$0xff] }
 0x224   : > { %v1532_v42 = vadd.f32 %v1531_v29, %v7569_v8  ;;  %v7827_v52 = vadd.f32 %v7658_v24, %v1537_v59  ;;  %v3992_v8 = vld [vmem:[#allocation2 + $0x1a2] sm:$0xff] }
 0x225   : > { %v5904_v53 = vpop.f32.mrf.mxu1  ;;  %v7829_v61 = vpop.f32.mrf.mxu0  ;;  %6203 = vmatmul.mubr.msk.f32.gmra.mxu1 %vm846_vm1, %v3587_v51  ;;  %6280 = vmatmul.mubr.msk.f32.gmra.mxu0 %vm846_vm1, %v7722_v17 }
 0x226   : > { %v1547_v18 = vadd.f32 %v5904_v53, %v7571_v12  ;;  %6205 = vmatprep.mubr.msk.f32.mxu1 %vm846_vm1, %v3588_v15  ;;  %6282 = vmatprep.mubr.msk.f32.mxu0 %vm846_vm1, %v3991_v23  ;;  %v7838_v4 = vadd.f32 %v7670_v31, %v1532_v42  ;;  %v3590_v12 = vld [vmem:[#allocation2 + $0xd9] sm:$0xff] }
 0x227   : > { %v1541_v24 = vpop.f32.mrf.mxu1  ;;  %v7840_v49 = vpop.f32.mrf.mxu0 }
 0x228   : > { %v1542_v22 = vadd.f32 %v1541_v24, %v7579_v27  ;;  %v7844_v0 = vadd.f32 %v7674_v44, %v1547_v18 }
 0x229   : > { %v5907_v17 = vpop.f32.mrf.mxu1  ;;  %v7846_v63 = vpop.f32.mrf.mxu0  ;;  %6206 = vmatmul.mubr.msk.f32.gmra.mxu1 %vm846_vm1, %v3589_v57  ;;  %6283 = vmatmul.mubr.msk.f32.gmra.mxu0 %vm846_vm1, %v3992_v8 }
 0x22a   : > { %v1557_v31 = vadd.f32 %v5907_v17, %v7581_v32  ;;  %6208 = vmatprep.mubr.msk.f32.mxu1 %vm846_vm1, %v3590_v12  ;;  %v7853_v6 = vadd.f32 %v7686_v55, %v1542_v22  ;;  %v3592_v32 = vld [vmem:[#allocation2 + $0xf1] sm:$0xff] }
 0x22b   : > { %v1551_v27 = vpop.f32.mrf.mxu1  ;;  %v7855_v41 = vpop.f32.mrf.mxu0 }
 0x22c   : > { %v1552_v44 = vadd.f32 %v1551_v27, %v7590_v33  ;;  %v7859_v5 = vadd.f32 %v7690_v1, %v1557_v31  ;;  %v3593_v1 = vld [vmem:[#allocation2 + $0xf9] sm:$0xff] }
 0x22d   : > { %v5910_v59 = vpop.f32.mrf.mxu1  ;;  %v7861_v29 = vpop.f32.mrf.mxu0  ;;  %6209 = vmatmul.mubr.msk.f32.gmra.mxu1 %vm846_vm1, %v3591_v26 }
 0x22e   : > { %v1567_v23 = vadd.f32 %v5910_v59, %v7592_v37  ;;  %6211 = vmatprep.mubr.msk.f32.mxu1 %vm846_vm1, %v3592_v32  ;;  %v7867_v55 = vadd.f32 %v7702_v14, %v1552_v44  ;;  %v3594_v37 = vld [vmem:[#allocation2 + $0x109] sm:$0xff] }
 0x22f   : > { %v1561_v42 = vpop.f32.mrf.mxu1  ;;  %v7869_v51 = vpop.f32.mrf.mxu0 }
 0x230   : > { %v1562_v33 = vadd.f32 %v1561_v42, %v7604_v48  ;;  %v7873_v53 = vadd.f32 %v7706_v30, %v1567_v23  ;;  %v3595_v30 = vld [vmem:[#allocation2 + $0x111] sm:$0xff] }
 0x231   : > { %v5913_v15 = vpop.f32.mrf.mxu1  ;;  %v7875_v18 = vpop.f32.mrf.mxu0  ;;  %6212 = vmatmul.mubr.msk.f32.gmra.mxu1 %vm846_vm1, %v3593_v1 }
 0x232   : > { %v1577_v8 = vadd.f32 %v5913_v15, %v7608_v20  ;;  %6214 = vmatprep.mubr.msk.f32.mxu1 %vm846_vm1, %v3594_v37  ;;  %v7881_v14 = vadd.f32 %v7720_v45, %v1562_v33  ;;  %v3596_v20 = vld [vmem:[#allocation2 + $0x121] sm:$0xff] }
 0x233   : > { %v1571_v24 = vpop.f32.mrf.mxu1  ;;  %v7883_v22 = vpop.f32.mrf.mxu0 }
 0x234   : > { %v1572_v48 = vadd.f32 %v1571_v24, %v7620_v56  ;;  %v7887_v57 = vadd.f32 %v7726_v19, %v1577_v8  ;;  %v3597_v19 = vld [vmem:[#allocation2 + $0x129] sm:$0xff] }
 0x235   : > { %v5916_v17 = vpop.f32.mrf.mxu1  ;;  %v7889_v12 = vpop.f32.mrf.mxu0  ;;  %6215 = vmatmul.mubr.msk.f32.gmra.mxu1 %vm846_vm1, %v3595_v30 }
 0x236   : > { %v1587_v31 = vadd.f32 %v5916_v17, %v7624_v58  ;;  %6217 = vmatprep.mubr.msk.f32.mxu1 %vm846_vm1, %v3596_v20  ;;  %v7895_v45 = vadd.f32 %v7737_v62, %v1572_v48  ;;  %v3598_v58 = vld [vmem:[#allocation2 + $0x139] sm:$0xff] }
 0x237   : > { %v1581_v27 = vpop.f32.mrf.mxu1  ;;  %v7897_v44 = vpop.f32.mrf.mxu0 }
 0x238   : > { %v1582_v56 = vadd.f32 %v1581_v27, %v7636_v7  ;;  %v7901_v26 = vadd.f32 %v7739_v10, %v1587_v31  ;;  %v3599_v10 = vld [vmem:[#allocation2 + $0x141] sm:$0xff]  ;;  %v8827_v31 = vld [vmem:[#allocation12_spill] sm:$0xff] }
 0x239   : > { %v5919_v59 = vpop.f32.mrf.mxu1  ;;  %v7903_v32 = vpop.f32.mrf.mxu0  ;;  %6218 = vmatmul.mubr.msk.f32.gmra.mxu1 %vm846_vm1, %v3597_v19 }
 0x23a   : > { %v1597_v23 = vadd.f32 %v5919_v59, %v7640_v16  ;;  %6220 = vmatprep.mubr.msk.f32.mxu1 %vm846_vm1, %v3598_v58  ;;  %v7909_v62 = vadd.f32 %v7748_v54, %v1582_v56  ;;  %v3600_v16 = vld [vmem:[#allocation2 + $0x151] sm:$0xff] }
 0x23b   : > { %v1591_v42 = vpop.f32.mrf.mxu1  ;;  %v7911_v33 = vpop.f32.mrf.mxu0 }
 0x23c   : > { %v1592_v7 = vadd.f32 %v1591_v42, %v7652_v28  ;;  %v7915_v1 = vadd.f32 %v7754_v35, %v1597_v23  ;;  %v3601_v35 = vld [vmem:[#allocation2 + $0x159] sm:$0xff] }
 0x23d   : > { %v5922_v15 = vpop.f32.mrf.mxu1  ;;  %v7917_v37 = vpop.f32.mrf.mxu0  ;;  %6221 = vmatmul.mubr.msk.f32.gmra.mxu1 %vm846_vm1, %v3599_v10 }
 0x23e   : > { %v1607_v8 = vadd.f32 %v5922_v15, %v7656_v21  ;;  %6223 = vmatprep.mubr.msk.f32.mxu1 %vm846_vm1, %v3600_v16  ;;  %v7923_v54 = vadd.f32 %v7766_v38, %v1592_v7  ;;  %v3602_v21 = vld [vmem:[#allocation2 + $0x169] sm:$0xff]  ;;  %v8829_v7 = vld [vmem:[#allocation14_spill] sm:$0xff] }
 0x23f   : > { %v1601_v24 = vpop.f32.mrf.mxu1  ;;  %v7925_v48 = vpop.f32.mrf.mxu0  ;;  %v8830_v15 = vld [vmem:[#allocation26_spill] sm:$0xff] }
 0x240   : > { %v1602_v28 = vadd.f32 %v1601_v24, %v7668_v50  ;;  %v7929_v30 = vadd.f32 %v7772_v2, %v1607_v8  ;;  %v8828_v50 = vld [vmem:[#allocation13_spill] sm:$0xff] }
 0x241   : > { %v5925_v17 = vpop.f32.mrf.mxu1  ;;  %v7931_v20 = vpop.f32.mrf.mxu0  ;;  %6224 = vmatmul.mubr.msk.f32.gmra.mxu1 %vm846_vm1, %v3601_v35  ;;  %v3603_v2 = vld [vmem:[#allocation2 + $0x171] sm:$0xff]  ;;  %v3606_v24 = vld [vmem:[#allocation2 + $0x199] sm:$0xff] }
 0x242   : > { %v1617_v27 = vadd.f32 %v5925_v17, %v8827_v31  ;;  %6226 = vmatprep.mubr.msk.f32.mxu1 %vm846_vm1, %v3602_v21  ;;  %v7937_v38 = vadd.f32 %v7784_v46, %v1602_v28  ;;  %v8831_v28 = vld [vmem:[#allocation15_spill] sm:$0xff] }
 0x243   : > { %v1611_v56 = vpop.f32.mrf.mxu1  ;;  %v7939_v19 = vpop.f32.mrf.mxu0  ;;  %v8832_v31 = vld [vmem:[#allocation27_spill] sm:$0xff] }
 0x244   : > { %v1612_v59 = vadd.f32 %v1611_v56, %v8828_v50  ;;  %v7943_v58 = vadd.f32 %v7790_v3, %v1617_v27  ;;  %v8833_v27 = vld [vmem:[#allocation16_spill] sm:$0xff] }
 0x245   : > { %v5928_v23 = vpop.f32.mrf.mxu1  ;;  %v7945_v42 = vpop.f32.mrf.mxu0  ;;  %6227 = vmatmul.mubr.msk.f32.gmra.mxu1 %vm846_vm1, %v3603_v2 }
 0x246   : > { %v1627_v10 = vadd.f32 %v5928_v23, %v8829_v7  ;;  %6229 = vmatprep.mubr.msk.f32.mxu1 %vm846_vm1, %v8830_v15  ;;  %v7952_v46 = vadd.f32 %v7805_v11, %v1612_v59  ;;  %v3607_v11 = vld [vmem:[#allocation2 + $0x1a1] sm:$0xff]  ;;  %v8834_v23 = vld [vmem:[#allocation17_spill] sm:$0xff] }
 0x247   : > { %v1621_v16 = vpop.f32.mrf.mxu1  ;;  %v7954_v8 = vpop.f32.mrf.mxu0 }
 0x248   : > { %v1622_v3 = vadd.f32 %v1621_v16, %v8831_v28  ;;  %v7958_v35 = vadd.f32 %v7811_v9, %v1627_v10  ;;  %v8835_v16 = vld [vmem:[#allocation18_spill] sm:$0xff] }
 0x249   : > { %v5931_v17 = vpop.f32.mrf.mxu1  ;;  %v7960_v21 = vpop.f32.mrf.mxu0  ;;  %6230 = vmatmul.mubr.msk.f32.gmra.mxu1 %vm846_vm1, %v8832_v31 }
 0x24a   : > { %v1637_v56 = vadd.f32 %v5931_v17, %v8833_v27  ;;  %6232 = vmatprep.mubr.msk.f32.mxu1 %vm846_vm1, %v3606_v24  ;;  %v7967_v50 = vadd.f32 %v7823_v25, %v1622_v3  ;;  %v8836_v17 = vld [vmem:[#allocation19_spill] sm:$0xff] }
 0x24b   : > { %v1631_v59 = vpop.f32.mrf.mxu1  ;;  %v7969_v2 = vpop.f32.mrf.mxu0 }
 0x24c   : > { %v1632_v9 = vadd.f32 %v1631_v59, %v8834_v23  ;;  %v7973_v7 = vadd.f32 %v7829_v61, %v1637_v56 }
 0x24d   : > { %v5934_v10 = vpop.f32.mrf.mxu1  ;;  %v7975_v15 = vpop.f32.mrf.mxu0  ;;  %6233 = vmatmul.mubr.msk.f32.gmra.mxu1 %vm846_vm1, %v3607_v11 }
 0x24e   : > { %v1647_v28 = vadd.f32 %v5934_v10, %v8835_v16  ;;  %v7980_v24 = vadd.f32 %v7840_v49, %v1632_v9 }
 0x24f   : > { %v1641_v25 = vpop.f32.mrf.mxu1  ;;  %v7982_v3 = vpop.f32.mrf.mxu0 }
 0x250   : > { %v1642_v31 = vadd.f32 %v1641_v25, %v8836_v17  ;;  %v7986_v27 = vadd.f32 %v7846_v63, %v1647_v28 }
 0x251   : > { %v5989_v61 = vpop.f32.mrf.mxu1  ;;  %v7988_v56 = vpop.f32.mrf.mxu0 }
 0x252   : > { %v2389_v59 = vadd.f32 %v5989_v61, %v7752_v43  ;;  %v7992_v11 = vadd.f32 %v7855_v41, %v1642_v31 }
 0x253   : > { %v2229_v23 = vpop.f32.mrf.mxu1  ;;  %v7994_v10 = vpop.f32.mrf.mxu0 }
 0x254   : > { %v2388_v49 = vadd.f32 %v2229_v23, %v7764_v13  ;;  %v7998_v9 = vadd.f32 %v7861_v29, %v2389_v59 }
 0x255   : > { %v5992_v16 = vpop.f32.mrf.mxu1  ;;  %v8000_v25 = vpop.f32.mrf.mxu0 }
 0x256   : > { %v2391_v63 = vadd.f32 %v5992_v16, %v7770_v39  ;;  %v8004_v28 = vadd.f32 %v7869_v51, %v2388_v49 }
 0x257   : > { %v2239_v43 = vpop.f32.mrf.mxu1  ;;  %v8006_v17 = vpop.f32.mrf.mxu0 }
 0x258   : > { %v2390_v41 = vadd.f32 %v2239_v43, %v7782_v36  ;;  %v8010_v31 = vadd.f32 %v7875_v18, %v2391_v63 }
 0x259   : > { %v5995_v13 = vpop.f32.mrf.mxu1  ;;  %v8012_v61 = vpop.f32.mrf.mxu0 }
 0x25a   : > { %v2393_v29 = vadd.f32 %v5995_v13, %v7788_v47  ;;  %v8016_v59 = vadd.f32 %v7883_v22, %v2390_v41 }
 0x25b   : > { %v2249_v39 = vpop.f32.mrf.mxu1  ;;  %v8018_v23 = vpop.f32.mrf.mxu0 }
 0x25c   : > { %v2392_v51 = vadd.f32 %v2249_v39, %v7800_v34  ;;  %v8022_v49 = vadd.f32 %v7889_v12, %v2393_v29 }
 0x25d   : > { %v5998_v36 = vpop.f32.mrf.mxu1  ;;  %v8024_v16 = vpop.f32.mrf.mxu0 }
 0x25e   : > { %v2395_v18 = vadd.f32 %v5998_v36, %v7809_v40  ;;  %v8028_v63 = vadd.f32 %v7897_v44, %v2392_v51 }
 0x25f   : > { %v2259_v47 = vpop.f32.mrf.mxu1  ;;  %v8030_v43 = vpop.f32.mrf.mxu0 }
 0x260   : > { %v2394_v22 = vadd.f32 %v2259_v47, %v7821_v60  ;;  %v8034_v41 = vadd.f32 %v7903_v32, %v2395_v18 }
 0x261   : > { %v6001_v34 = vpop.f32.mrf.mxu1  ;;  %v8036_v13 = vpop.f32.mrf.mxu0 }
 0x262   : > { %v2397_v12 = vadd.f32 %v6001_v34, %v7827_v52  ;;  %v8040_v29 = vadd.f32 %v7911_v33, %v2394_v22 }
 0x263   : > { %v2269_v40 = vpop.f32.mrf.mxu1  ;;  %v8042_v39 = vpop.f32.mrf.mxu0 }
 0x264   : > { %v2396_v44 = vadd.f32 %v2269_v40, %v7838_v4  ;;  %v8046_v51 = vadd.f32 %v7917_v37, %v2397_v12 }
 0x265   : > { %v6004_v60 = vpop.f32.mrf.mxu1  ;;  %v8048_v36 = vpop.f32.mrf.mxu0 }
 0x266   : > { %v2399_v32 = vadd.f32 %v6004_v60, %v7844_v0  ;;  %v8052_v18 = vadd.f32 %v7925_v48, %v2396_v44 }
 0x267   : > { %v2279_v52 = vpop.f32.mrf.mxu1  ;;  %v8054_v47 = vpop.f32.mrf.mxu0 }
 0x268   : > { %v2398_v33 = vadd.f32 %v2279_v52, %v7853_v6  ;;  %v8058_v22 = vadd.f32 %v7931_v20, %v2399_v32 }
 0x269   : > { %v6007_v4 = vpop.f32.mrf.mxu1  ;;  %v8060_v34 = vpop.f32.mrf.mxu0 }
 0x26a   : > { %v2401_v37 = vadd.f32 %v6007_v4, %v7859_v5  ;;  %v8064_v12 = vadd.f32 %v7939_v19, %v2398_v33 }
 0x26b   : > { %v2289_v0 = vpop.f32.mrf.mxu1  ;;  %v8066_v40 = vpop.f32.mrf.mxu0 }
 0x26c   : > { %v2400_v48 = vadd.f32 %v2289_v0, %v7867_v55  ;;  %v8070_v44 = vadd.f32 %v7945_v42, %v2401_v37 }
 0x26d   : > { %v6010_v6 = vpop.f32.mrf.mxu1  ;;  %v8072_v60 = vpop.f32.mrf.mxu0 }
 0x26e   : > { %v2403_v20 = vadd.f32 %v6010_v6, %v7873_v53  ;;  %v8076_v32 = vadd.f32 %v7954_v8, %v2400_v48 }
 0x26f   : > { %v2299_v5 = vpop.f32.mrf.mxu1  ;;  %v8078_v52 = vpop.f32.mrf.mxu0 }
 0x270   : > { %8837 = vst [vmem:[#allocation20_spill] sm:$0xff] %v8076_v32  ;;  %v2402_v19 = vadd.f32 %v2299_v5, %v7881_v14  ;;  %v8082_v33 = vadd.f32 %v7960_v21, %v2403_v20 }
 0x271   : > { %v6013_v55 = vpop.f32.mrf.mxu1  ;;  %v8084_v4 = vpop.f32.mrf.mxu0 }
 0x272   : > { %v2405_v42 = vadd.f32 %v6013_v55, %v7887_v57  ;;  %v8088_v37 = vadd.f32 %v7969_v2, %v2402_v19 }
 0x273   : > { %v2309_v53 = vpop.f32.mrf.mxu1  ;;  %v8090_v0 = vpop.f32.mrf.mxu0 }
 0x274   : > { %8838 = vst [vmem:[#allocation21_spill] sm:$0xff] %v8088_v37  ;;  %v2404_v8 = vadd.f32 %v2309_v53, %v7895_v45  ;;  %v8094_v48 = vadd.f32 %v7975_v15, %v2405_v42 }
 0x275   : > { %v6016_v14 = vpop.f32.mrf.mxu1  ;;  %v8096_v6 = vpop.f32.mrf.mxu0 }
 0x276   : > { %v2407_v21 = vadd.f32 %v6016_v14, %v7901_v26  ;;  %v8100_v20 = vadd.f32 %v7982_v3, %v2404_v8 }
 0x277   : > { %v2319_v57 = vpop.f32.mrf.mxu1  ;;  %v8102_v5 = vpop.f32.mrf.mxu0 }
 0x278   : > { %8839 = vst [vmem:[#allocation22_spill] sm:$0xff] %v8100_v20  ;;  %v2406_v2 = vadd.f32 %v2319_v57, %v7909_v62  ;;  %v8106_v19 = vadd.f32 %v7988_v56, %v2407_v21 }
 0x279   : > { %v6019_v45 = vpop.f32.mrf.mxu1  ;;  %v8108_v55 = vpop.f32.mrf.mxu0 }
 0x27a   : > { %v2409_v15 = vadd.f32 %v6019_v45, %v7915_v1  ;;  %v8112_v42 = vadd.f32 %v7994_v10, %v2406_v2 }
 0x27b   : > { %v2329_v26 = vpop.f32.mrf.mxu1  ;;  %v8114_v53 = vpop.f32.mrf.mxu0 }
 0x27c   : > { %8840 = vst [vmem:[#allocation23_spill] sm:$0xff] %v8112_v42  ;;  %v2408_v3 = vadd.f32 %v2329_v26, %v7923_v54  ;;  %v8118_v8 = vadd.f32 %v8000_v25, %v2409_v15 }
 0x27d   : > { %v6022_v62 = vpop.f32.mrf.mxu1  ;;  %v6151_v14 = vpop.f32.mrf.mxu0 }
 0x27e   : > { %v2411_v56 = vadd.f32 %v6022_v62, %v7929_v30  ;;  %v8122_v21 = vadd.f32 %v8006_v17, %v2408_v3 }
 0x27f   : > { %v2339_v57 = vpop.f32.mrf.mxu1  ;;  %v8124_v1 = vpop.f32.mrf.mxu0 }
 0x280   : > { %8841 = vst [vmem:[#allocation24_spill] sm:$0xff] %v8122_v21  ;;  %v2410_v10 = vadd.f32 %v2339_v57, %v7937_v38  ;;  %v8128_v2 = vadd.f32 %v8012_v61, %v2411_v56 }
 0x281   : > { %v6025_v45 = vpop.f32.mrf.mxu1  ;;  %v6154_v54 = vpop.f32.mrf.mxu0 }
 0x282   : > { %v2413_v25 = vadd.f32 %v6025_v45, %v7943_v58  ;;  %v8132_v15 = vadd.f32 %v8018_v23, %v2410_v10 }
 0x283   : > { %v2349_v26 = vpop.f32.mrf.mxu1  ;;  %v8134_v30 = vpop.f32.mrf.mxu0 }
 0x284   : > { %8842 = vst [vmem:[#allocation25_spill] sm:$0xff] %v8132_v15  ;;  %8843 = vst [vmem:[#allocation12_spill] sm:$0xff] %v8134_v30  ;;  %v2412_v17 = vadd.f32 %v2349_v26, %v7952_v46  ;;  %v8138_v3 = vadd.f32 %v8024_v16, %v2413_v25 }
 0x285   : > { %v6028_v62 = vpop.f32.mrf.mxu1  ;;  %v6157_v38 = vpop.f32.mrf.mxu0 }
 0x286   : > { %v2415_v61 = vadd.f32 %v6028_v62, %v7958_v35  ;;  %v8142_v56 = vadd.f32 %v8030_v43, %v2412_v17 }
 0x287   : > { %v2359_v57 = vpop.f32.mrf.mxu1  ;;  %v8144_v58 = vpop.f32.mrf.mxu0 }
 0x288   : > { %8844 = vst [vmem:[#allocation13_spill] sm:$0xff] %v8142_v56  ;;  %8845 = vst [vmem:[#allocation14_spill] sm:$0xff] %v8144_v58  ;;  %v2414_v23 = vadd.f32 %v2359_v57, %v7967_v50  ;;  %v8148_v10 = vadd.f32 %v8036_v13, %v2415_v61 }
 0x289   : > { %v6031_v45 = vpop.f32.mrf.mxu1  ;;  %v6160_v46 = vpop.f32.mrf.mxu0 }
 0x28a   : > { %v2417_v16 = vadd.f32 %v6031_v45, %v7973_v7  ;;  %v8152_v25 = vadd.f32 %v8042_v39, %v2414_v23 }
 0x28b   : > { %v2369_v26 = vpop.f32.mrf.mxu1  ;;  %v8154_v35 = vpop.f32.mrf.mxu0 }
 0x28c   : > { %8846 = vst [vmem:[#allocation26_spill] sm:$0xff] %v8152_v25  ;;  %8847 = vst [vmem:[#allocation15_spill] sm:$0xff] %v8154_v35  ;;  %v2416_v43 = vadd.f32 %v2369_v26, %v7980_v24  ;;  %v8158_v17 = vadd.f32 %v8048_v36, %v2417_v16 }
 0x28d   : > { %v6034_v62 = vpop.f32.mrf.mxu1  ;;  %v6163_v50 = vpop.f32.mrf.mxu0 }
 0x28e   : > { %v2419_v13 = vadd.f32 %v6034_v62, %v7986_v27  ;;  %v8162_v61 = vadd.f32 %v8054_v47, %v2416_v43 }
 0x28f   : > { %v2379_v57 = vpop.f32.mrf.mxu1  ;;  %v8164_v7 = vpop.f32.mrf.mxu0 }
 0x290   : > { %8848 = vst [vmem:[#allocation27_spill] sm:$0xff] %v8162_v61  ;;  %8849 = vst [vmem:[#allocation16_spill] sm:$0xff] %v8164_v7  ;;  %v2418_v39 = vadd.f32 %v2379_v57, %v7992_v11  ;;  %v8168_v23 = vadd.f32 %v8060_v34, %v2419_v13 }
 0x291   : > { %v8170_v45 = vpop.f32.mrf.mxu1  ;;  %v6166_v24 = vpop.f32.mrf.mxu0 }
 0x292   : > { %v8173_v36 = vadd.f32 %v8066_v40, %v2418_v39 }
 0x293   : > { %v8175_v16 = vpop.f32.mrf.mxu1  ;;  %v8177_v27 = vpop.f32.mrf.mxu0 }
 0x294   : > { %8850 = vst [vmem:[#allocation17_spill] sm:$0xff] %v8173_v36  ;;  %8851 = vst [vmem:[#allocation18_spill] sm:$0xff] %v8177_v27 }
 0x295   : > { %v8179_v47 = vpop.f32.mrf.mxu1  ;;  %v6169_v26 = vpop.f32.mrf.mxu0 }
 0x297   : > { %v8181_v43 = vpop.f32.mrf.mxu1  ;;  %v8183_v62 = vpop.f32.mrf.mxu0 }
 0x298   : > { %8852 = vst [vmem:[#allocation19_spill] sm:$0xff] %v8183_v62 }
 0x299   : > { %v8185_v11 = vpop.f32.mrf.mxu1  ;;  %v6172_v34 = vpop.f32.mrf.mxu0 }
 0x29b   : > { %v8187_v13 = vpop.f32.mrf.mxu1  ;;  %v8189_v57 = vpop.f32.mrf.mxu0 }
 0x29c   : > { %8853 = vst [vmem:[#allocation28_spill] sm:$0xff] %v8189_v57 }
 0x29d   : > { %v8191_v40 = vpop.f32.mrf.mxu1  ;;  %v6175_v39 = vpop.f32.mrf.mxu0 }
 0x29f   : > { %v8193_v36 = vpop.f32.mrf.mxu1  ;;  %v8195_v61 = vpop.f32.mrf.mxu0 }
 0x2a0   : > { %8854 = vst [vmem:[#allocation29_spill] sm:$0xff] %v8195_v61 }
 0x2a1   : > { %v6101_v25 = vpop.f32.mrf.mxu1  ;;  %v6178_v56 = vpop.f32.mrf.mxu0 }
 0x2a2   : > { %v3167_v15 = vadd.f32 %v6101_v25, %v8046_v51 }
 0x2a3   : > { %v8198_v27 = vpop.f32.mrf.mxu1  ;;  %v8200_v62 = vpop.f32.mrf.mxu0 }
 0x2a4   : > { %8855 = vst [vmem:[#allocation30_spill] sm:$0xff] %v8200_v62  ;;  %v8202_v21 = vadd.f32 %v6151_v14, %v3167_v15 }
 0x2a5   : > { %v6104_v42 = vpop.f32.mrf.mxu1  ;;  %v6181_v7 = vpop.f32.mrf.mxu0 }
 0x2a6   : > { %v3169_v57 = vadd.f32 %v6104_v42, %v8058_v22 }
 0x2a7   : > { %v8205_v35 = vpop.f32.mrf.mxu1  ;;  %v8207_v20 = vpop.f32.mrf.mxu0 }
 0x2a8   : > { %8856 = vst [vmem:[#allocation31_spill] sm:$0xff] %v8207_v20  ;;  %v8209_v58 = vadd.f32 %v6154_v54, %v3169_v57 }
 0x2a9   : > { %v6107_v61 = vpop.f32.mrf.mxu1  ;;  %v6184_v37 = vpop.f32.mrf.mxu0 }
 0x2aa   : > { %v3171_v51 = vadd.f32 %v6107_v61, %v8070_v44 }
 0x2ab   : > { %v8212_v25 = vpop.f32.mrf.mxu1  ;;  %v8214_v32 = vpop.f32.mrf.mxu0 }
 0x2ac   : > { %8857 = vst [vmem:[#allocation32_spill] sm:$0xff] %v8214_v32  ;;  %v8216_v14 = vadd.f32 %v6157_v38, %v3171_v51 }
 0x2ad   : > { %v6110_v15 = vpop.f32.mrf.mxu1  ;;  %v6239_v62 = vpop.f32.mrf.mxu0 }
 0x2ae   : > { %8858 = vst [vmem:[#allocation33_spill] sm:$0xff] %v8216_v14  ;;  %v3173_v22 = vadd.f32 %v6110_v15, %v8082_v33 }
 0x2af   : > { %v8219_v42 = vpop.f32.mrf.mxu1  ;;  %v8221_v30 = vpop.f32.mrf.mxu0 }
 0x2b0   : > { %8859 = vst [vmem:[#allocation34_spill] sm:$0xff] %v8219_v42  ;;  %v8223_v54 = vadd.f32 %v6160_v46, %v3173_v22 }
 0x2b1   : > { %v6113_v57 = vpop.f32.mrf.mxu1  ;;  %v8225_v20 = vpop.f32.mrf.mxu0 }
 0x2b2   : > { %8860 = vst [vmem:[#allocation35_spill] sm:$0xff] %v8223_v54  ;;  %v3175_v44 = vadd.f32 %v6113_v57, %v8094_v48 }
 0x2b3   : > { %v8228_v61 = vpop.f32.mrf.mxu1  ;;  %v8230_v32 = vpop.f32.mrf.mxu0 }
 0x2b4   : > { %8861 = vst [vmem:[#allocation36_spill] sm:$0xff] %v8228_v61  ;;  %v8232_v38 = vadd.f32 %v6163_v50, %v3175_v44 }
 0x2b5   : > { %v6116_v51 = vpop.f32.mrf.mxu1  ;;  %v8234_v14 = vpop.f32.mrf.mxu0 }
 0x2b6   : > { %8862 = vst [vmem:[#allocation37_spill] sm:$0xff] %v8232_v38  ;;  %v3177_v33 = vadd.f32 %v6116_v51, %v8106_v19 }
 0x2b7   : > { %v8237_v15 = vpop.f32.mrf.mxu1  ;;  %v8239_v46 = vpop.f32.mrf.mxu0 }
 0x2b8   : > { %8863 = vst [vmem:[#allocation38_spill] sm:$0xff] %v8237_v15  ;;  %v8241_v22 = vadd.f32 %v6166_v24, %v3177_v33 }
 0x2b9   : > { %v6119_v54 = vpop.f32.mrf.mxu1  ;;  %v8243_v42 = vpop.f32.mrf.mxu0 }
 0x2ba   : > { %8864 = vst [vmem:[#allocation39_spill] sm:$0xff] %v8241_v22  ;;  %v3179_v48 = vadd.f32 %v6119_v54, %v8118_v8 }
 0x2bb   : > { %v8246_v57 = vpop.f32.mrf.mxu1  ;;  %v8248_v50 = vpop.f32.mrf.mxu0 }
 0x2bc   : > { %8865 = vst [vmem:[#allocation40_spill] sm:$0xff] %v8246_v57  ;;  %v8250_v44 = vadd.f32 %v6169_v26, %v3179_v48 }
 0x2bd   : > { %v6122_v38 = vpop.f32.mrf.mxu1  ;;  %v8252_v61 = vpop.f32.mrf.mxu0 }
 0x2be   : > { %8866 = vst [vmem:[#allocation41_spill] sm:$0xff] %v8250_v44  ;;  %v3181_v19 = vadd.f32 %v6122_v38, %v8128_v2 }
 0x2bf   : > { %v8255_v51 = vpop.f32.mrf.mxu1  ;;  %v8257_v24 = vpop.f32.mrf.mxu0 }
 0x2c0   : > { %8867 = vst [vmem:[#allocation42_spill] sm:$0xff] %v8255_v51  ;;  %v8259_v33 = vadd.f32 %v6172_v34, %v3181_v19 }
 0x2c1   : > { %v6125_v22 = vpop.f32.mrf.mxu1  ;;  %v8261_v15 = vpop.f32.mrf.mxu0 }
 0x2c2   : > { %8868 = vst [vmem:[#allocation43_spill] sm:$0xff] %v8259_v33  ;;  %v3183_v8 = vadd.f32 %v6125_v22, %v8138_v3 }
 0x2c3   : > { %v8264_v54 = vpop.f32.mrf.mxu1  ;;  %v8266_v26 = vpop.f32.mrf.mxu0 }
 0x2c4   : > { %v8268_v48 = vadd.f32 %v6175_v39, %v3183_v8  ;;  %v3159_v39 = vadd.f32 %v8170_v45, %v7998_v9 }
 0x2c5   : > { %v6128_v44 = vpop.f32.mrf.mxu1  ;;  %v8271_v38 = vpop.f32.mrf.mxu0 }
 0x2c6   : > { %v3185_v2 = vadd.f32 %v6128_v44, %v8148_v10  ;;  %v3158_v10 = vadd.f32 %v8175_v16, %v8004_v28 }
 0x2c7   : > { %v8273_v51 = vpop.f32.mrf.mxu1  ;;  %v8278_v57 = vpop.f32.mrf.mxu0 }
 0x2c8   : > { %v8275_v34 = vadd.f32 %v6178_v56, %v3185_v2  ;;  %v3544_v28 = vadd.f32 %v8078_v52, %v3158_v10 }
 0x2c9   : > { %v6131_v19 = vpop.f32.mrf.mxu1  ;;  %v8289_v56 = vpop.f32.mrf.mxu0 }
 0x2ca   : > { %v3187_v33 = vadd.f32 %v6131_v19, %v8158_v17  ;;  %v3161_v17 = vadd.f32 %v8179_v47, %v8010_v31  ;;  %v3545_v19 = vadd.f32 %v8072_v60, %v3159_v39  ;;  %v8317_v39 = vld [vmem:[%s8740_s6] ss:$0 sm:$0xff] }
 0x2cb   : > { %v8280_v3 = vpop.f32.mrf.mxu1  ;;  %v8301_v16 = vpop.f32.mrf.mxu0 }
 0x2cc   : > { %8869 = vst [vmem:[#allocation44_spill] sm:$0xff] %v8280_v3  ;;  %v8284_v22 = vadd.f32 %v6181_v7, %v3187_v33  ;;  %v3160_v7 = vadd.f32 %v8181_v43, %v8016_v59  ;;  %v3547_v60 = vadd.f32 %v8084_v4, %v3161_v17  ;;  %v3162_v59 = vadd.f32 %v8187_v13, %v8028_v63 }
 0x2cd   : > { %v6134_v8 = vpop.f32.mrf.mxu1  ;;  %v8321_v4 = vpop.f32.mrf.mxu0 }
 0x2ce   : > { %v3189_v44 = vadd.f32 %v6134_v8, %v8168_v23  ;;  %v8306_v23 = vld [vmem:[%s8739_s5] ss:$0 sm:$0xff]  ;;  %v3546_v10 = vadd.f32 %v8090_v0, %v3160_v7  ;;  %v3164_v0 = vadd.f32 %v8193_v36, %v8040_v29 }
 0x2cf   : > { %v8291_v2 = vpop.f32.mrf.mxu1 }
 0x2d0   : > { %v8296_v3 = vadd.f32 %v6184_v37, %v3189_v44  ;;  %v3163_v37 = vadd.f32 %v8185_v11, %v8022_v49  ;;  %v3165_v49 = vadd.f32 %v8191_v40, %v8034_v41  ;;  %v8335_v40 = vpop.f32.mrf.mxu0 }
 0x2d1   : > { %v6189_v9 = vpop.f32.mrf.mxu1 }
 0x2d2   : > { %v3930_v45 = vadd.f32 %v6189_v9, %v3545_v19  ;;  %v3549_v19 = vadd.f32 %v8096_v6, %v3163_v37 }
 0x2d3   : > { %v3770_v33 = vpop.f32.mrf.mxu1 }
 0x2d4   : > { %v4315_v31 = vadd.f32 %v6239_v62, %v3930_v45  ;;  %v3929_v47 = vadd.f32 %v3770_v33, %v3544_v28 }
 0x2d5   : > { %v6192_v43 = vpop.f32.mrf.mxu1 }
 0x2d6   : > { %v4354_v52 = vmul.f32 %v8306_v23, %v4315_v31  ;;  %v4314_v8 = vadd.f32 %v8221_v30, %v3929_v47  ;;  %v3932_v62 = vadd.f32 %v6192_v43, %v3547_v60  ;;  %v3548_v30 = vadd.f32 %v8102_v5, %v3162_v59 }
 0x2d7   : > { %v3780_v44 = vpop.f32.mrf.mxu1  ;;  %v3551_v47 = vadd.f32 %v8108_v55, %v3165_v49  ;;  %v3550_v43 = vadd.f32 %v8114_v53, %v3164_v0  ;;  %v3168_v49 = vadd.f32 %v8205_v35, %v8064_v12 }
 0x2d8   : > { %v4353_v63 = vmul.f32 %v8306_v23, %v4314_v8  ;;  %v4317_v11 = vadd.f32 %v8225_v20, %v3932_v62  ;;  %v3931_v13 = vadd.f32 %v3780_v44, %v3546_v10  ;;  %v4393_v17 = vadd.f32 %v8317_v39, %v4354_v52  ;;  %v8347_v8 = vpop.f32.mrf.mxu0 }
 0x2d9   : > { %v6195_v9 = vpop.f32.mrf.mxu1  ;;  %v3166_v52 = vadd.f32 %v8198_v27, %v8052_v18 }
 0x2da   : > { %v4392_v7 = vadd.f32 %v8317_v39, %v4353_v63  ;;  %v4356_v45 = vmul.f32 %v8306_v23, %v4317_v11  ;;  %v4316_v41 = vadd.f32 %v8230_v32, %v3931_v13  ;;  %v3934_v20 = vadd.f32 %v6195_v9, %v3549_v19  ;;  %v8361_v19 = vpop.f32.mrf.mxu0 }
 0x2db   : > { %v3790_v28 = vpop.f32.mrf.mxu1  ;;  %v4425_v5 = vmax.f32 %v4393_v17, 0.0 }
 0x2dc   : > { %v4424_v33 = vmax.f32 %v4392_v7, 0.0  ;;  %v4355_v31 = vmul.f32 %v8306_v23, %v4316_v41  ;;  %v3933_v6 = vadd.f32 %v3790_v28, %v3548_v30  ;;  %v4395_v60 = vadd.f32 %v8317_v39, %v4356_v45 }
 0x2dd   : > { %v4319_v29 = vadd.f32 %v8234_v14, %v3934_v20  ;;  %v6198_v36 = vpop.f32.mrf.mxu1  ;;  %v8871_v20 = vld [vmem:[#allocation20_spill] sm:$0xff] }
 0x2de   : > { %v4394_v37 = vadd.f32 %v8317_v39, %v4355_v31  ;;  %v4318_v32 = vadd.f32 %v8239_v46, %v3933_v6  ;;  %v3936_v59 = vadd.f32 %v6198_v36, %v3551_v47  ;;  %6287 = vmatprep.mubr.msk.f32.mxu1 %vm846_vm1, %v4424_v33  ;;  %v4427_v53 = vmax.f32 %v4395_v60, 0.0  ;;  %v8375_v6 = vpop.f32.mrf.mxu0  ;;  %v8873_v36 = vld [vmem:[#allocation34_spill] sm:$0xff] }
 0x2df   : > { %v4358_v55 = vmul.f32 %v8306_v23, %v4319_v29  ;;  %v3800_v62 = vpop.f32.mrf.mxu1  ;;  %6288 = vmatmul.mubr.msk.f32.vlgmr.msra.gmra.mxu1 %vm846_vm1, %v4425_v5  ;;  %v3170_v28 = vadd.f32 %v8212_v25, %v8871_v20  ;;  %v8872_v25 = vld [vmem:[#allocation21_spill] sm:$0xff] }
 0x2e0   : > { %v4426_v14 = vmax.f32 %v4394_v37, 0.0  ;;  %v4357_v10 = vmul.f32 %v8306_v23, %v4318_v32  ;;  %v4321_v46 = vadd.f32 %v8243_v42, %v3936_v59  ;;  %v3935_v44 = vadd.f32 %v3800_v62, %v3550_v43 }
 0x2e1   : > { %v4397_v63 = vadd.f32 %v8317_v39, %v4358_v55  ;;  %v6201_v18 = vpop.f32.mrf.mxu1  ;;  %v3552_v42 = vadd.f32 %v8124_v1, %v3166_v52  ;;  %v3172_v37 = vadd.f32 %v8873_v36, %v8872_v25  ;;  %v8874_v55 = vld [vmem:[#allocation33_spill] sm:$0xff]  ;;  %v8882_v25 = vld [vmem:[#allocation23_spill] sm:$0xff]  ;;  %v8883_v36 = vld [vmem:[#allocation38_spill] sm:$0xff] }
 0x2e2   : > { %v4396_v27 = vadd.f32 %v8317_v39, %v4357_v10  ;;  %v4360_v11 = vmul.f32 %v8306_v23, %v4321_v46  ;;  %v4320_v13 = vadd.f32 %v8248_v50, %v3935_v44  ;;  %v3938_v17 = vadd.f32 %v6201_v18, %v8202_v21  ;;  %6290 = vmatprep.mubr.msk.f32.mxu1 %vm846_vm1, %v4426_v14  ;;  %v8870_v21 = vld [vmem:[#allocation12_spill] sm:$0xff]  ;;  %v8875_v14 = vld [vmem:[#allocation14_spill] sm:$0xff]  ;;  %v8389_v10 = vpop.f32.mrf.mxu0 }
 0x2e3   : > { %v3810_v9 = vpop.f32.mrf.mxu1  ;;  %6291 = vmatmul.mubr.msk.f32.gmra.mxu1 %vm846_vm1, %v4427_v53  ;;  %v4429_v0 = vmax.f32 %v4397_v63, 0.0  ;;  %v3554_v41 = vadd.f32 %v8870_v21, %v3168_v49  ;;  %v8876_v18 = vld [vmem:[#allocation22_spill] sm:$0xff] }
 0x2e4   : > { %v4428_v12 = vmax.f32 %v4396_v27, 0.0  ;;  %v4359_v35 = vmul.f32 %v8306_v23, %v4320_v13  ;;  %v4323_v30 = vadd.f32 %v8252_v61, %v3938_v17  ;;  %v4399_v7 = vadd.f32 %v8317_v39, %v4360_v11 }
 0x2e5   : > { %v3937_v50 = vadd.f32 %v3810_v9, %v3552_v42  ;;  %v6204_v45 = vpop.f32.mrf.mxu1  ;;  %v8878_v42 = vld [vmem:[#allocation15_spill] sm:$0xff] }
 0x2e6   : > { %v4398_v1 = vadd.f32 %v8317_v39, %v4359_v35  ;;  %v4362_v33 = vmul.f32 %v8306_v23, %v4323_v30  ;;  %v3940_v31 = vadd.f32 %v6204_v45, %v8209_v58  ;;  %6293 = vmatprep.mubr.msk.f32.mxu1 %vm846_vm1, %v4428_v12  ;;  %v4431_v32 = vmax.f32 %v4399_v7, 0.0  ;;  %v8402_v7 = vpop.f32.mrf.mxu0 }
 0x2e7   : > { %v4322_v61 = vadd.f32 %v8257_v24, %v3937_v50  ;;  %v3820_v47 = vpop.f32.mrf.mxu1  ;;  %6294 = vmatmul.mubr.msk.f32.gmra.mxu1 %vm846_vm1, %v4429_v0  ;;  %v3558_v9 = vadd.f32 %v8878_v42, %v3172_v37  ;;  %v3176_v37 = vadd.f32 %v8883_v36, %v8882_v25  ;;  %v8893_v36 = vld [vmem:[#allocation28_spill] sm:$0xff] }
 0x2e8   : > { %v4430_v5 = vmax.f32 %v4398_v1, 0.0  ;;  %v4325_v60 = vadd.f32 %v8261_v15, %v3940_v31  ;;  %v3939_v29 = vadd.f32 %v3820_v47, %v3554_v41  ;;  %v4401_v59 = vadd.f32 %v8317_v39, %v4362_v33  ;;  %v8880_v31 = vld [vmem:[#allocation16_spill] sm:$0xff] }
 0x2e9   : > { %v4361_v58 = vmul.f32 %v8306_v23, %v4322_v61  ;;  %v6207_v43 = vpop.f32.mrf.mxu1  ;;  %v3556_v15 = vadd.f32 %v8875_v14, %v3170_v28 }
 0x2ea   : > { %v4364_v52 = vmul.f32 %v8306_v23, %v4325_v60  ;;  %v4324_v24 = vadd.f32 %v8266_v26, %v3939_v29  ;;  %v3942_v62 = vadd.f32 %v6207_v43, %v8874_v55  ;;  %6296 = vmatprep.mubr.msk.f32.mxu1 %vm846_vm1, %v4430_v5  ;;  %v8877_v26 = vld [vmem:[#allocation36_spill] sm:$0xff]  ;;  %v4433_v11 = vmax.f32 %v4401_v59, 0.0  ;;  %v8881_v60 = vld [vmem:[#allocation37_spill] sm:$0xff] }
 0x2eb   : > { %v4400_v46 = vadd.f32 %v8317_v39, %v4361_v58  ;;  %v3830_v44 = vpop.f32.mrf.mxu1  ;;  %6297 = vmatmul.mubr.msk.f32.gmra.mxu1 %vm846_vm1, %v4431_v32  ;;  %v3174_v27 = vadd.f32 %v8877_v26, %v8876_v18  ;;  %v8417_v32 = vpop.f32.mrf.mxu0  ;;  %v8885_v55 = vld [vmem:[#allocation40_spill] sm:$0xff]  ;;  %v8887_v26 = vld [vmem:[#allocation18_spill] sm:$0xff] }
 0x2ec   : > { %v4363_v49 = vmul.f32 %v8306_v23, %v4324_v24  ;;  %v4327_v53 = vadd.f32 %v8271_v38, %v3942_v62  ;;  %v3941_v63 = vadd.f32 %v3830_v44, %v3556_v15  ;;  %v4403_v12 = vadd.f32 %v8317_v39, %v4364_v52  ;;  %v8879_v38 = vld [vmem:[#allocation35_spill] sm:$0xff] }
 0x2ed   : > { %v4432_v13 = vmax.f32 %v4400_v46, 0.0  ;;  %v6210_v17 = vpop.f32.mrf.mxu1 }
 0x2ee   : > { %v4402_v35 = vadd.f32 %v8317_v39, %v4363_v49  ;;  %v4366_v30 = vmul.f32 %v8306_v23, %v4327_v53  ;;  %v4326_v0 = vadd.f32 %v8278_v57, %v3941_v63  ;;  %v3944_v50 = vadd.f32 %v6210_v17, %v8879_v38  ;;  %v8886_v63 = vld [vmem:[#allocation39_spill] sm:$0xff] }
 0x2ef   : > { %6299 = vmatprep.mubr.msk.f32.mxu1 %vm846_vm1, %v4432_v13  ;;  %v3840_v45 = vpop.f32.mrf.mxu1  ;;  %v3560_v57 = vadd.f32 %v8880_v31, %v3174_v27  ;;  %v4435_v61 = vmax.f32 %v4403_v12, 0.0  ;;  %v3562_v27 = vadd.f32 %v8887_v26, %v3176_v37  ;;  %v8889_v12 = vld [vmem:[#allocation42_spill] sm:$0xff]  ;;  %v8890_v38 = vld [vmem:[#allocation19_spill] sm:$0xff] }
 0x2f0   : > { %v4434_v21 = vmax.f32 %v4402_v35, 0.0  ;;  %v4365_v41 = vmul.f32 %v8306_v23, %v4326_v0  ;;  %v3943_v20 = vadd.f32 %v3840_v45, %v3558_v9  ;;  %6300 = vmatmul.mubr.msk.f32.gmra.mxu1 %vm846_vm1, %v4433_v11  ;;  %v4405_v28 = vadd.f32 %v8317_v39, %v4366_v30  ;;  %v8888_v9 = vld [vmem:[#allocation25_spill] sm:$0xff] }
 0x2f1   : > { %v4329_v1 = vadd.f32 %v8289_v56, %v3944_v50  ;;  %v6213_v33 = vpop.f32.mrf.mxu1  ;;  %v3180_v35 = vadd.f32 %v8889_v12, %v8888_v9 }
 0x2f2   : > { %v4404_v47 = vadd.f32 %v8317_v39, %v4365_v41  ;;  %v4328_v5 = vadd.f32 %v8301_v16, %v3943_v20  ;;  %v3946_v29 = vadd.f32 %v6213_v33, %v8881_v60  ;;  %6302 = vmatprep.mubr.msk.f32.mxu1 %vm846_vm1, %v4434_v21  ;;  %v8884_v16 = vld [vmem:[#allocation24_spill] sm:$0xff]  ;;  %v4437_v14 = vmax.f32 %v4405_v28, 0.0  ;;  %v8891_v20 = vld [vmem:[#allocation41_spill] sm:$0xff] }
 0x2f3   : > { %v4368_v59 = vmul.f32 %v8306_v23, %v4329_v1  ;;  %v3850_v56 = vpop.f32.mrf.mxu1  ;;  %v3178_v62 = vadd.f32 %v8885_v55, %v8884_v16  ;;  %v3566_v37 = vadd.f32 %v8893_v36, %v3180_v35  ;;  %v8897_v35 = vld [vmem:[#allocation30_spill] sm:$0xff]  ;;  %v8901_v36 = vld [vmem:[#allocation31_spill] sm:$0xff] }
 0x2f4   : > { %v4436_v58 = vmax.f32 %v4404_v47, 0.0  ;;  %v4367_v43 = vmul.f32 %v8306_v23, %v4328_v5  ;;  %v4331_v52 = vadd.f32 %v8321_v4, %v3946_v29  ;;  %v3945_v24 = vadd.f32 %v3850_v56, %v3560_v57  ;;  %6303 = vmatmul.mubr.msk.f32.gmra.mxu1 %vm846_vm1, %v4435_v61  ;;  %v6275_v4 = vpop.f32.mrf.mxu0  ;;  %v8892_v47 = vld [vmem:[#allocation13_spill] sm:$0xff] }
 0x2f5   : > { %v4407_v15 = vadd.f32 %v8317_v39, %v4368_v59  ;;  %v6216_v46 = vpop.f32.mrf.mxu1  ;;  %v3564_v50 = vadd.f32 %v8890_v38, %v3178_v62  ;;  %v3182_v5 = vadd.f32 %v8264_v54, %v8892_v47  ;;  %v8895_v62 = vld [vmem:[#allocation26_spill] sm:$0xff]  ;;  %v8898_v38 = vld [vmem:[#allocation27_spill] sm:$0xff] }
 0x2f6   : > { %v4406_v44 = vadd.f32 %v8317_v39, %v4367_v43  ;;  %v4370_v49 = vmul.f32 %v8306_v23, %v4331_v52  ;;  %v4330_v53 = vadd.f32 %v8335_v40, %v3945_v24  ;;  %v3948_v18 = vadd.f32 %v6216_v46, %v8886_v63  ;;  %6305 = vmatprep.mubr.msk.f32.mxu1 %vm846_vm1, %v4436_v58  ;;  %v8894_v58 = vld [vmem:[#allocation43_spill] sm:$0xff] }
 0x2f7   : > { %v3860_v11 = vpop.f32.mrf.mxu1  ;;  %v4439_v30 = vmax.f32 %v4407_v15, 0.0 }
 0x2f8   : > { %v4438_v13 = vmax.f32 %v4406_v44, 0.0  ;;  %v4369_v17 = vmul.f32 %v8306_v23, %v4330_v53  ;;  %v4333_v42 = vadd.f32 %v8347_v8, %v3948_v18  ;;  %6306 = vmatmul.mubr.msk.f32.gmra.mxu1 %vm846_vm1, %v4437_v14  ;;  %v3947_v40 = vadd.f32 %v3860_v11, %v3562_v27  ;;  %v4275_v8 = vpop.f32.mrf.mxu0  ;;  %v8896_v44 = vld [vmem:[#allocation29_spill] sm:$0xff] }
 0x2f9   : > { %v6219_v0 = vpop.f32.mrf.mxu1  ;;  %v4409_v45 = vadd.f32 %v8317_v39, %v4370_v49  ;;  %v3184_v14 = vadd.f32 %v8273_v51, %v8895_v62  ;;  %v3568_v49 = vadd.f32 %v8896_v44, %v3182_v5 }
 0x2fa   : > { %v4408_v21 = vadd.f32 %v8317_v39, %v4369_v17  ;;  %v4372_v41 = vmul.f32 %v8306_v23, %v4333_v42  ;;  %v3950_v28 = vadd.f32 %v6219_v0, %v8891_v20  ;;  %6308 = vmatprep.mubr.msk.f32.mxu1 %vm846_vm1, %v4438_v13  ;;  %v4332_v1 = vadd.f32 %v8361_v19, %v3947_v40  ;;  %v6278_v43 = vpop.f32.mrf.mxu0 }
 0x2fb   : > { %v3870_v33 = vpop.f32.mrf.mxu1  ;;  %v4441_v59 = vmax.f32 %v4409_v45, 0.0 }
 0x2fc   : > { %v4440_v31 = vmax.f32 %v4408_v21, 0.0  ;;  %v4335_v57 = vadd.f32 %v8375_v6, %v3950_v28  ;;  %v3949_v61 = vadd.f32 %v3870_v33, %v3564_v50  ;;  %6309 = vmatmul.mubr.msk.f32.gmra.mxu1 %vm846_vm1, %v4439_v30  ;;  %v4411_v60 = vadd.f32 %v8317_v39, %v4372_v41  ;;  %v8899_v50 = vld [vmem:[#allocation44_spill] sm:$0xff] }
 0x2fd   : > { %v4371_v29 = vmul.f32 %v8306_v23, %v4332_v1  ;;  %v6222_v25 = vpop.f32.mrf.mxu1  ;;  %v3570_v30 = vadd.f32 %v8897_v35, %v3184_v14  ;;  %v3186_v45 = vadd.f32 %v8899_v50, %v8898_v38 }
 0x2fe   : > { %v4374_v19 = vmul.f32 %v8306_v23, %v4335_v57  ;;  %v4334_v56 = vadd.f32 %v8389_v10, %v3949_v61  ;;  %v3952_v6 = vadd.f32 %v6222_v25, %v8894_v58  ;;  %6311 = vmatprep.mubr.msk.f32.mxu1 %vm846_vm1, %v4440_v31  ;;  %v4443_v15 = vmax.f32 %v4411_v60, 0.0  ;;  %v8900_v31 = vld [vmem:[#allocation17_spill] sm:$0xff] }
 0x2ff   : > { %v4410_v52 = vadd.f32 %v8317_v39, %v4371_v29  ;;  %v3880_v54 = vpop.f32.mrf.mxu1 }
 0x300   : > { %v4373_v24 = vmul.f32 %v8306_v23, %v4334_v56  ;;  %v4337_v16 = vadd.f32 %v8402_v7, %v3952_v6  ;;  %v3951_v55 = vadd.f32 %v3880_v54, %v3566_v37  ;;  %6312 = vmatmul.mubr.msk.f32.gmra.mxu1 %vm846_vm1, %v4441_v59  ;;  %v4413_v53 = vadd.f32 %v8317_v39, %v4374_v19  ;;  %v4285_v7 = vpop.f32.mrf.mxu0  ;;  %v8902_v54 = vld [vmem:[#allocation32_spill] sm:$0xff] }
 0x301   : > { %v4442_v10 = vmax.f32 %v4410_v52, 0.0  ;;  %v6225_v46 = vpop.f32.mrf.mxu1  ;;  %v3572_v37 = vadd.f32 %v8901_v36, %v3186_v45 }
 0x302   : > { %v4412_v63 = vadd.f32 %v8317_v39, %v4373_v24  ;;  %v4376_v18 = vmul.f32 %v8306_v23, %v4337_v16  ;;  %v4336_v26 = vadd.f32 %v8417_v32, %v3951_v55  ;;  %v3954_v27 = vadd.f32 %v6225_v46, %v8268_v48  ;;  %v6281_v21 = vpop.f32.mrf.mxu0 }
 0x303   : > { %6314 = vmatprep.mubr.msk.f32.mxu1 %vm846_vm1, %v4442_v10  ;;  %v3890_v11 = vpop.f32.mrf.mxu1  ;;  %v4445_v40 = vmax.f32 %v4413_v53, 0.0 }
 0x304   : > { %v4444_v51 = vmax.f32 %v4412_v63, 0.0  ;;  %v4375_v13 = vmul.f32 %v8306_v23, %v4336_v26  ;;  %v3953_v17 = vadd.f32 %v3890_v11, %v3568_v49  ;;  %6315 = vmatmul.mubr.msk.f32.gmra.mxu1 %vm846_vm1, %v4443_v15  ;;  %v4415_v42 = vadd.f32 %v8317_v39, %v4376_v18  ;;  %v4295_v25 = vpop.f32.mrf.mxu0 }
 0x305   : > { %v4339_v9 = vadd.f32 %v6275_v4, %v3954_v27  ;;  %v6228_v12 = vpop.f32.mrf.mxu1 }
 0x306   : > { %v4414_v32 = vadd.f32 %v8317_v39, %v4375_v13  ;;  %v4338_v0 = vadd.f32 %v4275_v8, %v3953_v17  ;;  %v3956_v48 = vadd.f32 %v6228_v12, %v8275_v34  ;;  %6317 = vmatprep.mubr.msk.f32.mxu1 %vm846_vm1, %v4444_v51  ;;  %v3188_v8 = vadd.f32 %v8291_v2, %v8900_v31  ;;  %v6284_v52 = vpop.f32.mrf.mxu0 }
 0x307   : > { %v4378_v41 = vmul.f32 %v8306_v23, %v4339_v9  ;;  %v3900_v20 = vpop.f32.mrf.mxu1  ;;  %v4447_v34 = vmax.f32 %v4415_v42, 0.0 }
 0x308   : > { %v4446_v28 = vmax.f32 %v4414_v32, 0.0  ;;  %v4377_v4 = vmul.f32 %v8306_v23, %v4338_v0  ;;  %v4341_v1 = vadd.f32 %v6278_v43, %v3956_v48  ;;  %v3955_v33 = vadd.f32 %v3900_v20, %v3570_v30  ;;  %6318 = vmatmul.mubr.msk.f32.gmra.mxu1 %vm846_vm1, %v4445_v40  ;;  %v4305_v53 = vpop.f32.mrf.mxu0  ;;  %v6388_v48 = vld [vmem:[%s6679_s11 + $0x8] sm:$0xff]  ;;  %v6389_v20 = vld [vmem:[%s6679_s11] sm:$0xff] }
 0x309   : > { %v4417_v57 = vadd.f32 %v8317_v39, %v4378_v41  ;;  %v6231_v61 = vpop.f32.mrf.mxu1  ;;  %v3574_v24 = vadd.f32 %v8902_v54, %v3188_v8  ;;  %v6390_v8 = vld [vmem:[%s6679_s11 + $0x18] sm:$0xff] }
 0x30a   : > { %v4416_v47 = vadd.f32 %v8317_v39, %v4377_v4  ;;  %v4380_v5 = vmul.f32 %v8306_v23, %v4341_v1  ;;  %v4340_v60 = vadd.f32 %v4285_v7, %v3955_v33  ;;  %v3958_v29 = vadd.f32 %v6231_v61, %v8284_v22  ;;  %6320 = vmatprep.mubr.msk.f32.mxu1 %vm846_vm1, %v4446_v28 }
 0x30b   : > { %v3910_v59 = vpop.f32.mrf.mxu1  ;;  %v4449_v58 = vmax.f32 %v4417_v57, 0.0 }
 0x30c   : > { %v4448_v19 = vmax.f32 %v4416_v47, 0.0  ;;  %v4379_v2 = vmul.f32 %v8306_v23, %v4340_v60  ;;  %v4343_v56 = vadd.f32 %v6281_v21, %v3958_v29  ;;  %6321 = vmatmul.mubr.msk.f32.gmra.mxu1 %vm846_vm1, %v4447_v34  ;;  %v3957_v6 = vadd.f32 %v3910_v59, %v3572_v37  ;;  %v6391_v60 = vld [vmem:[%s6679_s11 + $0x10] sm:$0xff] }
 0x30d   : > { %v6234_v43 = vpop.f32.mrf.mxu1  ;;  %v4419_v22 = vadd.f32 %v8317_v39, %v4380_v5 }
 0x30e   : > { %v4418_v16 = vadd.f32 %v8317_v39, %v4379_v2  ;;  %v4382_v55 = vmul.f32 %v8306_v23, %v4343_v56  ;;  %v3960_v62 = vadd.f32 %v6234_v43, %v8296_v3  ;;  %6323 = vmatprep.mubr.msk.f32.mxu1 %vm846_vm1, %v4448_v19  ;;  %v4342_v14 = vadd.f32 %v4295_v25, %v3957_v6  ;;  %v6392_v19 = vld [vmem:[%s6679_s11 + $0x28] sm:$0xff] }
 0x30f   : > { %v3920_v15 = vpop.f32.mrf.mxu1  ;;  %v4451_v63 = vmax.f32 %v4419_v22, 0.0 }
 0x310   : > { %v4450_v10 = vmax.f32 %v4418_v16, 0.0  ;;  %v4345_v46 = vadd.f32 %v6284_v52, %v3960_v62  ;;  %v3959_v44 = vadd.f32 %v3920_v15, %v3574_v24  ;;  %6324 = vmatmul.mubr.msk.f32.gmra.mxu1 %vm846_vm1, %v4449_v58  ;;  %v4381_v49 = vmul.f32 %v8306_v23, %v4342_v14  ;;  %v6393_v52 = vld [vmem:[%s6679_s11 + $0x20] sm:$0xff] }
 0x311   : > { %v4421_v18 = vadd.f32 %v8317_v39, %v4382_v55  ;;  %v6394_v55 = vld [vmem:[%s6679_s11 + $0x38] sm:$0xff] }
 0x312   : > { %v4384_v26 = vmul.f32 %v8306_v23, %v4345_v46  ;;  %v4344_v7 = vadd.f32 %v4305_v53, %v3959_v44  ;;  %6326 = vmatprep.mubr.msk.f32.mxu1 %vm846_vm1, %v4450_v10  ;;  %v4420_v3 = vadd.f32 %v8317_v39, %v4381_v49  ;;  %v6395_v44 = vld [vmem:[%s6679_s11 + $0x30] sm:$0xff] }
 0x313   : > { %v4453_v51 = vmax.f32 %v4421_v18, 0.0 }
 0x314   : > { %v4383_v27 = vmul.f32 %v8306_v23, %v4344_v7  ;;  %6327 = vmatmul.mubr.msk.f32.gmra.mxu1 %vm846_vm1, %v4451_v63  ;;  %v4452_v11 = vmax.f32 %v4420_v3, 0.0  ;;  %v4423_v13 = vadd.f32 %v8317_v39, %v4384_v26  ;;  %v8513_v23 = vld [vmem:[%s8742_s8] ss:$0 sm:$0xff]  ;;  %v6396_v3 = vld [vmem:[%s6679_s11 + $0x48] sm:$0xff] }
 0x316   : > { %v4422_v17 = vadd.f32 %v8317_v39, %v4383_v27  ;;  %6329 = vmatprep.mubr.msk.f32.mxu1 %vm846_vm1, %v4452_v11  ;;  %v4455_v9 = vmax.f32 %v4423_v13, 0.0  ;;  %v8518_v39 = vld [vmem:[%s8743_s9] ss:$0 sm:$0xff] }
 0x318   : > { %v4454_v42 = vmax.f32 %v4422_v17, 0.0  ;;  %6330 = vmatmul.mubr.msk.f32.gmra.mxu1 %vm846_vm1, %v4453_v51 }
 0x31a   : > { %6332 = vmatprep.mubr.msk.f32.mxu1 %vm846_vm1, %v4454_v42  ;;  %v6397_v42 = vld [vmem:[%s6679_s11 + $0x40] sm:$0xff] }
 0x31c   : > { %6333 = vmatmul.mubr.msk.f32.gmra.mxu1 %vm846_vm1, %v4455_v9 }
 0x39f   : > { %v6289_v12 = vpop.f32.mrf.mxu1 }
 0x3a0   : > { %v4786_v35 = vmul.f32 %v6289_v12, %v8513_v23 }
 0x3a1   : > { %v4619_v30 = vpop.f32.mrf.mxu1 }
 0x3a2   : > { %v4825_v40 = vadd.f32 %v8518_v39, %v4786_v35  ;;  %v4785_v32 = vmul.f32 %v8513_v23, %v4619_v30 }
 0x3a3   : > { %v6292_v0 = vpop.f32.mrf.mxu1 }
 0x3a4   : > { %v4857_v38 = vadd.f32 %v6388_v48, %v4825_v40  ;;  %v4824_v50 = vadd.f32 %v8518_v39, %v4785_v32  ;;  %v4788_v45 = vmul.f32 %v6292_v0, %v8513_v23  ;;  %v6398_v32 = vld [vmem:[%s6679_s11 + $0x58] sm:$0xff] }
 0x3a5   : > { %v4629_v21 = vpop.f32.mrf.mxu1 }
 0x3a6   : > { %v4889_v41 = vmax.f32 %v4857_v38, 0.0  ;;  %v4856_v28 = vadd.f32 %v6389_v20, %v4824_v50  ;;  %v4827_v4 = vadd.f32 %v8518_v39, %v4788_v45  ;;  %v4787_v1 = vmul.f32 %v8513_v23, %v4629_v21  ;;  %v6399_v21 = vld [vmem:[%s6679_s11 + $0x50] sm:$0xff] }
 0x3a7   : > { %v6295_v33 = vpop.f32.mrf.mxu1 }
 0x3a8   : > { %4921 = vst.msk [vmem:[%s8531_s28 + $0x8] sm:$0xff] %vm414_vm0, %v4889_v41  ;;  %v4888_v31 = vmax.f32 %v4856_v28, 0.0  ;;  %v4859_v34 = vadd.f32 %v6390_v8, %v4827_v4  ;;  %v4826_v57 = vadd.f32 %v8518_v39, %v4787_v1  ;;  %v4790_v61 = vmul.f32 %v6295_v33, %v8513_v23  ;;  %v6400_v33 = vld [vmem:[%s6679_s11 + $0x68] sm:$0xff] }
 0x3a9   : > { %v4639_v47 = vpop.f32.mrf.mxu1 }
 0x3aa   : > { %4920 = vst.msk [vmem:[%s8531_s28] sm:$0xff] %vm414_vm0, %v4888_v31  ;;  %v4891_v5 = vmax.f32 %v4859_v34, 0.0  ;;  %v4858_v29 = vadd.f32 %v6391_v60, %v4826_v57  ;;  %v4829_v25 = vadd.f32 %v8518_v39, %v4790_v61  ;;  %v4789_v36 = vmul.f32 %v8513_v23, %v4639_v47  ;;  %v6401_v47 = vld [vmem:[%s6679_s11 + $0x60] sm:$0xff] }
 0x3ab   : > { %v6298_v37 = vpop.f32.mrf.mxu1 }
 0x3ac   : > { %4923 = vst.msk [vmem:[%s8531_s28 + $0x18] sm:$0xff] %vm414_vm0, %v4891_v5  ;;  %v4890_v59 = vmax.f32 %v4858_v29, 0.0  ;;  %v4861_v2 = vadd.f32 %v6392_v19, %v4829_v25  ;;  %v4828_v56 = vadd.f32 %v8518_v39, %v4789_v36  ;;  %v4792_v58 = vmul.f32 %v6298_v37, %v8513_v23  ;;  %v6402_v37 = vld [vmem:[%s6679_s11 + $0x78] sm:$0xff] }
 0x3ad   : > { %v4649_v6 = vpop.f32.mrf.mxu1 }
 0x3ae   : > { %4922 = vst.msk [vmem:[%s8531_s28 + $0x10] sm:$0xff] %vm414_vm0, %v4890_v59  ;;  %v4893_v43 = vmax.f32 %v4861_v2, 0.0  ;;  %v4860_v54 = vadd.f32 %v6393_v52, %v4828_v56  ;;  %v4831_v24 = vadd.f32 %v8518_v39, %v4792_v58  ;;  %v4791_v22 = vmul.f32 %v8513_v23, %v4649_v6  ;;  %v6403_v6 = vld [vmem:[%s6679_s11 + $0x70] sm:$0xff] }
 0x3b0   : > { %4925 = vst.msk [vmem:[%s8531_s28 + $0x28] sm:$0xff] %vm414_vm0, %v4893_v43  ;;  %v4892_v16 = vmax.f32 %v4860_v54, 0.0  ;;  %v4863_v62 = vadd.f32 %v6394_v55, %v4831_v24  ;;  %v4830_v14 = vadd.f32 %v8518_v39, %v4791_v22  ;;  %v6301_v15 = vpop.f32.mrf.mxu1 }
 0x3b1   : > { %v4794_v10 = vmul.f32 %v6301_v15, %v8513_v23 }
 0x3b2   : > { %4924 = vst.msk [vmem:[%s8531_s28 + $0x20] sm:$0xff] %vm414_vm0, %v4892_v16  ;;  %v4895_v46 = vmax.f32 %v4863_v62, 0.0  ;;  %v4862_v49 = vadd.f32 %v6395_v44, %v4830_v14  ;;  %v4659_v53 = vpop.f32.mrf.mxu1  ;;  %v6404_v16 = vld [vmem:[%s6679_s11 + $0x88] sm:$0xff] }
 0x3b3   : > { %v4833_v63 = vadd.f32 %v8518_v39, %v4794_v10  ;;  %v4793_v18 = vmul.f32 %v8513_v23, %v4659_v53 }
 0x3b4   : > { %4927 = vst.msk [vmem:[%s8531_s28 + $0x38] sm:$0xff] %vm414_vm0, %v4895_v46  ;;  %v4894_v26 = vmax.f32 %v4862_v49, 0.0  ;;  %v6304_v7 = vpop.f32.mrf.mxu1  ;;  %v6405_v46 = vld [vmem:[%s6679_s11 + $0x80] sm:$0xff] }
 0x3b5   : > { %v4865_v27 = vadd.f32 %v6396_v3, %v4833_v63  ;;  %v4832_v11 = vadd.f32 %v8518_v39, %v4793_v18  ;;  %v4796_v51 = vmul.f32 %v6304_v7, %v8513_v23 }
 0x3b6   : > { %4926 = vst.msk [vmem:[%s8531_s28 + $0x30] sm:$0xff] %vm414_vm0, %v4894_v26  ;;  %v4669_v13 = vpop.f32.mrf.mxu1  ;;  %v6406_v26 = vld [vmem:[%s6679_s11 + $0x98] sm:$0xff] }
 0x3b7   : > { %v4897_v17 = vmax.f32 %v4865_v27, 0.0  ;;  %v4864_v9 = vadd.f32 %v6397_v42, %v4832_v11  ;;  %v4835_v12 = vadd.f32 %v8518_v39, %v4796_v51  ;;  %v4795_v35 = vmul.f32 %v8513_v23, %v4669_v13  ;;  %v6407_v13 = vld [vmem:[%s6679_s11 + $0x90] sm:$0xff] }
 0x3b8   : > { %v6307_v30 = vpop.f32.mrf.mxu1 }
 0x3b9   : > { %4929 = vst.msk [vmem:[%s8531_s28 + $0x48] sm:$0xff] %vm414_vm0, %v4897_v17  ;;  %v4896_v40 = vmax.f32 %v4864_v9, 0.0  ;;  %v4867_v0 = vadd.f32 %v6398_v32, %v4835_v12  ;;  %v4834_v48 = vadd.f32 %v8518_v39, %v4795_v35  ;;  %v4798_v38 = vmul.f32 %v6307_v30, %v8513_v23  ;;  %v6408_v30 = vld [vmem:[%s6679_s11 + $0xa8] sm:$0xff] }
 0x3ba   : > { %v4679_v50 = vpop.f32.mrf.mxu1 }
 0x3bb   : > { %4928 = vst.msk [vmem:[%s8531_s28 + $0x40] sm:$0xff] %vm414_vm0, %v4896_v40  ;;  %v4899_v45 = vmax.f32 %v4867_v0, 0.0  ;;  %v4866_v41 = vadd.f32 %v6399_v21, %v4834_v48  ;;  %v4837_v20 = vadd.f32 %v8518_v39, %v4798_v38  ;;  %v4797_v28 = vmul.f32 %v8513_v23, %v4679_v50  ;;  %v6409_v50 = vld [vmem:[%s6679_s11 + $0xa0] sm:$0xff] }
 0x3bc   : > { %v6310_v4 = vpop.f32.mrf.mxu1 }
 0x3bd   : > { %4931 = vst.msk [vmem:[%s8531_s28 + $0x58] sm:$0xff] %vm414_vm0, %v4899_v45  ;;  %v4898_v1 = vmax.f32 %v4866_v41, 0.0  ;;  %v4869_v31 = vadd.f32 %v6400_v33, %v4837_v20  ;;  %v4836_v8 = vadd.f32 %v8518_v39, %v4797_v28  ;;  %v4800_v34 = vmul.f32 %v6310_v4, %v8513_v23  ;;  %v6410_v4 = vld [vmem:[%s6679_s11 + $0xb8] sm:$0xff] }
 0x3be   : > { %v4689_v57 = vpop.f32.mrf.mxu1 }
 0x3bf   : > { %4930 = vst.msk [vmem:[%s8531_s28 + $0x50] sm:$0xff] %vm414_vm0, %v4898_v1  ;;  %v4901_v61 = vmax.f32 %v4869_v31, 0.0  ;;  %v4868_v5 = vadd.f32 %v6401_v47, %v4836_v8  ;;  %v4839_v60 = vadd.f32 %v8518_v39, %v4800_v34  ;;  %v4799_v29 = vmul.f32 %v8513_v23, %v4689_v57  ;;  %v6411_v57 = vld [vmem:[%s6679_s11 + $0xb0] sm:$0xff] }
 0x3c0   : > { %v6313_v25 = vpop.f32.mrf.mxu1 }
 0x3c1   : > { %4933 = vst.msk [vmem:[%s8531_s28 + $0x68] sm:$0xff] %vm414_vm0, %v4901_v61  ;;  %v4900_v36 = vmax.f32 %v4868_v5, 0.0  ;;  %v4871_v59 = vadd.f32 %v6402_v37, %v4839_v60  ;;  %v4838_v19 = vadd.f32 %v8518_v39, %v4799_v29  ;;  %v4802_v2 = vmul.f32 %v6313_v25, %v8513_v23  ;;  %v6412_v25 = vld [vmem:[%s6679_s11 + $0xc8] sm:$0xff] }
 0x3c2   : > { %v4699_v56 = vpop.f32.mrf.mxu1 }
 0x3c3   : > { %4932 = vst.msk [vmem:[%s8531_s28 + $0x60] sm:$0xff] %vm414_vm0, %v4900_v36  ;;  %v4903_v58 = vmax.f32 %v4871_v59, 0.0  ;;  %v4870_v43 = vadd.f32 %v6403_v6, %v4838_v19  ;;  %v4841_v52 = vadd.f32 %v8518_v39, %v4802_v2  ;;  %v4801_v54 = vmul.f32 %v8513_v23, %v4699_v56  ;;  %v6413_v56 = vld [vmem:[%s6679_s11 + $0xc0] sm:$0xff] }
 0x3c4   : > { %v6316_v24 = vpop.f32.mrf.mxu1 }
 0x3c5   : > { %4935 = vst.msk [vmem:[%s8531_s28 + $0x78] sm:$0xff] %vm414_vm0, %v4903_v58  ;;  %v4902_v22 = vmax.f32 %v4870_v43, 0.0  ;;  %v4873_v55 = vadd.f32 %v6404_v16, %v4841_v52  ;;  %v4840_v62 = vadd.f32 %v8518_v39, %v4801_v54  ;;  %v4804_v14 = vmul.f32 %v6316_v24, %v8513_v23  ;;  %v6414_v24 = vld [vmem:[%s6679_s11 + $0xd8] sm:$0xff] }
 0x3c6   : > { %v4709_v15 = vpop.f32.mrf.mxu1 }
 0x3c7   : > { %4934 = vst.msk [vmem:[%s8531_s28 + $0x70] sm:$0xff] %vm414_vm0, %v4902_v22  ;;  %v4905_v10 = vmax.f32 %v4873_v55, 0.0  ;;  %v4872_v44 = vadd.f32 %v6405_v46, %v4840_v62  ;;  %v4843_v49 = vadd.f32 %v8518_v39, %v4804_v14  ;;  %v4803_v53 = vmul.f32 %v8513_v23, %v4709_v15  ;;  %v6415_v15 = vld [vmem:[%s6679_s11 + $0xd0] sm:$0xff] }
 0x3c8   : > { %v6319_v63 = vpop.f32.mrf.mxu1 }
 0x3c9   : > { %4937 = vst.msk [vmem:[%s8531_s28 + $0x88] sm:$0xff] %vm414_vm0, %v4905_v10  ;;  %v4904_v18 = vmax.f32 %v4872_v44, 0.0  ;;  %v4875_v7 = vadd.f32 %v6406_v26, %v4843_v49  ;;  %v4842_v3 = vadd.f32 %v8518_v39, %v4803_v53  ;;  %v4806_v27 = vmul.f32 %v6319_v63, %v8513_v23  ;;  %v6416_v63 = vld [vmem:[%s6679_s11 + $0xe8] sm:$0xff] }
 0x3ca   : > { %v4719_v11 = vpop.f32.mrf.mxu1 }
 0x3cb   : > { %4936 = vst.msk [vmem:[%s8531_s28 + $0x80] sm:$0xff] %vm414_vm0, %v4904_v18  ;;  %v4907_v51 = vmax.f32 %v4875_v7, 0.0  ;;  %v4874_v17 = vadd.f32 %v6407_v13, %v4842_v3  ;;  %v4845_v42 = vadd.f32 %v8518_v39, %v4806_v27  ;;  %v4805_v9 = vmul.f32 %v8513_v23, %v4719_v11  ;;  %v6417_v11 = vld [vmem:[%s6679_s11 + $0xe0] sm:$0xff] }
 0x3cc   : > { %v6322_v12 = vpop.f32.mrf.mxu1 }
 0x3cd   : > { %4939 = vst.msk [vmem:[%s8531_s28 + $0x98] sm:$0xff] %vm414_vm0, %v4907_v51  ;;  %v4906_v35 = vmax.f32 %v4874_v17, 0.0  ;;  %v4877_v40 = vadd.f32 %v6408_v30, %v4845_v42  ;;  %v4844_v32 = vadd.f32 %v8518_v39, %v4805_v9  ;;  %v4808_v0 = vmul.f32 %v6322_v12, %v8513_v23  ;;  %v6418_v9 = vld [vmem:[%s6679_s11 + $0xf8] sm:$0xff] }
 0x3ce   : > { %v4729_v48 = vpop.f32.mrf.mxu1 }
 0x3cf   : > { %4938 = vst.msk [vmem:[%s8531_s28 + $0x90] sm:$0xff] %vm414_vm0, %v4906_v35  ;;  %v4909_v38 = vmax.f32 %v4877_v40, 0.0  ;;  %v4876_v45 = vadd.f32 %v6409_v50, %v4844_v32  ;;  %v4847_v21 = vadd.f32 %v8518_v39, %v4808_v0  ;;  %v4807_v41 = vmul.f32 %v8513_v23, %v4729_v48  ;;  %v6419_v40 = vld [vmem:[%s6679_s11 + $0xf0] sm:$0xff]  ;;  %s6518_s11 = smov [#allocation6]  }
 0x3d0   : > { %v6325_v20 = vpop.f32.mrf.mxu1  ;;  %s6452_s20 = sshll.u32 %s6518_s11, 4  ;;  %s6453_s20 = int_to_ptr.vmem [resolvable:$false] %s6452_s20 }
 0x3d1   : > { %4941 = vst.msk [vmem:[%s8531_s28 + $0xa8] sm:$0xff] %vm414_vm0, %v4909_v38  ;;  %v4908_v28 = vmax.f32 %v4876_v45, 0.0  ;;  %v4879_v1 = vadd.f32 %v6410_v4, %v4847_v21  ;;  %v4846_v33 = vadd.f32 %v8518_v39, %v4807_v41  ;;  %v4810_v31 = vmul.f32 %v6325_v20, %v8513_v23  ;;  %s6454_s21 = scalar_lea.vmem %s6453_s20, 8192  ;;  %p6455_p5 = scmp.lt.s32.totalorder %s8687_s15, %s6453_s20 }
 0x3d2   : > { %v4739_v8 = vpop.f32.mrf.mxu1  ;;  %p6456_p7 = scmp.lt.s32.totalorder %s6454_s21, %s6448_s12 }
 0x3d3   : > { %4940 = vst.msk [vmem:[%s8531_s28 + $0xa0] sm:$0xff] %vm414_vm0, %v4908_v28  ;;  %v4911_v34 = vmax.f32 %v4879_v1, 0.0  ;;  %v4878_v61 = vadd.f32 %v6411_v57, %v4846_v33  ;;  %v4849_v47 = vadd.f32 %v8518_v39, %v4810_v31  ;;  %v4809_v5 = vmul.f32 %v8513_v23, %v4739_v8 }
 0x3d4   : > { %v6328_v60 = vpop.f32.mrf.mxu1  ;;  %p6457_p8 = por %p6456_p7, %p6455_p5 }
 0x3d5   : > { %4943 = vst.msk [vmem:[%s8531_s28 + $0xb8] sm:$0xff] %vm414_vm0, %v4911_v34  ;;  %v4910_v29 = vmax.f32 %v4878_v61, 0.0  ;;  %v4881_v36 = vadd.f32 %v6412_v25, %v4849_v47  ;;  %v4848_v37 = vadd.f32 %v8518_v39, %v4809_v5  ;;  %v4812_v59 = vmul.f32 %v6328_v60, %v8513_v23 }
 0x3d6   : > { %v4749_v19 = vpop.f32.mrf.mxu1  ;;  %p6458_p10 = pnand %p6457_p8, %p6451_p4 }
 0x3d7   : > { %4942 = vst.msk [vmem:[%s8531_s28 + $0xb0] sm:$0xff] %vm414_vm0, %v4910_v29  ;;  %v4913_v2 = vmax.f32 %v4881_v36, 0.0  ;;  %v4880_v58 = vadd.f32 %v6413_v56, %v4848_v37  ;;  %v4851_v6 = vadd.f32 %v8518_v39, %v4812_v59  ;;  %v4811_v43 = vmul.f32 %v8513_v23, %v4749_v19 }
 0x3d8   : > { %v6331_v52 = vpop.f32.mrf.mxu1 }
 0x3d9   : > { %4945 = vst.msk [vmem:[%s8531_s28 + $0xc8] sm:$0xff] %vm414_vm0, %v4913_v2  ;;  %v4912_v54 = vmax.f32 %v4880_v58, 0.0  ;;  %v4883_v22 = vadd.f32 %v6414_v24, %v4851_v6  ;;  %v4850_v16 = vadd.f32 %v8518_v39, %v4811_v43  ;;  %v4814_v55 = vmul.f32 %v6331_v52, %v8513_v23 }
 0x3da   : > { %v4759_v62 = vpop.f32.mrf.mxu1 }
 0x3db   : > { %4944 = vst.msk [vmem:[%s8531_s28 + $0xc0] sm:$0xff] %vm414_vm0, %v4912_v54  ;;  %v4915_v14 = vmax.f32 %v4883_v22, 0.0  ;;  %v4882_v10 = vadd.f32 %v6415_v15, %v4850_v16  ;;  %v4853_v46 = vadd.f32 %v8518_v39, %v4814_v55  ;;  %v4813_v44 = vmul.f32 %v8513_v23, %v4759_v62 }
 0x3dc   : > { %v6334_v49 = vpop.f32.mrf.mxu1 }
 0x3dd   : > { %4947 = vst.msk [vmem:[%s8531_s28 + $0xd8] sm:$0xff] %vm414_vm0, %v4915_v14  ;;  %v4914_v53 = vmax.f32 %v4882_v10, 0.0  ;;  %v4885_v18 = vadd.f32 %v6416_v63, %v4853_v46  ;;  %v4852_v26 = vadd.f32 %v8518_v39, %v4813_v44  ;;  %v4816_v7 = vmul.f32 %v6334_v49, %v8513_v23 }
 0x3de   : > { %v4769_v3 = vpop.f32.mrf.mxu1 }
 0x3df   : > { %4946 = vst.msk [vmem:[%s8531_s28 + $0xd0] sm:$0xff] %vm414_vm0, %v4914_v53  ;;  %v4917_v27 = vmax.f32 %v4885_v18, 0.0  ;;  %v4884_v51 = vadd.f32 %v6417_v11, %v4852_v26  ;;  %v4855_v13 = vadd.f32 %v8518_v39, %v4816_v7  ;;  %v4815_v17 = vmul.f32 %v8513_v23, %v4769_v3 }
 0x3e1   : > { %4949 = vst.msk [vmem:[%s8531_s28 + $0xe8] sm:$0xff] %vm414_vm0, %v4917_v27  ;;  %v4916_v42 = vmax.f32 %v4884_v51, 0.0  ;;  %v4887_v12 = vadd.f32 %v6418_v9, %v4855_v13  ;;  %v4854_v35 = vadd.f32 %v8518_v39, %v4815_v17 }
 0x3e3   : > { %4948 = vst.msk [vmem:[%s8531_s28 + $0xe0] sm:$0xff] %vm414_vm0, %v4916_v42  ;;  %v4919_v30 = vmax.f32 %v4887_v12, 0.0  ;;  %v4886_v32 = vadd.f32 %v6419_v40, %v4854_v35 }
 0x3e5   : > { %4951 = vst.msk [vmem:[%s8531_s28 + $0xf8] sm:$0xff] %vm414_vm0, %v4919_v30  ;;  %v4918_v23 = vmax.f32 %v4886_v32, 0.0 }
 0x3e7   : > { %4950 = vst.msk [vmem:[%s8531_s28 + $0xf0] sm:$0xff] %vm414_vm0, %v4918_v23 }
 0x3e8   : > { %6461 = shalt.err (!%p6458_p10)
}
 0x3e9   : > { %s6462_s27 = scalar_lea.hbm %s8685_s22, 4096  ;;  %s6466_s28 = scalar_lea.hbm %s8744_s10, 8192 }
 0x3ea   : > { %p6463_p0 = scmp.ne.s32.totalorder %s8685_s22, %s6462_s27  ;;  %p6467_p1 = scmp.lt.s32.totalorder %s8685_s22, %s8744_s10 }
 0x3eb   : > { %p6468_p3 = scmp.lt.s32.totalorder %s6466_s28, %s6462_s27 }
 0x3ec   : > { %p6464_p2 = pnand %p6463_p0, %p8903_p12 }
 0x3ed   : > { %p6469_p6 = por %p6468_p3, %p6467_p1 }
 0x3ee   : > { %p6465_p9 = pneg %p6464_p2 }
 0x3f0   : > { %p6470_p11 = pnand %p6469_p6, %p6465_p9 }
 0x3f2   : > { %6473 = shalt.err (!%p6470_p11)
}
 0x3f3   : > { %s6519_s23 = smov 128   ;;  %s6520_s12 = smov 8  }
 0x3f4   : > { %6339 = dma.vmem_to_hbm [thread:$0]  (%p8903_p12), %s8687_s15, 4096, %s8685_s22, %s4953_s17, %s6519_s23, %s6519_s23, %s6520_s12  }
 0x3f5 PF: > { %s4981_s11 = sand.u32 1, %s6500_s13   ;;  %p8904_p13 = scmp.ne.s32.totalorder %s8786_s26, 0 }
 0x3f6   : > { %p8905_p4 = scmp.ge.s32.totalorder %s6512_s16, 2  ;;  %s4982_s20 = scalar_lea.sflag [#allocation5], %s4981_s11 }
 0x3f8   : > { %p6346_p5 = pnand %p8905_p4, %p8904_p13 }
 0x3fa   : > { %p6347_p7 = pneg %p6346_p5 }
 0x3fc   : > { %6495 = dma.done.wait (%p6347_p7), %s4982_s20, 4096  }
 0x3fd   : > { %6497 = vsyncadd (%p6347_p7), %s4982_s20, 4294963200  ;;  %s8906_s16 = sld [smem:[#allocation10_spill]]  ;;  %s8909_s13 = smov %s6504_s14 }
 0x3fe   : > { %s8907_s21 = sld [smem:[#allocation9_spill]] }
 0x3ff   : > { %s8908_s15 = sld [smem:[#allocation11_spill]] }
 0x403   : > { %p23_p8 = scmp.ge.s32.totalorder %s8906_s16, 4  }
 0x404   : > { %s8910_s14 = smov %s8907_s21 }
 0x405   :  { %25 = sbr.rel (!%p23_p8) target bundleno = 5 (0x5), region = 107 }
 0x40a   :  { %4987 = vsyncpa [#allocation4], 1 }
 0x40b   :  { %4989 = vsyncpa [#allocation4 + $0x1], 1 }
 0x40c   :  { %4990 = vsyncpa [#allocation5], 1 }
 0x40d   :  { %4992 = vsyncpa [#allocation5 + $0x1], 1 }

</bundles_post_ra>
